<compile_context>
chip_gen: v5e
topology: v5e:2x2
jax: 0.10.0
libtpu: 0.0.40
codegen_flags: <defaults>
</compile_context>

<pallas_src>
import jax
import jax.numpy as jnp
from jax import lax
from jax.experimental import pallas as pl
from jax.experimental.pallas import tpu as pltpu


def seq2seq_kernel(tf_ref,          # SMEM (L_trg,) int32 teacher-forcing flags
                   enc_tok_f_ref,   # VMEM (L_src*Bp, 1) int32, time-major src tokens
                   enc_tok_b_ref,   # VMEM (L_src*Bp, 1) int32, time-reversed src tokens
                   trg_tok_ref,     # VMEM (L_trg*Bp, 1) int32, time-major trg tokens
                   w_enc_f_ref,     # (Vp, Hp) bf16  emb_e @ W_ih_f + b_f   (bias folded)
                   w_enc_b_ref,     # (Vp, Hp) bf16  emb_e @ W_ih_b + b_b
                   whh_bd_ref,      # (2Hp, 2Hp) bf16 block-diag(W_hh_f, W_hh_b)
                   wfc_cat_ref,     # (2Hp, Hp) bf16  vstack(fc_fwd_half, fc_bwd_half)
                   bfc_ref,         # (1, Hp) f32
                   w_dec_in_ref,    # (Vp, Hp) bf16  emb_d @ W_ih_d + b_d
                   w_cat_ref,       # (Hp, Hp+Vp) bf16  [W_hh_d | W_out]
                   bout_ref,        # (1, Vp) f32  (padded vocab cols = -1e30)
                   out_ref,         # VMEM (L_trg, Bp) f32
                   enc_proj_ref,    # VMEM scratch (L_src*Bp, 2Hp) f32
                   dec_proj_ref,    # VMEM scratch (L_trg*Bp, Hp) f32
                   xp_ref):         # VMEM scratch (Bp, Hp) f32  (next-step input projection)
    f32 = jnp.float32
    bf16 = jnp.bfloat16
    L_trg, Bp = out_ref.shape
    Vp, Hp = w_dec_in_ref.shape
    n_enc = enc_tok_f_ref.shape[0]
    L_src = n_enc // Bp

    def one_hot(tok_col, rows):                    # (rows, 1) int32 -> (rows, Vp) bf16 (exact)
        lanes = lax.broadcasted_iota(jnp.int32, (rows, Vp), 1)
        return (lanes == tok_col).astype(bf16)

    # ---- encoder input side: one-hot lookups against the host-composed (Vp,Hp) weights ----
    oh_f = one_hot(enc_tok_f_ref[...], n_enc)
    oh_b = one_hot(enc_tok_b_ref[...], n_enc)
    enc_proj_ref[:, :Hp] = jnp.dot(oh_f, w_enc_f_ref[...], preferred_element_type=f32)
    enc_proj_ref[:, Hp:] = jnp.dot(oh_b, w_enc_b_ref[...], preferred_element_type=f32)

    # ---- fused fwd+bwd recurrence: one (Bp,2Hp)@(2Hp,2Hp) bf16 matmul + tanh per step ------
    def enc_body(i, h_cat):
        start = pl.multiple_of(i * Bp, Bp)
        xp = enc_proj_ref[pl.ds(start, Bp), :]
        return jnp.tanh(xp + jnp.dot(h_cat.astype(bf16), whh_bd_ref[...],
                                     preferred_element_type=f32))

    h_cat = lax.fori_loop(0, L_src, enc_body,
                          jnp.zeros((Bp, 2 * Hp), f32), unroll=True)

    # context c = tanh(fc([h_f, h_b])) as a single matmul against the stacked fc weight
    c = jnp.tanh(jnp.dot(h_cat.astype(bf16), wfc_cat_ref[...],
                         preferred_element_type=f32) + bfc_ref[...])

    # ---- decoder: teacher-forced input projections for all steps in one batched matmul ----
    oh_trg = one_hot(trg_tok_ref[...], trg_tok_ref.shape[0])
    dec_proj_ref[...] = jnp.dot(oh_trg, w_dec_in_ref[...], preferred_element_type=f32)

    # small hoisted loop invariants (bias broadcast + iotas); big weights stay in their refs
    bout_b = jnp.broadcast_to(bout_ref[...], (Bp, Vp))
    lane_idx = lax.broadcasted_iota(jnp.int32, (Bp, Vp), 1)
    row_idx = lax.broadcasted_iota(jnp.int32, (L_trg, Bp), 0)

    xp_ref[...] = dec_proj_ref[:Bp, :]                              # projection of trg[:, 0]
    zh0 = jnp.dot(c.astype(bf16), w_cat_ref[:, :Hp],                # h_0 @ W_hh_d
                  preferred_element_type=f32)

    def dec_body(t, carry):
        zh, acc = carry                                             # zh = h_{t-1} @ W_hh_d
        h = jnp.tanh(xp_ref[...] + zh)
        # single fused matmul: [next-step hidden pre-activation | logits]
        z = jnp.dot(h.astype(bf16), w_cat_ref[...], preferred_element_type=f32)  # (Bp, Hp+Vp)
        logits = z[:, Hp:] + bout_b
        # first-occurrence argmax over vocab lanes (padded cols carry -1e30 so never win)
        m = jnp.max(logits, axis=1, keepdims=True)
        preds = jnp.min(jnp.where(logits == m, lane_idx, Vp), axis=1)            # (Bp,) int32
        acc = jnp.where(row_idx == t, preds[None, :].astype(f32), acc)
        # next-step input: teacher forcing (precomputed slice) by default, prediction path
        # only when the flag says so (pl.when keeps the extra matmul off forced steps).
        start = pl.multiple_of(t * Bp, Bp)
        xp_ref[...] = dec_proj_ref[pl.ds(start, Bp), :]

        @pl.when(tf_ref[t] == 0)
        def _():
            xp_ref[...] = jnp.dot(one_hot(preds[:, None], Bp), w_dec_in_ref[...],
                                  preferred_element_type=f32)

        return z[:, :Hp], acc

    _, acc = lax.fori_loop(1, L_trg, dec_body,
                           (zh0, jnp.zeros((L_trg, Bp), f32)),      # row 0 stays zero
                           unroll=True)

    out_ref[...] = acc                                              # single store at the end


def init_params(key, vocab, embed_dim, hidden):
    ks = jax.random.split(key, 16)
    f = lambda k, shape: 0.1 * jax.random.normal(k, shape, jnp.float32)
    return (
        f(ks[0],  (vocab, embed_dim)),        # encoder embedding
        f(ks[1],  (embed_dim, hidden)),       # fwd RNN W_ih
        f(ks[2],  (hidden, hidden)),          # fwd RNN W_hh
        f(ks[3],  (1, hidden)),               # fwd RNN bias
        f(ks[4],  (embed_dim, hidden)),       # bwd RNN W_ih
        f(ks[5],  (hidden, hidden)),          # bwd RNN W_hh
        f(ks[6],  (1, hidden)),               # bwd RNN bias
        f(ks[7],  (hidden, hidden)),          # fc (fwd half)
        f(ks[8],  (hidden, hidden)),          # fc (bwd half)
        f(ks[9],  (1, hidden)),               # fc bias
        f(ks[10], (vocab, embed_dim)),        # decoder embedding
        f(ks[11], (embed_dim, hidden)),       # dec RNN W_ih
        f(ks[12], (hidden, hidden)),          # dec RNN W_hh
        f(ks[13], (1, hidden)),               # dec RNN bias
        f(ks[14], (hidden, vocab)),           # output projection
        f(ks[15], (1, vocab)),                # output bias
    )


def _round_up(x, m):
    return ((x + m - 1) // m) * m


def prepare_weights(params):
    """One-time host-side weight padding / composition. Returns persistent device arrays."""
    (emb_e, wf_ih, wf_hh, bf, wb_ih, wb_hh, bb,
     wfc_f, wfc_b, bfc, emb_d, wd_ih, wd_hh, bd, wout, bout) = params
    V, _ = emb_e.shape
    H = wf_hh.shape[0]
    Vp, Hp = _round_up(V, 128), _round_up(H, 128)

    def pad2(x, r, c, dtype=jnp.float32):
        x = jnp.asarray(x, jnp.float32)
        return jnp.pad(x, ((0, r - x.shape[0]), (0, c - x.shape[1]))).astype(dtype)

    bf16 = jnp.bfloat16
    # embedding @ W_ih with the per-cell bias folded into every real vocab row:
    # one_hot(tok) @ w_in == emb[tok] @ W_ih + b   (one-hot rows have exactly one 1)
    w_enc_f = pad2(emb_e @ wf_ih + bf, Vp, Hp, bf16)
    w_enc_b = pad2(emb_e @ wb_ih + bb, Vp, Hp, bf16)
    w_dec_in = pad2(emb_d @ wd_ih + bd, Vp, Hp, bf16)

    whh_bd = jnp.zeros((2 * Hp, 2 * Hp), jnp.float32)
    whh_bd = whh_bd.at[:Hp, :Hp].set(pad2(wf_hh, Hp, Hp))
    whh_bd = whh_bd.at[Hp:, Hp:].set(pad2(wb_hh, Hp, Hp))
    whh_bd = whh_bd.astype(bf16)

    wfc_cat = jnp.concatenate([pad2(wfc_f, Hp, Hp), pad2(wfc_b, Hp, Hp)], axis=0).astype(bf16)
    bfc_p = pad2(bfc, 1, Hp)

    # decoder fused [W_hh | W_out]; padded vocab columns get a -1e30 output bias
    w_cat = jnp.concatenate([pad2(wd_hh, Hp, Hp), pad2(wout, Hp, Vp)], axis=1).astype(bf16)
    bout_p = jnp.full((1, Vp), -1e30, jnp.float32).at[:, :V].set(
        jnp.asarray(bout, jnp.float32))

    return (w_enc_f, w_enc_b, whh_bd, wfc_cat, bfc_p, w_dec_in, w_cat, bout_p)


@jax.jit
def seq2seq_forward(src, trg, weights, tf_flags):
    """src, trg: (B, L) int32. Returns (B, L_trg) float32 of greedy predictions,
    first column zeros — identical semantics to the PyTorch Seq2seq.forward."""
    w_enc_f, w_enc_b, whh_bd, wfc_cat, bfc_p, w_dec_in, w_cat, bout_p = weights
    Vp, Hp = w_dec_in.shape
    B, L_src = src.shape
    L_trg = trg.shape[1]
    Bp = _round_up(max(B, 8), 8)

    # token tensors: time-major, batch padded with token 0, flattened time-major rows
    src_tm = jnp.pad(jnp.asarray(src, jnp.int32).T, ((0, 0), (0, Bp - B)))    # (L_src, Bp)
    trg_tm = jnp.pad(jnp.asarray(trg, jnp.int32).T, ((0, 0), (0, Bp - B)))    # (L_trg, Bp)
    enc_tok_f = src_tm.reshape(L_src * Bp, 1)
    enc_tok_b = src_tm[::-1].reshape(L_src * Bp, 1)
    trg_tok = trg_tm.reshape(L_trg * Bp, 1)

    args = (jnp.asarray(tf_flags, jnp.int32), enc_tok_f, enc_tok_b, trg_tok,
            w_enc_f, w_enc_b, whh_bd, wfc_cat, bfc_p, w_dec_in, w_cat, bout_p)

    out_tm = pl.pallas_call(
        seq2seq_kernel,
        out_shape=jax.ShapeDtypeStruct((L_trg, Bp), jnp.float32),
        in_specs=[pl.BlockSpec(memory_space=pltpu.MemorySpace.SMEM)]
                 + [pl.BlockSpec(memory_space=pltpu.MemorySpace.VMEM)] * (len(args) - 1),
        out_specs=pl.BlockSpec(memory_space=pltpu.MemorySpace.VMEM),
        scratch_shapes=[pltpu.VMEM((L_src * Bp, 2 * Hp), jnp.float32),
                        pltpu.VMEM((L_trg * Bp, Hp), jnp.float32),
                        pltpu.VMEM((Bp, Hp), jnp.float32)],
    )(*args)

    return out_tm[:, :B].T


if __name__ == "__main__":
    key = jax.random.PRNGKey(0)
    k_params, k_tf = jax.random.split(key)

    VOCAB, EMBED, HIDDEN = 6, 10, 20
    params = init_params(k_params, VOCAB, EMBED, HIDDEN)

    src = jnp.array([[1, 2, 3, 4, 5, 0, 0],
                     [1, 4, 4, 3, 2, 0, 0],
                     [1, 3, 3, 3, 5, 2, 0]], dtype=jnp.int32)
    trg = jnp.array([[1, 5, 4, 3, 2, 0, 0],
                     [1, 2, 3, 4, 4, 0, 0],
                     [1, 2, 5, 3, 3, 3, 0]], dtype=jnp.int32)

    # deterministic stand-in for `random.random() < teacher_forcing_ratio` per step
    tf_flags = (jax.random.uniform(k_tf, (trg.shape[1],)) < 0.5).astype(jnp.int32)

    weights = prepare_weights(params)     # one-time padding / composition, reused per call
    outputs = seq2seq_forward(src, trg, weights, tf_flags)
    jax.block_until_ready(outputs)

    assert outputs.shape == (src.shape[0], trg.shape[1])
    assert outputs.dtype == jnp.float32
    print("KERNEL_OK")
</pallas_src>

<mosaic_0001>
module attributes {stable_mosaic.version = 11 : i64} {
  func.func @seq2seq_kernel(%arg0: memref<7xi32, #tpu.memory_space<smem>>, %arg1: memref<56x1xi32, #tpu.memory_space<vmem>>, %arg2: memref<56x1xi32, #tpu.memory_space<vmem>>, %arg3: memref<56x1xi32, #tpu.memory_space<vmem>>, %arg4: memref<128x128xbf16, #tpu.memory_space<vmem>>, %arg5: memref<128x128xbf16, #tpu.memory_space<vmem>>, %arg6: memref<256x256xbf16, #tpu.memory_space<vmem>>, %arg7: memref<256x128xbf16, #tpu.memory_space<vmem>>, %arg8: memref<1x128xf32, #tpu.memory_space<vmem>>, %arg9: memref<128x128xbf16, #tpu.memory_space<vmem>>, %arg10: memref<128x256xbf16, #tpu.memory_space<vmem>>, %arg11: memref<1x128xf32, #tpu.memory_space<vmem>>, %arg12: memref<7x8xf32, #tpu.memory_space<vmem>>, %arg13: memref<56x256xf32, #tpu.memory_space<vmem>>, %arg14: memref<56x128xf32, #tpu.memory_space<vmem>>, %arg15: memref<8x128xf32, #tpu.memory_space<vmem>>) attributes {dimension_semantics = [], scalar_prefetch = 0 : i64, scratch_operands = 3 : i64, tpu.core_type = #tpu.core_type<tc>} {
    %c0 = arith.constant 0 : index
    %c0_0 = arith.constant 0 : index
    %0 = vector.load %arg1[%c0, %c0_0] : memref<56x1xi32, #tpu.memory_space<vmem>>, vector<56x1xi32>
    %1 = tpu.iota {dimensions = array<i32: 1>} : vector<56x128xi32>
    %2 = vector.broadcast %0 : vector<56x1xi32> to vector<56x128xi32>
    %3 = arith.cmpi eq, %1, %2 : vector<56x128xi32>
    %4 = arith.extui %3 : vector<56x128xi1> to vector<56x128xi32>
    %5 = arith.sitofp %4 : vector<56x128xi32> to vector<56x128xf32>
    %6 = arith.truncf %5 : vector<56x128xf32> to vector<56x128xbf16>
    %c0_1 = arith.constant 0 : index
    %c0_2 = arith.constant 0 : index
    %7 = vector.load %arg2[%c0_1, %c0_2] : memref<56x1xi32, #tpu.memory_space<vmem>>, vector<56x1xi32>
    %8 = tpu.iota {dimensions = array<i32: 1>} : vector<56x128xi32>
    %9 = vector.broadcast %7 : vector<56x1xi32> to vector<56x128xi32>
    %10 = arith.cmpi eq, %8, %9 : vector<56x128xi32>
    %11 = arith.extui %10 : vector<56x128xi1> to vector<56x128xi32>
    %12 = arith.sitofp %11 : vector<56x128xi32> to vector<56x128xf32>
    %13 = arith.truncf %12 : vector<56x128xf32> to vector<56x128xbf16>
    %c0_3 = arith.constant 0 : index
    %c0_4 = arith.constant 0 : index
    %14 = vector.load %arg4[%c0_3, %c0_4] : memref<128x128xbf16, #tpu.memory_space<vmem>>, vector<128x128xbf16>
    %cst = arith.constant dense<0.000000e+00> : vector<56x128xf32>
    %15 = tpu.matmul %6, %14, %cst {dimension_numbers = #tpu.dot_dimension_numbers<[1], [0], [0], [1], [0, 0, 1, 1], [], []>} : vector<56x128xbf16>, vector<128x128xbf16>, vector<56x128xf32> -> vector<56x128xf32>
    %c0_5 = arith.constant 0 : index
    %c0_6 = arith.constant 0 : index
    %16 = vector.load %arg13[%c0_5, %c0_6] : memref<56x256xf32, #tpu.memory_space<vmem>>, vector<56x128xf32>
    tpu.vector_store %arg13[%c0_5, %c0_6], %15 {strides = array<i32>} : memref<56x256xf32, #tpu.memory_space<vmem>>, vector<56x128xf32>,
    %c0_7 = arith.constant 0 : index
    %c0_8 = arith.constant 0 : index
    %17 = vector.load %arg5[%c0_7, %c0_8] : memref<128x128xbf16, #tpu.memory_space<vmem>>, vector<128x128xbf16>
    %cst_9 = arith.constant dense<0.000000e+00> : vector<56x128xf32>
    %18 = tpu.matmul %13, %17, %cst_9 {dimension_numbers = #tpu.dot_dimension_numbers<[1], [0], [0], [1], [0, 0, 1, 1], [], []>} : vector<56x128xbf16>, vector<128x128xbf16>, vector<56x128xf32> -> vector<56x128xf32>
    %c0_10 = arith.constant 0 : index
    %c128 = arith.constant 128 : index
    %19 = vector.load %arg13[%c0_10, %c128] : memref<56x256xf32, #tpu.memory_space<vmem>>, vector<56x128xf32>
    tpu.vector_store %arg13[%c0_10, %c128], %18 {strides = array<i32>} : memref<56x256xf32, #tpu.memory_space<vmem>>, vector<56x128xf32>,
    %cst_11 = arith.constant 0.000000e+00 : f32
    %20 = vector.broadcast %cst_11 : f32 to vector<8x256xf32>
    %c0_i32 = arith.constant 0 : i32
    %c8_i32 = arith.constant 8 : i32
    %21 = arith.muli %c0_i32, %c8_i32 : i32
    %22 = tpu.assume_multiple %21, 8 : i32
    %23 = arith.index_cast %22 : i32 to index
    %c0_12 = arith.constant 0 : index
    %24 = vector.load %arg13[%23, %c0_12] : memref<56x256xf32, #tpu.memory_space<vmem>>, vector<8x256xf32>
    %25 = arith.truncf %20 : vector<8x256xf32> to vector<8x256xbf16>
    %c0_13 = arith.constant 0 : index
    %c0_14 = arith.constant 0 : index
    %26 = vector.load %arg6[%c0_13, %c0_14] : memref<256x256xbf16, #tpu.memory_space<vmem>>, vector<256x256xbf16>
    %cst_15 = arith.constant dense<0.000000e+00> : vector<8x256xf32>
    %27 = tpu.matmul %25, %26, %cst_15 {dimension_numbers = #tpu.dot_dimension_numbers<[1], [0], [0], [1], [0, 0, 1, 1], [], []>} : vector<8x256xbf16>, vector<256x256xbf16>, vector<8x256xf32> -> vector<8x256xf32>
    %28 = arith.addf %24, %27 : vector<8x256xf32>
    %29 = math.tanh %28 : vector<8x256xf32>
    %c1_i32 = arith.constant 1 : i32
    %c8_i32_16 = arith.constant 8 : i32
    %30 = arith.muli %c1_i32, %c8_i32_16 : i32
    %31 = tpu.assume_multiple %30, 8 : i32
    %32 = arith.index_cast %31 : i32 to index
    %c0_17 = arith.constant 0 : index
    %33 = vector.load %arg13[%32, %c0_17] : memref<56x256xf32, #tpu.memory_space<vmem>>, vector<8x256xf32>
    %34 = arith.truncf %29 : vector<8x256xf32> to vector<8x256xbf16>
    %c0_18 = arith.constant 0 : index
    %c0_19 = arith.constant 0 : index
    %35 = vector.load %arg6[%c0_18, %c0_19] : memref<256x256xbf16, #tpu.memory_space<vmem>>, vector<256x256xbf16>
    %cst_20 = arith.constant dense<0.000000e+00> : vector<8x256xf32>
    %36 = tpu.matmul %34, %35, %cst_20 {dimension_numbers = #tpu.dot_dimension_numbers<[1], [0], [0], [1], [0, 0, 1, 1], [], []>} : vector<8x256xbf16>, vector<256x256xbf16>, vector<8x256xf32> -> vector<8x256xf32>
    %37 = arith.addf %33, %36 : vector<8x256xf32>
    %38 = math.tanh %37 : vector<8x256xf32>
    %c2_i32 = arith.constant 2 : i32
    %c8_i32_21 = arith.constant 8 : i32
    %39 = arith.muli %c2_i32, %c8_i32_21 : i32
    %40 = tpu.assume_multiple %39, 8 : i32
    %41 = arith.index_cast %40 : i32 to index
    %c0_22 = arith.constant 0 : index
    %42 = vector.load %arg13[%41, %c0_22] : memref<56x256xf32, #tpu.memory_space<vmem>>, vector<8x256xf32>
    %43 = arith.truncf %38 : vector<8x256xf32> to vector<8x256xbf16>
    %c0_23 = arith.constant 0 : index
    %c0_24 = arith.constant 0 : index
    %44 = vector.load %arg6[%c0_23, %c0_24] : memref<256x256xbf16, #tpu.memory_space<vmem>>, vector<256x256xbf16>
    %cst_25 = arith.constant dense<0.000000e+00> : vector<8x256xf32>
    %45 = tpu.matmul %43, %44, %cst_25 {dimension_numbers = #tpu.dot_dimension_numbers<[1], [0], [0], [1], [0, 0, 1, 1], [], []>} : vector<8x256xbf16>, vector<256x256xbf16>, vector<8x256xf32> -> vector<8x256xf32>
    %46 = arith.addf %42, %45 : vector<8x256xf32>
    %47 = math.tanh %46 : vector<8x256xf32>
    %c3_i32 = arith.constant 3 : i32
    %c8_i32_26 = arith.constant 8 : i32
    %48 = arith.muli %c3_i32, %c8_i32_26 : i32
    %49 = tpu.assume_multiple %48, 8 : i32
    %50 = arith.index_cast %49 : i32 to index
    %c0_27 = arith.constant 0 : index
    %51 = vector.load %arg13[%50, %c0_27] : memref<56x256xf32, #tpu.memory_space<vmem>>, vector<8x256xf32>
    %52 = arith.truncf %47 : vector<8x256xf32> to vector<8x256xbf16>
    %c0_28 = arith.constant 0 : index
    %c0_29 = arith.constant 0 : index
    %53 = vector.load %arg6[%c0_28, %c0_29] : memref<256x256xbf16, #tpu.memory_space<vmem>>, vector<256x256xbf16>
    %cst_30 = arith.constant dense<0.000000e+00> : vector<8x256xf32>
    %54 = tpu.matmul %52, %53, %cst_30 {dimension_numbers = #tpu.dot_dimension_numbers<[1], [0], [0], [1], [0, 0, 1, 1], [], []>} : vector<8x256xbf16>, vector<256x256xbf16>, vector<8x256xf32> -> vector<8x256xf32>
    %55 = arith.addf %51, %54 : vector<8x256xf32>
    %56 = math.tanh %55 : vector<8x256xf32>
    %c4_i32 = arith.constant 4 : i32
    %c8_i32_31 = arith.constant 8 : i32
    %57 = arith.muli %c4_i32, %c8_i32_31 : i32
    %58 = tpu.assume_multiple %57, 8 : i32
    %59 = arith.index_cast %58 : i32 to index
    %c0_32 = arith.constant 0 : index
    %60 = vector.load %arg13[%59, %c0_32] : memref<56x256xf32, #tpu.memory_space<vmem>>, vector<8x256xf32>
    %61 = arith.truncf %56 : vector<8x256xf32> to vector<8x256xbf16>
    %c0_33 = arith.constant 0 : index
    %c0_34 = arith.constant 0 : index
    %62 = vector.load %arg6[%c0_33, %c0_34] : memref<256x256xbf16, #tpu.memory_space<vmem>>, vector<256x256xbf16>
    %cst_35 = arith.constant dense<0.000000e+00> : vector<8x256xf32>
    %63 = tpu.matmul %61, %62, %cst_35 {dimension_numbers = #tpu.dot_dimension_numbers<[1], [0], [0], [1], [0, 0, 1, 1], [], []>} : vector<8x256xbf16>, vector<256x256xbf16>, vector<8x256xf32> -> vector<8x256xf32>
    %64 = arith.addf %60, %63 : vector<8x256xf32>
    %65 = math.tanh %64 : vector<8x256xf32>
    %c5_i32 = arith.constant 5 : i32
    %c8_i32_36 = arith.constant 8 : i32
    %66 = arith.muli %c5_i32, %c8_i32_36 : i32
    %67 = tpu.assume_multiple %66, 8 : i32
    %68 = arith.index_cast %67 : i32 to index
    %c0_37 = arith.constant 0 : index
    %69 = vector.load %arg13[%68, %c0_37] : memref<56x256xf32, #tpu.memory_space<vmem>>, vector<8x256xf32>
    %70 = arith.truncf %65 : vector<8x256xf32> to vector<8x256xbf16>
    %c0_38 = arith.constant 0 : index
    %c0_39 = arith.constant 0 : index
    %71 = vector.load %arg6[%c0_38, %c0_39] : memref<256x256xbf16, #tpu.memory_space<vmem>>, vector<256x256xbf16>
    %cst_40 = arith.constant dense<0.000000e+00> : vector<8x256xf32>
    %72 = tpu.matmul %70, %71, %cst_40 {dimension_numbers = #tpu.dot_dimension_numbers<[1], [0], [0], [1], [0, 0, 1, 1], [], []>} : vector<8x256xbf16>, vector<256x256xbf16>, vector<8x256xf32> -> vector<8x256xf32>
    %73 = arith.addf %69, %72 : vector<8x256xf32>
    %74 = math.tanh %73 : vector<8x256xf32>
    %c6_i32 = arith.constant 6 : i32
    %c8_i32_41 = arith.constant 8 : i32
    %75 = arith.muli %c6_i32, %c8_i32_41 : i32
    %76 = tpu.assume_multiple %75, 8 : i32
    %77 = arith.index_cast %76 : i32 to index
    %c0_42 = arith.constant 0 : index
    %78 = vector.load %arg13[%77, %c0_42] : memref<56x256xf32, #tpu.memory_space<vmem>>, vector<8x256xf32>
    %79 = arith.truncf %74 : vector<8x256xf32> to vector<8x256xbf16>
    %c0_43 = arith.constant 0 : index
    %c0_44 = arith.constant 0 : index
    %80 = vector.load %arg6[%c0_43, %c0_44] : memref<256x256xbf16, #tpu.memory_space<vmem>>, vector<256x256xbf16>
    %cst_45 = arith.constant dense<0.000000e+00> : vector<8x256xf32>
    %81 = tpu.matmul %79, %80, %cst_45 {dimension_numbers = #tpu.dot_dimension_numbers<[1], [0], [0], [1], [0, 0, 1, 1], [], []>} : vector<8x256xbf16>, vector<256x256xbf16>, vector<8x256xf32> -> vector<8x256xf32>
    %82 = arith.addf %78, %81 : vector<8x256xf32>
    %83 = math.tanh %82 : vector<8x256xf32>
    %c7_i32 = arith.constant 7 : i32
    %84 = arith.truncf %83 : vector<8x256xf32> to vector<8x256xbf16>
    %c0_46 = arith.constant 0 : index
    %c0_47 = arith.constant 0 : index
    %85 = vector.load %arg7[%c0_46, %c0_47] : memref<256x128xbf16, #tpu.memory_space<vmem>>, vector<256x128xbf16>
    %cst_48 = arith.constant dense<0.000000e+00> : vector<8x128xf32>
    %86 = tpu.matmul %84, %85, %cst_48 {dimension_numbers = #tpu.dot_dimension_numbers<[1], [0], [0], [1], [0, 0, 1, 1], [], []>} : vector<8x256xbf16>, vector<256x128xbf16>, vector<8x128xf32> -> vector<8x128xf32>
    %c0_49 = arith.constant 0 : index
    %c0_50 = arith.constant 0 : index
    %87 = vector.load %arg8[%c0_49, %c0_50] : memref<1x128xf32, #tpu.memory_space<vmem>>, vector<1x128xf32>
    %88 = vector.broadcast %87 : vector<1x128xf32> to vector<8x128xf32>
    %89 = arith.addf %86, %88 : vector<8x128xf32>
    %90 = math.tanh %89 : vector<8x128xf32>
    %c0_51 = arith.constant 0 : index
    %c0_52 = arith.constant 0 : index
    %91 = vector.load %arg3[%c0_51, %c0_52] : memref<56x1xi32, #tpu.memory_space<vmem>>, vector<56x1xi32>
    %92 = tpu.iota {dimensions = array<i32: 1>} : vector<56x128xi32>
    %93 = vector.broadcast %91 : vector<56x1xi32> to vector<56x128xi32>
    %94 = arith.cmpi eq, %92, %93 : vector<56x128xi32>
    %95 = arith.extui %94 : vector<56x128xi1> to vector<56x128xi32>
    %96 = arith.sitofp %95 : vector<56x128xi32> to vector<56x128xf32>
    %97 = arith.truncf %96 : vector<56x128xf32> to vector<56x128xbf16>
    %c0_53 = arith.constant 0 : index
    %c0_54 = arith.constant 0 : index
    %98 = vector.load %arg9[%c0_53, %c0_54] : memref<128x128xbf16, #tpu.memory_space<vmem>>, vector<128x128xbf16>
    %cst_55 = arith.constant dense<0.000000e+00> : vector<56x128xf32>
    %99 = tpu.matmul %97, %98, %cst_55 {dimension_numbers = #tpu.dot_dimension_numbers<[1], [0], [0], [1], [0, 0, 1, 1], [], []>} : vector<56x128xbf16>, vector<128x128xbf16>, vector<56x128xf32> -> vector<56x128xf32>
    %c0_56 = arith.constant 0 : index
    %c0_57 = arith.constant 0 : index
    %100 = vector.load %arg14[%c0_56, %c0_57] : memref<56x128xf32, #tpu.memory_space<vmem>>, vector<56x128xf32>
    tpu.vector_store %arg14[%c0_56, %c0_57], %99 {strides = array<i32>} : memref<56x128xf32, #tpu.memory_space<vmem>>, vector<56x128xf32>,
    %c0_58 = arith.constant 0 : index
    %c0_59 = arith.constant 0 : index
    %101 = vector.load %arg11[%c0_58, %c0_59] : memref<1x128xf32, #tpu.memory_space<vmem>>, vector<1x128xf32>
    %102 = vector.shape_cast %101 : vector<1x128xf32> to vector<1x128xf32>
    %103 = vector.broadcast %102 : vector<1x128xf32> to vector<8x128xf32>
    %104 = tpu.iota {dimensions = array<i32: 1>} : vector<8x128xi32>
    %105 = tpu.iota {dimensions = array<i32: 0>} : vector<7x8xi32>
    %c0_60 = arith.constant 0 : index
    %c0_61 = arith.constant 0 : index
    %106 = vector.load %arg14[%c0_60, %c0_61] : memref<56x128xf32, #tpu.memory_space<vmem>>, vector<8x128xf32>
    %c0_62 = arith.constant 0 : index
    %c0_63 = arith.constant 0 : index
    %107 = vector.load %arg15[%c0_62, %c0_63] : memref<8x128xf32, #tpu.memory_space<vmem>>, vector<8x128xf32>
    tpu.vector_store %arg15[%c0_62, %c0_63], %106 {strides = array<i32>} : memref<8x128xf32, #tpu.memory_space<vmem>>, vector<8x128xf32>,
    %108 = arith.truncf %90 : vector<8x128xf32> to vector<8x128xbf16>
    %c0_64 = arith.constant 0 : index
    %c0_65 = arith.constant 0 : index
    %109 = vector.load %arg10[%c0_64, %c0_65] : memref<128x256xbf16, #tpu.memory_space<vmem>>, vector<128x128xbf16>
    %cst_66 = arith.constant dense<0.000000e+00> : vector<8x128xf32>
    %110 = tpu.matmul %108, %109, %cst_66 {dimension_numbers = #tpu.dot_dimension_numbers<[1], [0], [0], [1], [0, 0, 1, 1], [], []>} : vector<8x128xbf16>, vector<128x128xbf16>, vector<8x128xf32> -> vector<8x128xf32>
    %cst_67 = arith.constant 0.000000e+00 : f32
    %111 = vector.broadcast %cst_67 : f32 to vector<7x8xf32>
    %c1_i32_68 = arith.constant 1 : i32
    %c0_69 = arith.constant 0 : index
    %c0_70 = arith.constant 0 : index
    %112 = vector.load %arg15[%c0_69, %c0_70] : memref<8x128xf32, #tpu.memory_space<vmem>>, vector<8x128xf32>
    %113 = arith.addf %112, %110 : vector<8x128xf32>
    %114 = math.tanh %113 : vector<8x128xf32>
    %115 = arith.truncf %114 : vector<8x128xf32> to vector<8x128xbf16>
    %c0_71 = arith.constant 0 : index
    %c0_72 = arith.constant 0 : index
    %116 = vector.load %arg10[%c0_71, %c0_72] : memref<128x256xbf16, #tpu.memory_space<vmem>>, vector<128x256xbf16>
    %cst_73 = arith.constant dense<0.000000e+00> : vector<8x256xf32>
    %117 = tpu.matmul %115, %116, %cst_73 {dimension_numbers = #tpu.dot_dimension_numbers<[1], [0], [0], [1], [0, 0, 1, 1], [], []>} : vector<8x128xbf16>, vector<128x256xbf16>, vector<8x256xf32> -> vector<8x256xf32>
    %118 = vector.extract_strided_slice %117 {offsets = [0, 128], sizes = [8, 128], strides = [1, 1]} : vector<8x256xf32> to vector<8x128xf32>
    %119 = arith.addf %118, %103 : vector<8x128xf32>
    %cst_74 = arith.constant dense<0xFF800000> : vector<8xf32>
    %120 = vector.multi_reduction <maximumf>, %119, %cst_74 [1] : vector<8x128xf32> to vector<8xf32>
    %121 = vector.shape_cast %120 : vector<8xf32> to vector<8x1xf32>
    %122 = vector.broadcast %121 : vector<8x1xf32> to vector<8x128xf32>
    %123 = arith.cmpf oeq, %119, %122 : vector<8x128xf32>
    %c128_i32 = arith.constant 128 : i32
    %124 = vector.broadcast %c128_i32 : i32 to vector<8x128xi32>
    %125 = arith.select %123, %104, %124 : vector<8x128xi1>, vector<8x128xi32>
    %cst_75 = arith.constant dense<2147483647> : vector<8xi32>
    %126 = vector.multi_reduction <minsi>, %125, %cst_75 [1] : vector<8x128xi32> to vector<8xi32>
    %127 = vector.broadcast %c1_i32_68 : i32 to vector<7x8xi32>
    %128 = arith.cmpi eq, %105, %127 : vector<7x8xi32>
    %129 = vector.shape_cast %126 : vector<8xi32> to vector<1x8xi32>
    %130 = arith.sitofp %129 : vector<1x8xi32> to vector<1x8xf32>
    %131 = vector.shape_cast %130 : vector<1x8xf32> to vector<1x8xf32>
    %132 = vector.broadcast %131 : vector<1x8xf32> to vector<7x8xf32>
    %133 = arith.select %128, %132, %111 : vector<7x8xi1>, vector<7x8xf32>
    %c8_i32_76 = arith.constant 8 : i32
    %134 = arith.muli %c1_i32_68, %c8_i32_76 : i32
    %135 = tpu.assume_multiple %134, 8 : i32
    %136 = arith.index_cast %135 : i32 to index
    %c0_77 = arith.constant 0 : index
    %137 = vector.load %arg14[%136, %c0_77] : memref<56x128xf32, #tpu.memory_space<vmem>>, vector<8x128xf32>
    %c0_78 = arith.constant 0 : index
    %c0_79 = arith.constant 0 : index
    %138 = vector.load %arg15[%c0_78, %c0_79] : memref<8x128xf32, #tpu.memory_space<vmem>>, vector<8x128xf32>
    tpu.vector_store %arg15[%c0_78, %c0_79], %137 {strides = array<i32>} : memref<8x128xf32, #tpu.memory_space<vmem>>, vector<8x128xf32>,
    %139 = arith.index_cast %c1_i32_68 : i32 to index
    %140 = memref.load %arg0[%139] : memref<7xi32, #tpu.memory_space<smem>>
    %c0_i32_80 = arith.constant 0 : i32
    %141 = arith.cmpi eq, %140, %c0_i32_80 : i32
    %142 = arith.extui %141 : i1 to i32
    %c0_i32_81 = arith.constant 0 : i32
    %143 = arith.cmpi ne, %142, %c0_i32_81 : i32
    scf.if %143 {
      %311 = vector.shape_cast %126 : vector<8xi32> to vector<8x1xi32>
      %312 = tpu.iota {dimensions = array<i32: 1>} : vector<8x128xi32>
      %313 = vector.broadcast %311 : vector<8x1xi32> to vector<8x128xi32>
      %314 = arith.cmpi eq, %312, %313 : vector<8x128xi32>
      %315 = arith.extui %314 : vector<8x128xi1> to vector<8x128xi32>
      %316 = arith.sitofp %315 : vector<8x128xi32> to vector<8x128xf32>
      %317 = arith.truncf %316 : vector<8x128xf32> to vector<8x128xbf16>
      %c0_160 = arith.constant 0 : index
      %c0_161 = arith.constant 0 : index
      %318 = vector.load %arg9[%c0_160, %c0_161] : memref<128x128xbf16, #tpu.memory_space<vmem>>, vector<128x128xbf16>
      %cst_162 = arith.constant dense<0.000000e+00> : vector<8x128xf32>
      %319 = tpu.matmul %317, %318, %cst_162 {dimension_numbers = #tpu.dot_dimension_numbers<[1], [0], [0], [1], [0, 0, 1, 1], [], []>} : vector<8x128xbf16>, vector<128x128xbf16>, vector<8x128xf32> -> vector<8x128xf32>
      %c0_163 = arith.constant 0 : index
      %c0_164 = arith.constant 0 : index
      %320 = vector.load %arg15[%c0_163, %c0_164] : memref<8x128xf32, #tpu.memory_space<vmem>>, vector<8x128xf32>
      tpu.vector_store %arg15[%c0_163, %c0_164], %319 {strides = array<i32>} : memref<8x128xf32, #tpu.memory_space<vmem>>, vector<8x128xf32>,
    } else {
    }
    %144 = vector.extract_strided_slice %117 {offsets = [0, 0], sizes = [8, 128], strides = [1, 1]} : vector<8x256xf32> to vector<8x128xf32>
    %c2_i32_82 = arith.constant 2 : i32
    %c0_83 = arith.constant 0 : index
    %c0_84 = arith.constant 0 : index
    %145 = vector.load %arg15[%c0_83, %c0_84] : memref<8x128xf32, #tpu.memory_space<vmem>>, vector<8x128xf32>
    %146 = arith.addf %145, %144 : vector<8x128xf32>
    %147 = math.tanh %146 : vector<8x128xf32>
    %148 = arith.truncf %147 : vector<8x128xf32> to vector<8x128xbf16>
    %c0_85 = arith.constant 0 : index
    %c0_86 = arith.constant 0 : index
    %149 = vector.load %arg10[%c0_85, %c0_86] : memref<128x256xbf16, #tpu.memory_space<vmem>>, vector<128x256xbf16>
    %cst_87 = arith.constant dense<0.000000e+00> : vector<8x256xf32>
    %150 = tpu.matmul %148, %149, %cst_87 {dimension_numbers = #tpu.dot_dimension_numbers<[1], [0], [0], [1], [0, 0, 1, 1], [], []>} : vector<8x128xbf16>, vector<128x256xbf16>, vector<8x256xf32> -> vector<8x256xf32>
    %151 = vector.extract_strided_slice %150 {offsets = [0, 128], sizes = [8, 128], strides = [1, 1]} : vector<8x256xf32> to vector<8x128xf32>
    %152 = arith.addf %151, %103 : vector<8x128xf32>
    %cst_88 = arith.constant dense<0xFF800000> : vector<8xf32>
    %153 = vector.multi_reduction <maximumf>, %152, %cst_88 [1] : vector<8x128xf32> to vector<8xf32>
    %154 = vector.shape_cast %153 : vector<8xf32> to vector<8x1xf32>
    %155 = vector.broadcast %154 : vector<8x1xf32> to vector<8x128xf32>
    %156 = arith.cmpf oeq, %152, %155 : vector<8x128xf32>
    %c128_i32_89 = arith.constant 128 : i32
    %157 = vector.broadcast %c128_i32_89 : i32 to vector<8x128xi32>
    %158 = arith.select %156, %104, %157 : vector<8x128xi1>, vector<8x128xi32>
    %cst_90 = arith.constant dense<2147483647> : vector<8xi32>
    %159 = vector.multi_reduction <minsi>, %158, %cst_90 [1] : vector<8x128xi32> to vector<8xi32>
    %160 = vector.broadcast %c2_i32_82 : i32 to vector<7x8xi32>
    %161 = arith.cmpi eq, %105, %160 : vector<7x8xi32>
    %162 = vector.shape_cast %159 : vector<8xi32> to vector<1x8xi32>
    %163 = arith.sitofp %162 : vector<1x8xi32> to vector<1x8xf32>
    %164 = vector.shape_cast %163 : vector<1x8xf32> to vector<1x8xf32>
    %165 = vector.broadcast %164 : vector<1x8xf32> to vector<7x8xf32>
    %166 = arith.select %161, %165, %133 : vector<7x8xi1>, vector<7x8xf32>
    %c8_i32_91 = arith.constant 8 : i32
    %167 = arith.muli %c2_i32_82, %c8_i32_91 : i32
    %168 = tpu.assume_multiple %167, 8 : i32
    %169 = arith.index_cast %168 : i32 to index
    %c0_92 = arith.constant 0 : index
    %170 = vector.load %arg14[%169, %c0_92] : memref<56x128xf32, #tpu.memory_space<vmem>>, vector<8x128xf32>
    %c0_93 = arith.constant 0 : index
    %c0_94 = arith.constant 0 : index
    %171 = vector.load %arg15[%c0_93, %c0_94] : memref<8x128xf32, #tpu.memory_space<vmem>>, vector<8x128xf32>
    tpu.vector_store %arg15[%c0_93, %c0_94], %170 {strides = array<i32>} : memref<8x128xf32, #tpu.memory_space<vmem>>, vector<8x128xf32>,
    %172 = arith.index_cast %c2_i32_82 : i32 to index
    %173 = memref.load %arg0[%172] : memref<7xi32, #tpu.memory_space<smem>>
    %c0_i32_95 = arith.constant 0 : i32
    %174 = arith.cmpi eq, %173, %c0_i32_95 : i32
    %175 = arith.extui %174 : i1 to i32
    %c0_i32_96 = arith.constant 0 : i32
    %176 = arith.cmpi ne, %175, %c0_i32_96 : i32
    scf.if %176 {
      %311 = vector.shape_cast %159 : vector<8xi32> to vector<8x1xi32>
      %312 = tpu.iota {dimensions = array<i32: 1>} : vector<8x128xi32>
      %313 = vector.broadcast %311 : vector<8x1xi32> to vector<8x128xi32>
      %314 = arith.cmpi eq, %312, %313 : vector<8x128xi32>
      %315 = arith.extui %314 : vector<8x128xi1> to vector<8x128xi32>
      %316 = arith.sitofp %315 : vector<8x128xi32> to vector<8x128xf32>
      %317 = arith.truncf %316 : vector<8x128xf32> to vector<8x128xbf16>
      %c0_160 = arith.constant 0 : index
      %c0_161 = arith.constant 0 : index
      %318 = vector.load %arg9[%c0_160, %c0_161] : memref<128x128xbf16, #tpu.memory_space<vmem>>, vector<128x128xbf16>
      %cst_162 = arith.constant dense<0.000000e+00> : vector<8x128xf32>
      %319 = tpu.matmul %317, %318, %cst_162 {dimension_numbers = #tpu.dot_dimension_numbers<[1], [0], [0], [1], [0, 0, 1, 1], [], []>} : vector<8x128xbf16>, vector<128x128xbf16>, vector<8x128xf32> -> vector<8x128xf32>
      %c0_163 = arith.constant 0 : index
      %c0_164 = arith.constant 0 : index
      %320 = vector.load %arg15[%c0_163, %c0_164] : memref<8x128xf32, #tpu.memory_space<vmem>>, vector<8x128xf32>
      tpu.vector_store %arg15[%c0_163, %c0_164], %319 {strides = array<i32>} : memref<8x128xf32, #tpu.memory_space<vmem>>, vector<8x128xf32>,
    } else {
    }
    %177 = vector.extract_strided_slice %150 {offsets = [0, 0], sizes = [8, 128], strides = [1, 1]} : vector<8x256xf32> to vector<8x128xf32>
    %c3_i32_97 = arith.constant 3 : i32
    %c0_98 = arith.constant 0 : index
    %c0_99 = arith.constant 0 : index
    %178 = vector.load %arg15[%c0_98, %c0_99] : memref<8x128xf32, #tpu.memory_space<vmem>>, vector<8x128xf32>
    %179 = arith.addf %178, %177 : vector<8x128xf32>
    %180 = math.tanh %179 : vector<8x128xf32>
    %181 = arith.truncf %180 : vector<8x128xf32> to vector<8x128xbf16>
    %c0_100 = arith.constant 0 : index
    %c0_101 = arith.constant 0 : index
    %182 = vector.load %arg10[%c0_100, %c0_101] : memref<128x256xbf16, #tpu.memory_space<vmem>>, vector<128x256xbf16>
    %cst_102 = arith.constant dense<0.000000e+00> : vector<8x256xf32>
    %183 = tpu.matmul %181, %182, %cst_102 {dimension_numbers = #tpu.dot_dimension_numbers<[1], [0], [0], [1], [0, 0, 1, 1], [], []>} : vector<8x128xbf16>, vector<128x256xbf16>, vector<8x256xf32> -> vector<8x256xf32>
    %184 = vector.extract_strided_slice %183 {offsets = [0, 128], sizes = [8, 128], strides = [1, 1]} : vector<8x256xf32> to vector<8x128xf32>
    %185 = arith.addf %184, %103 : vector<8x128xf32>
    %cst_103 = arith.constant dense<0xFF800000> : vector<8xf32>
    %186 = vector.multi_reduction <maximumf>, %185, %cst_103 [1] : vector<8x128xf32> to vector<8xf32>
    %187 = vector.shape_cast %186 : vector<8xf32> to vector<8x1xf32>
    %188 = vector.broadcast %187 : vector<8x1xf32> to vector<8x128xf32>
    %189 = arith.cmpf oeq, %185, %188 : vector<8x128xf32>
    %c128_i32_104 = arith.constant 128 : i32
    %190 = vector.broadcast %c128_i32_104 : i32 to vector<8x128xi32>
    %191 = arith.select %189, %104, %190 : vector<8x128xi1>, vector<8x128xi32>
    %cst_105 = arith.constant dense<2147483647> : vector<8xi32>
    %192 = vector.multi_reduction <minsi>, %191, %cst_105 [1] : vector<8x128xi32> to vector<8xi32>
    %193 = vector.broadcast %c3_i32_97 : i32 to vector<7x8xi32>
    %194 = arith.cmpi eq, %105, %193 : vector<7x8xi32>
    %195 = vector.shape_cast %192 : vector<8xi32> to vector<1x8xi32>
    %196 = arith.sitofp %195 : vector<1x8xi32> to vector<1x8xf32>
    %197 = vector.shape_cast %196 : vector<1x8xf32> to vector<1x8xf32>
    %198 = vector.broadcast %197 : vector<1x8xf32> to vector<7x8xf32>
    %199 = arith.select %194, %198, %166 : vector<7x8xi1>, vector<7x8xf32>
    %c8_i32_106 = arith.constant 8 : i32
    %200 = arith.muli %c3_i32_97, %c8_i32_106 : i32
    %201 = tpu.assume_multiple %200, 8 : i32
    %202 = arith.index_cast %201 : i32 to index
    %c0_107 = arith.constant 0 : index
    %203 = vector.load %arg14[%202, %c0_107] : memref<56x128xf32, #tpu.memory_space<vmem>>, vector<8x128xf32>
    %c0_108 = arith.constant 0 : index
    %c0_109 = arith.constant 0 : index
    %204 = vector.load %arg15[%c0_108, %c0_109] : memref<8x128xf32, #tpu.memory_space<vmem>>, vector<8x128xf32>
    tpu.vector_store %arg15[%c0_108, %c0_109], %203 {strides = array<i32>} : memref<8x128xf32, #tpu.memory_space<vmem>>, vector<8x128xf32>,
    %205 = arith.index_cast %c3_i32_97 : i32 to index
    %206 = memref.load %arg0[%205] : memref<7xi32, #tpu.memory_space<smem>>
    %c0_i32_110 = arith.constant 0 : i32
    %207 = arith.cmpi eq, %206, %c0_i32_110 : i32
    %208 = arith.extui %207 : i1 to i32
    %c0_i32_111 = arith.constant 0 : i32
    %209 = arith.cmpi ne, %208, %c0_i32_111 : i32
    scf.if %209 {
      %311 = vector.shape_cast %192 : vector<8xi32> to vector<8x1xi32>
      %312 = tpu.iota {dimensions = array<i32: 1>} : vector<8x128xi32>
      %313 = vector.broadcast %311 : vector<8x1xi32> to vector<8x128xi32>
      %314 = arith.cmpi eq, %312, %313 : vector<8x128xi32>
      %315 = arith.extui %314 : vector<8x128xi1> to vector<8x128xi32>
      %316 = arith.sitofp %315 : vector<8x128xi32> to vector<8x128xf32>
      %317 = arith.truncf %316 : vector<8x128xf32> to vector<8x128xbf16>
      %c0_160 = arith.constant 0 : index
      %c0_161 = arith.constant 0 : index
      %318 = vector.load %arg9[%c0_160, %c0_161] : memref<128x128xbf16, #tpu.memory_space<vmem>>, vector<128x128xbf16>
      %cst_162 = arith.constant dense<0.000000e+00> : vector<8x128xf32>
      %319 = tpu.matmul %317, %318, %cst_162 {dimension_numbers = #tpu.dot_dimension_numbers<[1], [0], [0], [1], [0, 0, 1, 1], [], []>} : vector<8x128xbf16>, vector<128x128xbf16>, vector<8x128xf32> -> vector<8x128xf32>
      %c0_163 = arith.constant 0 : index
      %c0_164 = arith.constant 0 : index
      %320 = vector.load %arg15[%c0_163, %c0_164] : memref<8x128xf32, #tpu.memory_space<vmem>>, vector<8x128xf32>
      tpu.vector_store %arg15[%c0_163, %c0_164], %319 {strides = array<i32>} : memref<8x128xf32, #tpu.memory_space<vmem>>, vector<8x128xf32>,
    } else {
    }
    %210 = vector.extract_strided_slice %183 {offsets = [0, 0], sizes = [8, 128], strides = [1, 1]} : vector<8x256xf32> to vector<8x128xf32>
    %c4_i32_112 = arith.constant 4 : i32
    %c0_113 = arith.constant 0 : index
    %c0_114 = arith.constant 0 : index
    %211 = vector.load %arg15[%c0_113, %c0_114] : memref<8x128xf32, #tpu.memory_space<vmem>>, vector<8x128xf32>
    %212 = arith.addf %211, %210 : vector<8x128xf32>
    %213 = math.tanh %212 : vector<8x128xf32>
    %214 = arith.truncf %213 : vector<8x128xf32> to vector<8x128xbf16>
    %c0_115 = arith.constant 0 : index
    %c0_116 = arith.constant 0 : index
    %215 = vector.load %arg10[%c0_115, %c0_116] : memref<128x256xbf16, #tpu.memory_space<vmem>>, vector<128x256xbf16>
    %cst_117 = arith.constant dense<0.000000e+00> : vector<8x256xf32>
    %216 = tpu.matmul %214, %215, %cst_117 {dimension_numbers = #tpu.dot_dimension_numbers<[1], [0], [0], [1], [0, 0, 1, 1], [], []>} : vector<8x128xbf16>, vector<128x256xbf16>, vector<8x256xf32> -> vector<8x256xf32>
    %217 = vector.extract_strided_slice %216 {offsets = [0, 128], sizes = [8, 128], strides = [1, 1]} : vector<8x256xf32> to vector<8x128xf32>
    %218 = arith.addf %217, %103 : vector<8x128xf32>
    %cst_118 = arith.constant dense<0xFF800000> : vector<8xf32>
    %219 = vector.multi_reduction <maximumf>, %218, %cst_118 [1] : vector<8x128xf32> to vector<8xf32>
    %220 = vector.shape_cast %219 : vector<8xf32> to vector<8x1xf32>
    %221 = vector.broadcast %220 : vector<8x1xf32> to vector<8x128xf32>
    %222 = arith.cmpf oeq, %218, %221 : vector<8x128xf32>
    %c128_i32_119 = arith.constant 128 : i32
    %223 = vector.broadcast %c128_i32_119 : i32 to vector<8x128xi32>
    %224 = arith.select %222, %104, %223 : vector<8x128xi1>, vector<8x128xi32>
    %cst_120 = arith.constant dense<2147483647> : vector<8xi32>
    %225 = vector.multi_reduction <minsi>, %224, %cst_120 [1] : vector<8x128xi32> to vector<8xi32>
    %226 = vector.broadcast %c4_i32_112 : i32 to vector<7x8xi32>
    %227 = arith.cmpi eq, %105, %226 : vector<7x8xi32>
    %228 = vector.shape_cast %225 : vector<8xi32> to vector<1x8xi32>
    %229 = arith.sitofp %228 : vector<1x8xi32> to vector<1x8xf32>
    %230 = vector.shape_cast %229 : vector<1x8xf32> to vector<1x8xf32>
    %231 = vector.broadcast %230 : vector<1x8xf32> to vector<7x8xf32>
    %232 = arith.select %227, %231, %199 : vector<7x8xi1>, vector<7x8xf32>
    %c8_i32_121 = arith.constant 8 : i32
    %233 = arith.muli %c4_i32_112, %c8_i32_121 : i32
    %234 = tpu.assume_multiple %233, 8 : i32
    %235 = arith.index_cast %234 : i32 to index
    %c0_122 = arith.constant 0 : index
    %236 = vector.load %arg14[%235, %c0_122] : memref<56x128xf32, #tpu.memory_space<vmem>>, vector<8x128xf32>
    %c0_123 = arith.constant 0 : index
    %c0_124 = arith.constant 0 : index
    %237 = vector.load %arg15[%c0_123, %c0_124] : memref<8x128xf32, #tpu.memory_space<vmem>>, vector<8x128xf32>
    tpu.vector_store %arg15[%c0_123, %c0_124], %236 {strides = array<i32>} : memref<8x128xf32, #tpu.memory_space<vmem>>, vector<8x128xf32>,
    %238 = arith.index_cast %c4_i32_112 : i32 to index
    %239 = memref.load %arg0[%238] : memref<7xi32, #tpu.memory_space<smem>>
    %c0_i32_125 = arith.constant 0 : i32
    %240 = arith.cmpi eq, %239, %c0_i32_125 : i32
    %241 = arith.extui %240 : i1 to i32
    %c0_i32_126 = arith.constant 0 : i32
    %242 = arith.cmpi ne, %241, %c0_i32_126 : i32
    scf.if %242 {
      %311 = vector.shape_cast %225 : vector<8xi32> to vector<8x1xi32>
      %312 = tpu.iota {dimensions = array<i32: 1>} : vector<8x128xi32>
      %313 = vector.broadcast %311 : vector<8x1xi32> to vector<8x128xi32>
      %314 = arith.cmpi eq, %312, %313 : vector<8x128xi32>
      %315 = arith.extui %314 : vector<8x128xi1> to vector<8x128xi32>
      %316 = arith.sitofp %315 : vector<8x128xi32> to vector<8x128xf32>
      %317 = arith.truncf %316 : vector<8x128xf32> to vector<8x128xbf16>
      %c0_160 = arith.constant 0 : index
      %c0_161 = arith.constant 0 : index
      %318 = vector.load %arg9[%c0_160, %c0_161] : memref<128x128xbf16, #tpu.memory_space<vmem>>, vector<128x128xbf16>
      %cst_162 = arith.constant dense<0.000000e+00> : vector<8x128xf32>
      %319 = tpu.matmul %317, %318, %cst_162 {dimension_numbers = #tpu.dot_dimension_numbers<[1], [0], [0], [1], [0, 0, 1, 1], [], []>} : vector<8x128xbf16>, vector<128x128xbf16>, vector<8x128xf32> -> vector<8x128xf32>
      %c0_163 = arith.constant 0 : index
      %c0_164 = arith.constant 0 : index
      %320 = vector.load %arg15[%c0_163, %c0_164] : memref<8x128xf32, #tpu.memory_space<vmem>>, vector<8x128xf32>
      tpu.vector_store %arg15[%c0_163, %c0_164], %319 {strides = array<i32>} : memref<8x128xf32, #tpu.memory_space<vmem>>, vector<8x128xf32>,
    } else {
    }
    %243 = vector.extract_strided_slice %216 {offsets = [0, 0], sizes = [8, 128], strides = [1, 1]} : vector<8x256xf32> to vector<8x128xf32>
    %c5_i32_127 = arith.constant 5 : i32
    %c0_128 = arith.constant 0 : index
    %c0_129 = arith.constant 0 : index
    %244 = vector.load %arg15[%c0_128, %c0_129] : memref<8x128xf32, #tpu.memory_space<vmem>>, vector<8x128xf32>
    %245 = arith.addf %244, %243 : vector<8x128xf32>
    %246 = math.tanh %245 : vector<8x128xf32>
    %247 = arith.truncf %246 : vector<8x128xf32> to vector<8x128xbf16>
    %c0_130 = arith.constant 0 : index
    %c0_131 = arith.constant 0 : index
    %248 = vector.load %arg10[%c0_130, %c0_131] : memref<128x256xbf16, #tpu.memory_space<vmem>>, vector<128x256xbf16>
    %cst_132 = arith.constant dense<0.000000e+00> : vector<8x256xf32>
    %249 = tpu.matmul %247, %248, %cst_132 {dimension_numbers = #tpu.dot_dimension_numbers<[1], [0], [0], [1], [0, 0, 1, 1], [], []>} : vector<8x128xbf16>, vector<128x256xbf16>, vector<8x256xf32> -> vector<8x256xf32>
    %250 = vector.extract_strided_slice %249 {offsets = [0, 128], sizes = [8, 128], strides = [1, 1]} : vector<8x256xf32> to vector<8x128xf32>
    %251 = arith.addf %250, %103 : vector<8x128xf32>
    %cst_133 = arith.constant dense<0xFF800000> : vector<8xf32>
    %252 = vector.multi_reduction <maximumf>, %251, %cst_133 [1] : vector<8x128xf32> to vector<8xf32>
    %253 = vector.shape_cast %252 : vector<8xf32> to vector<8x1xf32>
    %254 = vector.broadcast %253 : vector<8x1xf32> to vector<8x128xf32>
    %255 = arith.cmpf oeq, %251, %254 : vector<8x128xf32>
    %c128_i32_134 = arith.constant 128 : i32
    %256 = vector.broadcast %c128_i32_134 : i32 to vector<8x128xi32>
    %257 = arith.select %255, %104, %256 : vector<8x128xi1>, vector<8x128xi32>
    %cst_135 = arith.constant dense<2147483647> : vector<8xi32>
    %258 = vector.multi_reduction <minsi>, %257, %cst_135 [1] : vector<8x128xi32> to vector<8xi32>
    %259 = vector.broadcast %c5_i32_127 : i32 to vector<7x8xi32>
    %260 = arith.cmpi eq, %105, %259 : vector<7x8xi32>
    %261 = vector.shape_cast %258 : vector<8xi32> to vector<1x8xi32>
    %262 = arith.sitofp %261 : vector<1x8xi32> to vector<1x8xf32>
    %263 = vector.shape_cast %262 : vector<1x8xf32> to vector<1x8xf32>
    %264 = vector.broadcast %263 : vector<1x8xf32> to vector<7x8xf32>
    %265 = arith.select %260, %264, %232 : vector<7x8xi1>, vector<7x8xf32>
    %c8_i32_136 = arith.constant 8 : i32
    %266 = arith.muli %c5_i32_127, %c8_i32_136 : i32
    %267 = tpu.assume_multiple %266, 8 : i32
    %268 = arith.index_cast %267 : i32 to index
    %c0_137 = arith.constant 0 : index
    %269 = vector.load %arg14[%268, %c0_137] : memref<56x128xf32, #tpu.memory_space<vmem>>, vector<8x128xf32>
    %c0_138 = arith.constant 0 : index
    %c0_139 = arith.constant 0 : index
    %270 = vector.load %arg15[%c0_138, %c0_139] : memref<8x128xf32, #tpu.memory_space<vmem>>, vector<8x128xf32>
    tpu.vector_store %arg15[%c0_138, %c0_139], %269 {strides = array<i32>} : memref<8x128xf32, #tpu.memory_space<vmem>>, vector<8x128xf32>,
    %271 = arith.index_cast %c5_i32_127 : i32 to index
    %272 = memref.load %arg0[%271] : memref<7xi32, #tpu.memory_space<smem>>
    %c0_i32_140 = arith.constant 0 : i32
    %273 = arith.cmpi eq, %272, %c0_i32_140 : i32
    %274 = arith.extui %273 : i1 to i32
    %c0_i32_141 = arith.constant 0 : i32
    %275 = arith.cmpi ne, %274, %c0_i32_141 : i32
    scf.if %275 {
      %311 = vector.shape_cast %258 : vector<8xi32> to vector<8x1xi32>
      %312 = tpu.iota {dimensions = array<i32: 1>} : vector<8x128xi32>
      %313 = vector.broadcast %311 : vector<8x1xi32> to vector<8x128xi32>
      %314 = arith.cmpi eq, %312, %313 : vector<8x128xi32>
      %315 = arith.extui %314 : vector<8x128xi1> to vector<8x128xi32>
      %316 = arith.sitofp %315 : vector<8x128xi32> to vector<8x128xf32>
      %317 = arith.truncf %316 : vector<8x128xf32> to vector<8x128xbf16>
      %c0_160 = arith.constant 0 : index
      %c0_161 = arith.constant 0 : index
      %318 = vector.load %arg9[%c0_160, %c0_161] : memref<128x128xbf16, #tpu.memory_space<vmem>>, vector<128x128xbf16>
      %cst_162 = arith.constant dense<0.000000e+00> : vector<8x128xf32>
      %319 = tpu.matmul %317, %318, %cst_162 {dimension_numbers = #tpu.dot_dimension_numbers<[1], [0], [0], [1], [0, 0, 1, 1], [], []>} : vector<8x128xbf16>, vector<128x128xbf16>, vector<8x128xf32> -> vector<8x128xf32>
      %c0_163 = arith.constant 0 : index
      %c0_164 = arith.constant 0 : index
      %320 = vector.load %arg15[%c0_163, %c0_164] : memref<8x128xf32, #tpu.memory_space<vmem>>, vector<8x128xf32>
      tpu.vector_store %arg15[%c0_163, %c0_164], %319 {strides = array<i32>} : memref<8x128xf32, #tpu.memory_space<vmem>>, vector<8x128xf32>,
    } else {
    }
    %276 = vector.extract_strided_slice %249 {offsets = [0, 0], sizes = [8, 128], strides = [1, 1]} : vector<8x256xf32> to vector<8x128xf32>
    %c6_i32_142 = arith.constant 6 : i32
    %c0_143 = arith.constant 0 : index
    %c0_144 = arith.constant 0 : index
    %277 = vector.load %arg15[%c0_143, %c0_144] : memref<8x128xf32, #tpu.memory_space<vmem>>, vector<8x128xf32>
    %278 = arith.addf %277, %276 : vector<8x128xf32>
    %279 = math.tanh %278 : vector<8x128xf32>
    %280 = arith.truncf %279 : vector<8x128xf32> to vector<8x128xbf16>
    %c0_145 = arith.constant 0 : index
    %c0_146 = arith.constant 0 : index
    %281 = vector.load %arg10[%c0_145, %c0_146] : memref<128x256xbf16, #tpu.memory_space<vmem>>, vector<128x256xbf16>
    %cst_147 = arith.constant dense<0.000000e+00> : vector<8x256xf32>
    %282 = tpu.matmul %280, %281, %cst_147 {dimension_numbers = #tpu.dot_dimension_numbers<[1], [0], [0], [1], [0, 0, 1, 1], [], []>} : vector<8x128xbf16>, vector<128x256xbf16>, vector<8x256xf32> -> vector<8x256xf32>
    %283 = vector.extract_strided_slice %282 {offsets = [0, 128], sizes = [8, 128], strides = [1, 1]} : vector<8x256xf32> to vector<8x128xf32>
    %284 = arith.addf %283, %103 : vector<8x128xf32>
    %cst_148 = arith.constant dense<0xFF800000> : vector<8xf32>
    %285 = vector.multi_reduction <maximumf>, %284, %cst_148 [1] : vector<8x128xf32> to vector<8xf32>
    %286 = vector.shape_cast %285 : vector<8xf32> to vector<8x1xf32>
    %287 = vector.broadcast %286 : vector<8x1xf32> to vector<8x128xf32>
    %288 = arith.cmpf oeq, %284, %287 : vector<8x128xf32>
    %c128_i32_149 = arith.constant 128 : i32
    %289 = vector.broadcast %c128_i32_149 : i32 to vector<8x128xi32>
    %290 = arith.select %288, %104, %289 : vector<8x128xi1>, vector<8x128xi32>
    %cst_150 = arith.constant dense<2147483647> : vector<8xi32>
    %291 = vector.multi_reduction <minsi>, %290, %cst_150 [1] : vector<8x128xi32> to vector<8xi32>
    %292 = vector.broadcast %c6_i32_142 : i32 to vector<7x8xi32>
    %293 = arith.cmpi eq, %105, %292 : vector<7x8xi32>
    %294 = vector.shape_cast %291 : vector<8xi32> to vector<1x8xi32>
    %295 = arith.sitofp %294 : vector<1x8xi32> to vector<1x8xf32>
    %296 = vector.shape_cast %295 : vector<1x8xf32> to vector<1x8xf32>
    %297 = vector.broadcast %296 : vector<1x8xf32> to vector<7x8xf32>
    %298 = arith.select %293, %297, %265 : vector<7x8xi1>, vector<7x8xf32>
    %c8_i32_151 = arith.constant 8 : i32
    %299 = arith.muli %c6_i32_142, %c8_i32_151 : i32
    %300 = tpu.assume_multiple %299, 8 : i32
    %301 = arith.index_cast %300 : i32 to index
    %c0_152 = arith.constant 0 : index
    %302 = vector.load %arg14[%301, %c0_152] : memref<56x128xf32, #tpu.memory_space<vmem>>, vector<8x128xf32>
    %c0_153 = arith.constant 0 : index
    %c0_154 = arith.constant 0 : index
    %303 = vector.load %arg15[%c0_153, %c0_154] : memref<8x128xf32, #tpu.memory_space<vmem>>, vector<8x128xf32>
    tpu.vector_store %arg15[%c0_153, %c0_154], %302 {strides = array<i32>} : memref<8x128xf32, #tpu.memory_space<vmem>>, vector<8x128xf32>,
    %304 = arith.index_cast %c6_i32_142 : i32 to index
    %305 = memref.load %arg0[%304] : memref<7xi32, #tpu.memory_space<smem>>
    %c0_i32_155 = arith.constant 0 : i32
    %306 = arith.cmpi eq, %305, %c0_i32_155 : i32
    %307 = arith.extui %306 : i1 to i32
    %c0_i32_156 = arith.constant 0 : i32
    %308 = arith.cmpi ne, %307, %c0_i32_156 : i32
    scf.if %308 {
      %311 = vector.shape_cast %291 : vector<8xi32> to vector<8x1xi32>
      %312 = tpu.iota {dimensions = array<i32: 1>} : vector<8x128xi32>
      %313 = vector.broadcast %311 : vector<8x1xi32> to vector<8x128xi32>
      %314 = arith.cmpi eq, %312, %313 : vector<8x128xi32>
      %315 = arith.extui %314 : vector<8x128xi1> to vector<8x128xi32>
      %316 = arith.sitofp %315 : vector<8x128xi32> to vector<8x128xf32>
      %317 = arith.truncf %316 : vector<8x128xf32> to vector<8x128xbf16>
      %c0_160 = arith.constant 0 : index
      %c0_161 = arith.constant 0 : index
      %318 = vector.load %arg9[%c0_160, %c0_161] : memref<128x128xbf16, #tpu.memory_space<vmem>>, vector<128x128xbf16>
      %cst_162 = arith.constant dense<0.000000e+00> : vector<8x128xf32>
      %319 = tpu.matmul %317, %318, %cst_162 {dimension_numbers = #tpu.dot_dimension_numbers<[1], [0], [0], [1], [0, 0, 1, 1], [], []>} : vector<8x128xbf16>, vector<128x128xbf16>, vector<8x128xf32> -> vector<8x128xf32>
      %c0_163 = arith.constant 0 : index
      %c0_164 = arith.constant 0 : index
      %320 = vector.load %arg15[%c0_163, %c0_164] : memref<8x128xf32, #tpu.memory_space<vmem>>, vector<8x128xf32>
      tpu.vector_store %arg15[%c0_163, %c0_164], %319 {strides = array<i32>} : memref<8x128xf32, #tpu.memory_space<vmem>>, vector<8x128xf32>,
    } else {
    }
    %309 = vector.extract_strided_slice %282 {offsets = [0, 0], sizes = [8, 128], strides = [1, 1]} : vector<8x256xf32> to vector<8x128xf32>
    %c6_i32_157 = arith.constant 6 : i32
    %c0_158 = arith.constant 0 : index
    %c0_159 = arith.constant 0 : index
    %310 = vector.load %arg12[%c0_158, %c0_159] : memref<7x8xf32, #tpu.memory_space<vmem>>, vector<7x8xf32>
    tpu.vector_store %arg12[%c0_158, %c0_159], %298 {strides = array<i32>} : memref<7x8xf32, #tpu.memory_space<vmem>>, vector<7x8xf32>,
    return
  }
}

</mosaic_0001>

<bundles_post_ra>
// kernel: seq2seq_forward.1
= control target key start
LH: loop header
LB: loop body
LE: loop exit
PB: predicated region body
PF: predicated region fallthrough
CT: control target
= control target key end

     0   :  { %17 = vsyncpa [#allocation7], 0  ;;  %s5022_s0 = inlined_call_operand.vmem [shape: s32[7], index: 0, kind: input, shape index: {}]   ;;  %s5023_s1 = inlined_call_operand.vmem [shape: s32[56,1], index: 1, kind: input, shape index: {}]   ;;  %s5024_s2 = inlined_call_operand.vmem [shape: s32[56,1], index: 2, kind: input, shape index: {}]   ;;  %s5025_s3 = inlined_call_operand.vmem [shape: s32[56,1], index: 3, kind: input, shape index: {}]   ;;  %s5026_s4 = inlined_call_operand.vmem [shape: bf16[128,128], index: 4, kind: input, shape index: {}]   ;;  %s5027_s5 = inlined_call_operand.hbm [shape: bf16[128,128], index: 5, kind: input, shape index: {}]   ;;  %s5028_s6 = inlined_call_operand.hbm [shape: bf16[256,256], index: 6, kind: input, shape index: {}]   ;;  %s5029_s7 = inlined_call_operand.vmem [shape: bf16[256,128], index: 7, kind: input, shape index: {}]   ;;  %s5030_s8 = inlined_call_operand.vmem [shape: f32[1,128], index: 8, kind: input, shape index: {}]   ;;  %s5031_s9 = inlined_call_operand.vmem [shape: bf16[128,128], index: 9, kind: input, shape index: {}]   ;;  %s5032_s10 = inlined_call_operand.hbm [shape: bf16[128,256], index: 10, kind: input, shape index: {}]   ;;  %s5033_s11 = inlined_call_operand.vmem [shape: f32[1,128], index: 11, kind: input, shape index: {}]   ;;  %s5034_s12 = inlined_call_operand.vmem [shape: f32[7,8], index: 12, kind: output, shape index: {}]  }
   0x1   :  { %18 = vsyncpa [#allocation6], 0 }
   0x2   :  { %19 = vsyncpa [#allocation10], 0  ;;  %s54_s23 = sshll.u32 %s5028_s6, 4  ;;  %s4197_s24 = smov [#allocation9]   ;;  %s55_s23 = int_to_ptr.hbm [resolvable:$true] %s54_s23 }
   0x3   :  { %s56_s25 = sshll.u32 %s4197_s24, 4  ;;  %s25_s28 = sshll.u32 %s5022_s0, 4  ;;  %s57_s25 = int_to_ptr.vmem [resolvable:$true] %s56_s25  ;;  %s26_s28 = int_to_ptr.vmem [resolvable:$true] %s25_s28 }
   0x4   :  { %s4198_s29 = smov 128   ;;  %s4199_s30 = smov 8  }
   0x5   :  { %62 = dma.hbm_to_vmem [thread:$0]  %s55_s23, 4096, %s57_s25, [#allocation10], %s4198_s29, %s4198_s29, %s4199_s30  }
   0x6   :  { %s4200_s13 = smov [#allocation5]   ;;  %s41_s16 = sshll.u32 %s5027_s5, 4  ;;  %s42_s16 = int_to_ptr.hbm [resolvable:$true] %s41_s16 }
   0x7   :  { %28 = dma.vmem_to_smem %s26_s28, 16, %s4200_s13, [#allocation7]  }
   0x8   :  { %s4201_s6 = smov [#allocation8]   ;;  %s73_s20 = sshll.u32 %s5032_s10, 4  ;;  %s74_s20 = int_to_ptr.hbm [resolvable:$true] %s73_s20 }
   0x9   :  { %s43_s17 = sshll.u32 %s4201_s6, 4  ;;  %s4202_s21 = smov 64   ;;  %s44_s17 = int_to_ptr.vmem [resolvable:$true] %s43_s17 }
   0xa   :  { %s4203_s0 = smov 4   ;;  %s4204_s22 = smov [#allocation11]  }
   0xb   :  { %49 = dma.hbm_to_vmem [thread:$0]  %s42_s16, 1024, %s44_s17, [#allocation6], %s4202_s21, %s4202_s21, %s4203_s0  }
   0xc   :  { %s75_s23 = sshll.u32 %s4204_s22, 4  ;;  %s76_s23 = int_to_ptr.vmem [resolvable:$true] %s75_s23 }
   0xd   :  { %81 = dma.hbm_to_vmem [thread:$0]  %s74_s20, 2048, %s76_s23, [#allocation10], %s4198_s29, %s4198_s29, %s4199_s30  }
   0xe   :  { %4191 = dma.done.wait [#allocation7], 16  }
   0xf   :  { %4192 = vsyncadd [#allocation7], 4294967280 }
  0x10   :  { %4193 = dma.done.wait [#allocation6], 1024  }
  0x11   :  { %4194 = vsyncadd [#allocation6], 4294966272 }
  0x12   :  { %4195 = dma.done.wait [#allocation10], 6144  }
  0x13   :  { %4196 = vsyncadd [#allocation10], 4294961152 }
  0x14   :  { %100 = sfence }
  0x15   :  { %v157_v0 = vld [vmem:[%s5024_s2] sm:$0xff]  ;;  %v4205_v2 = vmov 0   ;;  %v3041_v3 = vld [vmem:[#allocation9 + $0x70] sm:$0xf]  ;;  %v3859_v4 = vld [vmem:[#allocation9 + $0x74] sm:$0xf0] }
  0x16   :  { %v102_v1 = vld [vmem:[%s5023_s1] sm:$0xff]  ;;  %4061 = vset.pattern.permute.xlu1 %v4205_v2  ;;  %4060 = vset.pattern.permute.xlu0 %v4205_v2  ;;  %v4298_v6 = vor.u32 %v3859_v4, %v3041_v3  ;;  %v3857_v7 = vld [vmem:[#allocation9 + $0x64] sm:$0xf0]  ;;  %v104_v8 = vld [vmem:[%s5023_s1 + $0x10] sm:$0xff]  ;;  %s3318_s30 = sld [smem:[#allocation5 + $0x1]] }
  0x17   :  { %165 = vperm.xlu1 %4061, %v157_v0   ;;  %112 = vperm.xlu0 %4060, %v102_v1   ;;  %v3033_v5 = vld [vmem:[#allocation9 + $0x60] sm:$0xf]  ;;  %v3025_v10 = vld [vmem:[#allocation9 + $0x50] sm:$0xf]  ;;  %v3855_v11 = vld [vmem:[#allocation9 + $0x54] sm:$0xf0] }
  0x18   :  { %4062 = vset.pattern.permute.xlu2 %v4205_v2  ;;  %605 = vmatpush.bf16.msra.mxu3 %v4298_v6  ;;  %v4305_v9 = vor.u32 %v3857_v7, %v3033_v5  ;;  %v158_v12 = vld [vmem:[%s5024_s2 + $0x8] sm:$0xff]  ;;  %v4314_v14 = vor.u32 %v3855_v11, %v3025_v10  ;;  %v105_v15 = vld [vmem:[%s5023_s1 + $0x18] sm:$0xff]  ;;  %v3017_v16 = vld [vmem:[#allocation9 + $0x40] sm:$0xf] }
  0x19   :  { %118 = vperm.xlu2 %4062, %v104_v8   ;;  %v103_v13 = vld [vmem:[%s5023_s1 + $0x8] sm:$0xff]  ;;  %v3009_v19 = vld [vmem:[#allocation9 + $0x30] sm:$0xf]  ;;  %v3851_v20 = vld [vmem:[#allocation9 + $0x34] sm:$0xf0] }
  0x1a   :  { %v3853_v17 = vld [vmem:[#allocation9 + $0x44] sm:$0xf0]  ;;  %v160_v21 = vld [vmem:[%s5024_s2 + $0x18] sm:$0xff]  ;;  %v159_v22 = vld [vmem:[%s5024_s2 + $0x10] sm:$0xff]  ;;  %v4329_v23 = vor.u32 %v3851_v20, %v3009_v19 }
  0x1b   :  { %v4320_v18 = vor.u32 %v3853_v17, %v3017_v16  ;;  %v106_v24 = vld [vmem:[%s5023_s1 + $0x20] sm:$0xff]  ;;  %v3849_v26 = vld [vmem:[#allocation9 + $0x24] sm:$0xf0]  ;;  %v2993_v28 = vld [vmem:[#allocation9 + $0x10] sm:$0xf] }
  0x1c   :  { %606 = vmatpush.bf16.msra.mxu3 %v4305_v9  ;;  %v3001_v25 = vld [vmem:[#allocation9 + $0x20] sm:$0xf]  ;;  %v3847_v29 = vld [vmem:[#allocation9 + $0x14] sm:$0xf0]  ;;  %v107_v31 = vld [vmem:[%s5023_s1 + $0x28] sm:$0xff]  ;;  %p3319_p0 = scmp.ne.s32.totalorder %s3318_s30, 0 }
  0x1d   :  { %v4335_v27 = vor.u32 %v3849_v26, %v3001_v25  ;;  %v161_v30 = vld [vmem:[%s5024_s2 + $0x20] sm:$0xff]  ;;  %v4344_v32 = vor.u32 %v3847_v29, %v2993_v28  ;;  %v162_v33 = vld [vmem:[%s5024_s2 + $0x28] sm:$0xff]  ;;  %v3105_v36 = vld [vmem:[#allocation9 + $0xf0] sm:$0xf] }
  0x1e   :  { %v2985_v34 = vld [vmem:[#allocation9] sm:$0xf]  ;;  %v3845_v35 = vld [vmem:[#allocation9 + $0x4] sm:$0xf0]  ;;  %v3875_v37 = vld [vmem:[#allocation9 + $0xf4] sm:$0xf0] }
  0x1f   :  { %168 = vperm.xlu1 %4061, %v158_v12   ;;  %115 = vperm.xlu0 %4060, %v103_v13   ;;  %v4350_v38 = vor.u32 %v3845_v35, %v2985_v34  ;;  %v163_v39 = vld [vmem:[%s5024_s2 + $0x30] sm:$0xff]  ;;  %v4358_v41 = vor.u32 %v3875_v37, %v3105_v36  ;;  %v3097_v42 = vld [vmem:[#allocation9 + $0xe0] sm:$0xf]  ;;  %v3043_v44 = vld [vmem:[#allocation9 + $0x78] sm:$0xf0] }
  0x20   :  { %607 = vmatpush.bf16.msra.mxu3 %v4314_v14  ;;  %v108_v40 = vld [vmem:[%s5023_s1 + $0x30] sm:$0xff]  ;;  %v3873_v45 = vld [vmem:[#allocation9 + $0xe4] sm:$0xf0]  ;;  %v3856_v47 = vld [vmem:[#allocation9 + $0x64] sm:$0xf] }
  0x21   :  { %121 = vperm.xlu2 %4062, %v105_v15   ;;  %v3858_v43 = vld [vmem:[#allocation9 + $0x74] sm:$0xf]  ;;  %v3035_v48 = vld [vmem:[#allocation9 + $0x68] sm:$0xf0]  ;;  %v1200_v49 = vld [vmem:[%s5025_s3] sm:$0xff]  ;;  %v4367_v50 = vor.u32 %v3873_v45, %v3097_v42 }
  0x22   :  { %v4360_v46 = vor.u32 %v3858_v43, %v3043_v44  ;;  %v3089_v51 = vld [vmem:[#allocation9 + $0xd0] sm:$0xf]  ;;  %v4370_v52 = vor.u32 %v3856_v47, %v3035_v48  ;;  %v3871_v53 = vld [vmem:[#allocation9 + $0xd4] sm:$0xf0]  ;;  %v3854_v54 = vld [vmem:[#allocation9 + $0x54] sm:$0xf] }
  0x23   :  { %v3027_v55 = vld [vmem:[#allocation9 + $0x58] sm:$0xf0]  ;;  %v1202_v56 = vld [vmem:[%s5025_s3 + $0x10] sm:$0xff]  ;;  %v1201_v57 = vld [vmem:[%s5025_s3 + $0x8] sm:$0xff]  ;;  %v4380_v58 = vor.u32 %v3871_v53, %v3089_v51 }
  0x24   :  { %608 = vmatpush.bf16.msra.mxu3 %v4320_v18  ;;  %631 = vmatpush.bf16.msra.mxu2 %v4360_v46  ;;  %v3081_v59 = vld [vmem:[#allocation9 + $0xc0] sm:$0xf]  ;;  %v4383_v60 = vor.u32 %v3854_v54, %v3027_v55  ;;  %v3869_v61 = vld [vmem:[#allocation9 + $0xc4] sm:$0xf0]  ;;  %v3852_v62 = vld [vmem:[#allocation9 + $0x44] sm:$0xf] }
  0x25   :  { %v3019_v63 = vld [vmem:[#allocation9 + $0x48] sm:$0xf0]  ;;  %v1203_v0 = vld [vmem:[%s5025_s3 + $0x18] sm:$0xff]  ;;  %v4389_v1 = vor.u32 %v3869_v61, %v3081_v59  ;;  %v3073_v3 = vld [vmem:[#allocation9 + $0xb0] sm:$0xf] }
  0x26   :  { %v3867_v4 = vld [vmem:[#allocation9 + $0xb4] sm:$0xf0]  ;;  %v4392_v5 = vor.u32 %v3852_v62, %v3019_v63  ;;  %v3850_v10 = vld [vmem:[#allocation9 + $0x34] sm:$0xf]  ;;  %v3011_v11 = vld [vmem:[#allocation9 + $0x38] sm:$0xf0] }
  0x27   :  { %174 = vperm.xlu1 %4061, %v160_v21   ;;  %171 = vperm.xlu0 %4060, %v159_v22   ;;  %v3835_v7 = vld [vmem:[%s5026_s4 + $0x38] sm:$0xff]  ;;  %v1205_v12 = vld [vmem:[%s5025_s3 + $0x28] sm:$0xff]  ;;  %v1204_v13 = vld [vmem:[%s5025_s3 + $0x20] sm:$0xff]  ;;  %v4404_v15 = vor.u32 %v3867_v4, %v3073_v3  ;;  %v4407_v19 = vor.u32 %v3850_v10, %v3011_v11 }
  0x28   :  { %609 = vmatpush.bf16.msra.mxu3 %v4329_v23  ;;  %632 = vmatpush.bf16.msra.mxu2 %v4370_v52  ;;  %v3843_v8 = vld [vmem:[#allocation8 + $0x38] sm:$0xff]  ;;  %v3065_v16 = vld [vmem:[#allocation9 + $0xa0] sm:$0xf]  ;;  %v3865_v17 = vld [vmem:[#allocation9 + $0xa4] sm:$0xf0] }
  0x29   :  { %124 = vperm.xlu2 %4062, %v106_v24   ;;  %274 = vmatpush.bf16.msra.mxu0 %v3835_v7  ;;  %v3834_v20 = vld [vmem:[%s5026_s4 + $0x30] sm:$0xff]  ;;  %v3848_v22 = vld [vmem:[#allocation9 + $0x24] sm:$0xf]  ;;  %v3003_v24 = vld [vmem:[#allocation9 + $0x28] sm:$0xf0]  ;;  %v4413_v25 = vor.u32 %v3865_v17, %v3065_v16 }
  0x2a   :  { %373 = vmatpush.bf16.msra.mxu1 %v3843_v8  ;;  %v3842_v21 = vld [vmem:[#allocation8 + $0x30] sm:$0xff]  ;;  %v3863_v28 = vld [vmem:[#allocation9 + $0x94] sm:$0xf0]  ;;  %v4416_v29 = vor.u32 %v3848_v22, %v3003_v24  ;;  %v2995_v34 = vld [vmem:[#allocation9 + $0x18] sm:$0xf0] }
  0x2b   :  { %v3057_v26 = vld [vmem:[#allocation9 + $0x90] sm:$0xf]  ;;  %v3049_v36 = vld [vmem:[#allocation9 + $0x80] sm:$0xf]  ;;  %v3861_v37 = vld [vmem:[#allocation9 + $0x84] sm:$0xf0] }
  0x2c   :  { %610 = vmatpush.bf16.msra.mxu3 %v4335_v27  ;;  %633 = vmatpush.bf16.msra.mxu2 %v4383_v60  ;;  %v4422_v35 = vor.u32 %v3863_v28, %v3057_v26  ;;  %v3840_v42 = vld [vmem:[#allocation8 + $0x20] sm:$0xff]  ;;  %v3874_v44 = vld [vmem:[#allocation9 + $0xf4] sm:$0xf]  ;;  %v3107_v45 = vld [vmem:[#allocation9 + $0xf8] sm:$0xf0]  ;;  %v4431_v48 = vor.u32 %v3861_v37, %v3049_v36  ;;  %v109_v37 = vlaneseq }
  0x2d   :  { %275 = vmatpush.bf16.msra.mxu0 %v3834_v20  ;;  %v3844_v43 = vld [vmem:[#allocation9 + $0x4] sm:$0xf]  ;;  %v2987_v47 = vld [vmem:[#allocation9 + $0x8] sm:$0xf0]  ;;  %v4436_v51 = vor.u32 %v3874_v44, %v3107_v45  ;;  %v3831_v55 = vld [vmem:[%s5026_s4 + $0x18] sm:$0xff] }
  0x2e   :  { %374 = vmatpush.bf16.msra.mxu1 %v3842_v21  ;;  %v3872_v53 = vld [vmem:[#allocation9 + $0xe4] sm:$0xf]  ;;  %v3099_v54 = vld [vmem:[#allocation9 + $0xe8] sm:$0xf0]  ;;  %v3870_v59 = vld [vmem:[#allocation9 + $0xd4] sm:$0xf] }
  0x2f   :  { %177 = vperm.xlu1 %4061, %v161_v30   ;;  %127 = vperm.xlu0 %4060, %v107_v31   ;;  %v3833_v30 = vld [vmem:[%s5026_s4 + $0x28] sm:$0xff]  ;;  %v3091_v61 = vld [vmem:[#allocation9 + $0xd8] sm:$0xf0]  ;;  %v3830_v62 = vld [vmem:[%s5026_s4 + $0x10] sm:$0xff]  ;;  %v4206_v45 = vmov 1.0|1.0  }
  0x30   :  { %611 = vmatpush.bf16.msra.mxu3 %v4344_v32  ;;  %634 = vmatpush.bf16.msra.mxu2 %v4392_v5  ;;  %v3841_v31 = vld [vmem:[#allocation8 + $0x28] sm:$0xff]  ;;  %v3838_v63 = vld [vmem:[#allocation8 + $0x10] sm:$0xff]  ;;  %v3868_v3 = vld [vmem:[#allocation9 + $0xc4] sm:$0xf] }
  0x31   :  { %180 = vperm.xlu2 %4062, %v162_v33   ;;  %v3846_v33 = vld [vmem:[#allocation9 + $0x14] sm:$0xf]  ;;  %276 = vmatpush.bf16.msra.mxu0 %v3833_v30  ;;  %v3083_v4 = vld [vmem:[#allocation9 + $0xc8] sm:$0xf0]  ;;  %v3075_v10 = vld [vmem:[#allocation9 + $0xb8] sm:$0xf0] }
  0x32   :  { %375 = vmatpush.bf16.msra.mxu1 %v3841_v31  ;;  %v4457_v7 = vor.u32 %v3868_v3, %v3083_v4  ;;  %v3866_v8 = vld [vmem:[#allocation9 + $0xb4] sm:$0xf]  ;;  %v3059_v20 = vld [vmem:[#allocation9 + $0x98] sm:$0xf0]  ;;  %v3860_v22 = vld [vmem:[#allocation9 + $0x84] sm:$0xf] }
  0x33   :  { %v4461_v11 = vor.u32 %v3866_v8, %v3075_v10  ;;  %v3862_v17 = vld [vmem:[#allocation9 + $0x94] sm:$0xf]  ;;  %v3051_v24 = vld [vmem:[#allocation9 + $0x88] sm:$0xf0]  ;;  %v3828_v31 = vld [vmem:[%s5026_s4] sm:$0xff] }
  0x34   :  { %612 = vmatpush.bf16.msra.mxu3 %v4350_v38  ;;  %635 = vmatpush.bf16.msra.mxu2 %v4407_v19  ;;  %v4469_v21 = vor.u32 %v3862_v17, %v3059_v20  ;;  %v3829_v26 = vld [vmem:[%s5026_s4 + $0x8] sm:$0xff]  ;;  %v1206_v30 = vld [vmem:[%s5025_s3 + $0x30] sm:$0xff] }
  0x35   :  { %v3837_v28 = vld [vmem:[#allocation8 + $0x8] sm:$0xff] }
  0x36   :  { %376 = vmatpush.bf16.msra.mxu1 %v3840_v42 }
  0x37   :  { %183 = vperm.xlu1 %4061, %v163_v39   ;;  %130 = vperm.xlu0 %4060, %v108_v40   ;;  %v4425_v39 = vor.u32 %v3846_v33, %v2995_v34  ;;  %v3832_v40 = vld [vmem:[%s5026_s4 + $0x20] sm:$0xff]  ;;  %v4482_v34 = vor.u32 %v3860_v22, %v3051_v24 }
  0x38   :  { %618 = vmatpush.bf16.msrb.mxu3 %v4358_v41  ;;  %636 = vmatpush.bf16.msra.mxu2 %v4416_v29  ;;  %v3836_v33 = vld [vmem:[#allocation8] sm:$0xff] }
  0x39   :  { %1208 = vperm.xlu2 %4062, %v1200_v49   ;;  %613 = vmatmul.bf16.vlgmr.msra.gmra.mxu3 %v4205_v2  ;;  %v4434_v49 = vor.u32 %v3844_v43, %v2987_v47 }
  0x3a   :  { %277 = vmatpush.bf16.msra.mxu0 %v3832_v40  ;;  %v4518_v40 = vand.u32 127, %v109_v37 }
  0x3c   :  { %619 = vmatpush.bf16.msrb.mxu3 %v4367_v50  ;;  %637 = vmatpush.bf16.msra.mxu2 %v4425_v39 }
  0x3e   :  { %278 = vmatpush.bf16.msra.mxu0 %v3831_v55 }
  0x3f   :  { %1214 = vperm.xlu1 %4061, %v1202_v56   ;;  %1211 = vperm.xlu0 %4060, %v1201_v57   ;;  %v3839_v56 = vld [vmem:[#allocation8 + $0x18] sm:$0xff]  ;;  %v4444_v57 = vor.u32 %v3872_v53, %v3099_v54 }
  0x40   :  { %620 = vmatpush.bf16.msrb.mxu3 %v4380_v58  ;;  %638 = vmatpush.bf16.msra.mxu2 %v4434_v49 }
  0x41   :  { %1217 = vperm.xlu2 %4062, %v1203_v0   ;;  %377 = vmatpush.bf16.msra.mxu1 %v3839_v56  ;;  %v4453_v0 = vor.u32 %v3870_v59, %v3091_v61 }
  0x42   :  { %279 = vmatpush.bf16.msra.mxu0 %v3830_v62 }
  0x43   :  { %639 = vmatmul.bf16.vlgmr.msra.gmra.mxu2 %v4205_v2 }
  0x44   :  { %621 = vmatpush.bf16.msrb.mxu3 %v4389_v1  ;;  %694 = vmatpush.bf16.msrb.mxu2 %v4360_v46 }
  0x45   :  { %378 = vmatpush.bf16.msra.mxu1 %v3838_v63 }
  0x46   :  { %280 = vmatpush.bf16.msra.mxu0 %v3829_v26 }
  0x47   :  { %1223 = vperm.xlu1 %4061, %v1205_v12   ;;  %1220 = vperm.xlu0 %4060, %v1204_v13   ;;  %v3864_v12 = vld [vmem:[#allocation9 + $0xa4] sm:$0xf]  ;;  %v3067_v13 = vld [vmem:[#allocation9 + $0xa8] sm:$0xf0] }
  0x48   :  { %622 = vmatpush.bf16.msrb.mxu3 %v4404_v15  ;;  %695 = vmatpush.bf16.msrb.mxu2 %v4370_v52  ;;  %v4465_v16 = vor.u32 %v3864_v12, %v3067_v13 }
  0x49   :  { %1226 = vperm.xlu2 %4062, %v1206_v30   ;;  %379 = vmatpush.bf16.msra.mxu1 %v3837_v28 }
  0x4a   :  { %281 = vmatpush.bf16.msra.mxu0 %v3828_v31 }
  0x4c   :  { %623 = vmatpush.bf16.msrb.mxu3 %v4413_v25  ;;  %696 = vmatpush.bf16.msrb.mxu2 %v4383_v60 }
  0x4d   :  { %380 = vmatpush.bf16.msra.mxu1 %v3836_v33 }
  0x4e   :  { %668 = vmatpush.bf16.msrb.mxu0 %v4298_v6 }
  0x50   :  { %624 = vmatpush.bf16.msrb.mxu3 %v4422_v35  ;;  %697 = vmatpush.bf16.msrb.mxu2 %v4392_v5 }
  0x51   :  { %681 = vmatpush.bf16.msrb.mxu1 %v4358_v41 }
  0x52   :  { %669 = vmatpush.bf16.msrb.mxu0 %v4305_v9 }
  0x54   :  { %625 = vmatpush.bf16.msrb.mxu3 %v4431_v48  ;;  %698 = vmatpush.bf16.msrb.mxu2 %v4407_v19 }
  0x55   :  { %682 = vmatpush.bf16.msrb.mxu1 %v4367_v50 }
  0x56   :  { %670 = vmatpush.bf16.msrb.mxu0 %v4314_v14 }
  0x57   :  { %626 = vmatmul.bf16.vlgmr.msrb.gmra.mxu3 %v4205_v2 }
  0x58   :  { %644 = vmatpush.bf16.msra.mxu3 %v4436_v51  ;;  %699 = vmatpush.bf16.msrb.mxu2 %v4416_v29 }
  0x59   :  { %683 = vmatpush.bf16.msrb.mxu1 %v4380_v58 }
  0x5a   :  { %671 = vmatpush.bf16.msrb.mxu0 %v4320_v18 }
  0x5c   :  { %645 = vmatpush.bf16.msra.mxu3 %v4444_v57  ;;  %700 = vmatpush.bf16.msrb.mxu2 %v4425_v39 }
  0x5d   :  { %684 = vmatpush.bf16.msrb.mxu1 %v4389_v1 }
  0x5e   :  { %672 = vmatpush.bf16.msrb.mxu0 %v4329_v23 }
  0x60   :  { %646 = vmatpush.bf16.msra.mxu3 %v4453_v0  ;;  %701 = vmatpush.bf16.msrb.mxu2 %v4434_v49 }
  0x61   :  { %685 = vmatpush.bf16.msrb.mxu1 %v4404_v15 }
  0x62   :  { %673 = vmatpush.bf16.msrb.mxu0 %v4335_v27 }
  0x64   :  { %647 = vmatpush.bf16.msra.mxu3 %v4457_v7  ;;  %757 = vmatpush.bf16.msra.mxu2 %v4360_v46 }
  0x65   :  { %686 = vmatpush.bf16.msrb.mxu1 %v4413_v25 }
  0x66   :  { %674 = vmatpush.bf16.msrb.mxu0 %v4344_v32 }
  0x68   :  { %648 = vmatpush.bf16.msra.mxu3 %v4461_v11  ;;  %758 = vmatpush.bf16.msra.mxu2 %v4370_v52 }
  0x69   :  { %687 = vmatpush.bf16.msrb.mxu1 %v4422_v35 }
  0x6a   :  { %675 = vmatpush.bf16.msrb.mxu0 %v4350_v38 }
  0x6c   :  { %649 = vmatpush.bf16.msra.mxu3 %v4465_v16  ;;  %759 = vmatpush.bf16.msra.mxu2 %v4383_v60 }
  0x6d   :  { %688 = vmatpush.bf16.msrb.mxu1 %v4431_v48 }
  0x70   :  { %650 = vmatpush.bf16.msra.mxu3 %v4469_v21  ;;  %760 = vmatpush.bf16.msra.mxu2 %v4392_v5 }
  0x73   :  { %v119_v42 = vpop.permute.xlu2 %118 }
  0x74   :  { %651 = vmatpush.bf16.msra.mxu3 %v4482_v34  ;;  %761 = vmatpush.bf16.msra.mxu2 %v4407_v19  ;;  %vm134_vm6 = vcmp.eq.s32.totalorder %v4518_v40, %v119_v42 }
  0x77   :  { %652 = vmatmul.bf16.vlgmr.msra.gmra.mxu3 %v4205_v2 }
  0x78   :  { %707 = vmatpush.bf16.msrb.mxu3 %v4436_v51  ;;  %762 = vmatpush.bf16.msra.mxu2 %v4416_v29 }
  0x7b   :  { %v122_v47 = vpop.permute.xlu2 %121 }
  0x7c   :  { %708 = vmatpush.bf16.msrb.mxu3 %v4444_v57  ;;  %763 = vmatpush.bf16.msra.mxu2 %v4425_v39  ;;  %vm135_vm7 = vcmp.eq.s32.totalorder %v4518_v40, %v122_v47 }
  0x7d   :  { %vm2937_vm10 = vmpackc.low %vm135_vm7, %vm134_vm6 }
  0x80   :  { %709 = vmatpush.bf16.msrb.mxu3 %v4453_v0  ;;  %764 = vmatpush.bf16.msra.mxu2 %v4434_v49 }
  0x83   :  { %v125_v55 = vpop.permute.xlu2 %124 }
  0x84   :  { %710 = vmatpush.bf16.msrb.mxu3 %v4457_v7  ;;  %vm136_vm14 = vcmp.eq.s32.totalorder %v4518_v40, %v125_v55 }
  0x88   :  { %711 = vmatpush.bf16.msrb.mxu3 %v4461_v11 }
  0x89   :  { %v166_v2 = vpop.permute.xlu1 %165  ;;  %v113_v36 = vpop.permute.xlu0 %112 }
  0x8a   :  { %vm185_vm0 = vcmp.eq.s32.totalorder %v4518_v40, %v166_v2  ;;  %vm132_vm3 = vcmp.eq.s32.totalorder %v4518_v40, %v113_v36 }
  0x8b   :  { %v181_v59 = vpop.permute.xlu2 %180 }
  0x8c   :  { %712 = vmatpush.bf16.msrb.mxu3 %v4465_v16  ;;  %vm190_vm13 = vcmp.eq.s32.totalorder %v4518_v40, %v181_v59 }
  0x90   :  { %713 = vmatpush.bf16.msrb.mxu3 %v4469_v21 }
  0x91   :  { %v169_v43 = vpop.permute.xlu1 %168  ;;  %v116_v44 = vpop.permute.xlu0 %115 }
  0x92   :  { %vm186_vm1 = vcmp.eq.s32.totalorder %v4518_v40, %v169_v43  ;;  %vm133_vm2 = vcmp.eq.s32.totalorder %v4518_v40, %v116_v44 }
  0x93   :  { %vm2975_vm4 = vmpackc.low %vm186_vm1, %vm185_vm0 }
  0x94   :  { %714 = vmatpush.bf16.msrb.mxu3 %v4482_v34  ;;  %vm2935_vm5 = vmpackc.low %vm133_vm2, %vm132_vm3  ;;  %2976 = vmatmul.msk.bf16.vlgmr.msra.gmra.mxu1 %vm2975_vm4, %v4206_v45 }
  0x95   :  { %2936 = vmatmul.msk.bf16.vlgmr.msra.gmra.mxu0 %vm2935_vm5, %v4206_v45  ;;  %744 = vmatpush.bf16.msra.mxu1 %v4358_v41 }
  0x96   :  { %731 = vmatpush.bf16.msra.mxu0 %v4298_v6 }
  0x98   :  { %770 = vmatpush.bf16.msra.mxu3 %v4436_v51 }
  0x99   :  { %745 = vmatpush.bf16.msra.mxu1 %v4367_v50  ;;  %v175_v53 = vpop.permute.xlu1 %174  ;;  %v172_v54 = vpop.permute.xlu0 %171 }
  0x9a   :  { %732 = vmatpush.bf16.msra.mxu0 %v4305_v9  ;;  %vm188_vm8 = vcmp.eq.s32.totalorder %v4518_v40, %v175_v53  ;;  %vm187_vm9 = vcmp.eq.s32.totalorder %v4518_v40, %v172_v54 }
  0x9b   :  { %vm2977_vm11 = vmpackc.low %vm188_vm8, %vm187_vm9 }
  0x9c   :  { %771 = vmatpush.bf16.msra.mxu3 %v4444_v57 }
  0x9d   :  { %746 = vmatpush.bf16.msra.mxu1 %v4380_v58 }
  0x9e   :  { %733 = vmatpush.bf16.msra.mxu0 %v4314_v14 }
  0xa0   :  { %772 = vmatpush.bf16.msra.mxu3 %v4453_v0 }
  0xa1   :  { %747 = vmatpush.bf16.msra.mxu1 %v4389_v1  ;;  %v178_v56 = vpop.permute.xlu1 %177  ;;  %v128_v61 = vpop.permute.xlu0 %127 }
  0xa2   :  { %734 = vmatpush.bf16.msra.mxu0 %v4320_v18  ;;  %vm189_vm12 = vcmp.eq.s32.totalorder %v4518_v40, %v178_v56  ;;  %vm137_vm15 = vcmp.eq.s32.totalorder %v4518_v40, %v128_v61 }
  0xa3   :  { %vm2979_vm0 = vmpackc.low %vm190_vm13, %vm189_vm12 }
  0xa4   :  { %773 = vmatpush.bf16.msra.mxu3 %v4457_v7  ;;  %2978 = vmatmul.msk.bf16.gmra.mxu1 %vm2977_vm11, %v4206_v45  ;;  %vm2939_vm1 = vmpackc.low %vm137_vm15, %vm136_vm14 }
  0xa5   :  { %2938 = vmatmul.msk.bf16.gmra.mxu0 %vm2937_vm10, %v4206_v45  ;;  %748 = vmatpush.bf16.msra.mxu1 %v4404_v15 }
  0xa6   :  { %735 = vmatpush.bf16.msra.mxu0 %v4329_v23 }
  0xa8   :  { %774 = vmatpush.bf16.msra.mxu3 %v4461_v11 }
  0xa9   :  { %749 = vmatpush.bf16.msra.mxu1 %v4413_v25  ;;  %v184_v63 = vpop.permute.xlu1 %183  ;;  %v131_v3 = vpop.permute.xlu0 %130 }
  0xaa   :  { %736 = vmatpush.bf16.msra.mxu0 %v4335_v27  ;;  %vm191_vm2 = vcmp.eq.s32.totalorder %v4518_v40, %v184_v63  ;;  %vm138_vm3 = vcmp.eq.s32.totalorder %v4518_v40, %v131_v3 }
  0xab   :  { %vm2981_vm4 = vmpackc.low %vm191_vm2, %vm191_vm2 }
  0xac   :  { %775 = vmatpush.bf16.msra.mxu3 %v4465_v16  ;;  %vm2941_vm5 = vmpackc.low %vm138_vm3, %vm138_vm3 }
  0xad   :  { %750 = vmatpush.bf16.msra.mxu1 %v4422_v35 }
  0xae   :  { %737 = vmatpush.bf16.msra.mxu0 %v4344_v32 }
  0xb0   :  { %776 = vmatpush.bf16.msra.mxu3 %v4469_v21 }
  0xb1   :  { %751 = vmatpush.bf16.msra.mxu1 %v4431_v48 }
  0xb2   :  { %738 = vmatpush.bf16.msra.mxu0 %v4350_v38 }
  0xb4   :  { %777 = vmatpush.bf16.msra.mxu3 %v4482_v34  ;;  %2980 = vmatmul.msk.bf16.gmra.mxu1 %vm2979_vm0, %v4206_v45 }
  0xb5   :  { %2940 = vmatmul.msk.bf16.gmra.mxu0 %vm2939_vm1, %v4206_v45 }
  0xbc   :  { %v614_v62 = vpop.f32.mrf.mxu3 }
  0xc4   :  { %2982 = vmatmul.msk.bf16.gmra.mxu1 %vm2981_vm4, %v4206_v45  ;;  %v616_v4 = vpop.f32.mrf.mxu3 }
  0xc5   :  { %2942 = vmatmul.msk.bf16.gmra.mxu0 %vm2941_vm5, %v4206_v45 }
  0xc6   :  { %v640_v10 = vpop.f32.mrf.mxu2 }
  0xce   :  { %v642_v13 = vpop.f32.mrf.mxu2 }
  0xda   :  { %v627_v8 = vpop.f32.mrf.mxu3 }
  0xdb   :  { %v628_v24 = vadd.f32 %v627_v8, %v614_v62 }
  0xe2   :  { %v629_v12 = vpop.f32.mrf.mxu3 }
  0xfa   :  { %v653_v17 = vpop.f32.mrf.mxu3 }
  0xfb   :  { %v654_v22 = vadd.f32 %v653_v17, %v640_v10 }
 0x102   :  { %v655_v20 = vpop.f32.mrf.mxu3 }
 0x111   :  { %v382_v26 = vpop.f32.mrf.mxu1 }
 0x112   :  { %v283_v28 = vpop.f32.mrf.mxu0  ;;  %v658_v30 = vadd.f32 %v654_v22, %v382_v26 }
 0x113   :  { %v657_v31 = vadd.f32 %v628_v24, %v283_v28 }
 0x114   :  { %4065 = vtanh.f32 %v658_v30 }
 0x115   :  { %4067 = vtanh.f32 %v657_v31 }
 0x119   :  { %v4569_v33 = vpop.f32.mrf.mxu1 }
 0x11a   :  { %v4066_v2 = vpop.eup %4065  ;;  %v285_v36 = vpop.f32.mrf.mxu0 }
 0x11b   :  { %v4068_v42 = vpop.eup %4067  ;;  %v667_v43 = vpack.c.bf16 %v4066_v2, %v4066_v2 }
 0x11c   :  { %v666_v44 = vpack.c.bf16 %v4068_v42, %v4068_v42 }
 0x11d   :  { %689 = vmatmul.bf16.vlgmr.msrb.gmra.mxu1 %v667_v43  ;;  %715 = vmatmul.bf16.vlgmr.msrb.gmra.mxu3 %v667_v43 }
 0x11e   :  { %676 = vmatmul.bf16.vlgmr.msrb.gmra.mxu0 %v666_v44  ;;  %702 = vmatmul.bf16.vlgmr.msrb.gmra.mxu2 %v666_v44 }
 0x11f   :  { %794 = vmatpush.bf16.msrb.mxu0 %v4298_v6  ;;  %820 = vmatpush.bf16.msrb.mxu2 %v4360_v46 }
 0x120   :  { %807 = vmatpush.bf16.msrb.mxu1 %v4358_v41  ;;  %833 = vmatpush.bf16.msrb.mxu3 %v4436_v51 }
 0x121   :  { %v4575_v47 = vpop.f32.mrf.mxu1 }
 0x122   :  { %v4577_v53 = vpop.f32.mrf.mxu0 }
 0x123   :  { %795 = vmatpush.bf16.msrb.mxu0 %v4305_v9  ;;  %821 = vmatpush.bf16.msrb.mxu2 %v4370_v52 }
 0x124   :  { %808 = vmatpush.bf16.msrb.mxu1 %v4367_v50  ;;  %834 = vmatpush.bf16.msrb.mxu3 %v4444_v57 }
 0x127   :  { %796 = vmatpush.bf16.msrb.mxu0 %v4314_v14  ;;  %822 = vmatpush.bf16.msrb.mxu2 %v4383_v60 }
 0x128   :  { %809 = vmatpush.bf16.msrb.mxu1 %v4380_v58  ;;  %835 = vmatpush.bf16.msrb.mxu3 %v4453_v0 }
 0x129   :  { %v4587_v54 = vpop.f32.mrf.mxu1 }
 0x12a   :  { %v4589_v55 = vpop.f32.mrf.mxu0 }
 0x12b   :  { %797 = vmatpush.bf16.msrb.mxu0 %v4320_v18  ;;  %823 = vmatpush.bf16.msrb.mxu2 %v4392_v5 }
 0x12c   :  { %810 = vmatpush.bf16.msrb.mxu1 %v4389_v1  ;;  %836 = vmatpush.bf16.msrb.mxu3 %v4457_v7 }
 0x12f   :  { %798 = vmatpush.bf16.msrb.mxu0 %v4329_v23  ;;  %824 = vmatpush.bf16.msrb.mxu2 %v4407_v19 }
 0x130   :  { %811 = vmatpush.bf16.msrb.mxu1 %v4404_v15  ;;  %837 = vmatpush.bf16.msrb.mxu3 %v4461_v11 }
 0x131   :  { %v4599_v56 = vpop.f32.mrf.mxu1 }
 0x132   :  { %v4601_v59 = vpop.f32.mrf.mxu0 }
 0x133   :  { %799 = vmatpush.bf16.msrb.mxu0 %v4335_v27  ;;  %825 = vmatpush.bf16.msrb.mxu2 %v4416_v29 }
 0x134   :  { %812 = vmatpush.bf16.msrb.mxu1 %v4413_v25  ;;  %838 = vmatpush.bf16.msrb.mxu3 %v4465_v16 }
 0x137   :  { %800 = vmatpush.bf16.msrb.mxu0 %v4344_v32  ;;  %826 = vmatpush.bf16.msrb.mxu2 %v4425_v39 }
 0x138   :  { %813 = vmatpush.bf16.msrb.mxu1 %v4422_v35  ;;  %839 = vmatpush.bf16.msrb.mxu3 %v4469_v21 }
 0x139   :  { %v4611_v61 = vpop.f32.mrf.mxu1 }
 0x13a   :  { %v4613_v62 = vpop.f32.mrf.mxu0 }
 0x13b   :  { %801 = vmatpush.bf16.msrb.mxu0 %v4350_v38  ;;  %827 = vmatpush.bf16.msrb.mxu2 %v4434_v49 }
 0x13c   :  { %814 = vmatpush.bf16.msrb.mxu1 %v4431_v48  ;;  %840 = vmatpush.bf16.msrb.mxu3 %v4482_v34 }
 0x141   :  { %v4619_v63 = vpop.f32.mrf.mxu1 }
 0x142   :  { %v4621_v3 = vpop.f32.mrf.mxu0 }
 0x149   :  { %v399_v4 = vpop.f32.mrf.mxu1 }
 0x14a   :  { %v300_v8 = vpop.f32.mrf.mxu0 }
 0x19a   :  { %v690_v10 = vpop.f32.mrf.mxu1 }
 0x19b   :  { %v677_v12 = vpop.f32.mrf.mxu0 }
 0x19c   :  { %v691_v13 = vadd.f32 %v690_v10, %v677_v12 }
 0x19e   :  { %v720_v17 = vadd.f32 %v691_v13, %v285_v36 }
 0x1a0   :  { %4069 = vtanh.f32 %v720_v17  ;;  %v716_v20 = vpop.f32.mrf.mxu3 }
 0x1a1   :  { %v703_v22 = vpop.f32.mrf.mxu2 }
 0x1a2   :  { %v717_v24 = vadd.f32 %v716_v20, %v703_v22  ;;  %v692_v26 = vpop.f32.mrf.mxu1 }
 0x1a3   :  { %v679_v28 = vpop.f32.mrf.mxu0 }
 0x1a4   :  { %v721_v30 = vadd.f32 %v717_v24, %v4569_v33 }
 0x1a6   :  { %v4070_v31 = vpop.eup %4069  ;;  %4071 = vtanh.f32 %v721_v30 }
 0x1a7   :  { %v729_v2 = vpack.c.bf16 %v4070_v31, %v4070_v31 }
 0x1a8   :  { %v718_v42 = vpop.f32.mrf.mxu3 }
 0x1a9   :  { %v705_v43 = vpop.f32.mrf.mxu2  ;;  %739 = vmatmul.bf16.vlgmr.msra.gmra.mxu0 %v729_v2  ;;  %765 = vmatmul.bf16.vlgmr.msra.gmra.mxu2 %v729_v2 }
 0x1aa   :  { %857 = vmatpush.bf16.msra.mxu0 %v4298_v6  ;;  %883 = vmatpush.bf16.msra.mxu2 %v4360_v46 }
 0x1ac   :  { %v4072_v36 = vpop.eup %4071 }
 0x1ad   :  { %v730_v44 = vpack.c.bf16 %v4072_v36, %v4072_v36 }
 0x1ae   :  { %858 = vmatpush.bf16.msra.mxu0 %v4305_v9  ;;  %884 = vmatpush.bf16.msra.mxu2 %v4370_v52 }
 0x1af   :  { %752 = vmatmul.bf16.vlgmr.msra.gmra.mxu1 %v730_v44  ;;  %778 = vmatmul.bf16.vlgmr.msra.gmra.mxu3 %v730_v44 }
 0x1b0   :  { %870 = vmatpush.bf16.msra.mxu1 %v4358_v41  ;;  %896 = vmatpush.bf16.msra.mxu3 %v4436_v51 }
 0x1b2   :  { %859 = vmatpush.bf16.msra.mxu0 %v4314_v14  ;;  %885 = vmatpush.bf16.msra.mxu2 %v4383_v60 }
 0x1b4   :  { %871 = vmatpush.bf16.msra.mxu1 %v4367_v50  ;;  %897 = vmatpush.bf16.msra.mxu3 %v4444_v57 }
 0x1b6   :  { %860 = vmatpush.bf16.msra.mxu0 %v4320_v18  ;;  %886 = vmatpush.bf16.msra.mxu2 %v4392_v5 }
 0x1b8   :  { %872 = vmatpush.bf16.msra.mxu1 %v4380_v58  ;;  %898 = vmatpush.bf16.msra.mxu3 %v4453_v0 }
 0x1ba   :  { %861 = vmatpush.bf16.msra.mxu0 %v4329_v23  ;;  %887 = vmatpush.bf16.msra.mxu2 %v4407_v19 }
 0x1bc   :  { %873 = vmatpush.bf16.msra.mxu1 %v4389_v1  ;;  %899 = vmatpush.bf16.msra.mxu3 %v4457_v7 }
 0x1be   :  { %862 = vmatpush.bf16.msra.mxu0 %v4335_v27  ;;  %888 = vmatpush.bf16.msra.mxu2 %v4416_v29 }
 0x1c0   :  { %874 = vmatpush.bf16.msra.mxu1 %v4404_v15  ;;  %900 = vmatpush.bf16.msra.mxu3 %v4461_v11 }
 0x1c2   :  { %863 = vmatpush.bf16.msra.mxu0 %v4344_v32  ;;  %889 = vmatpush.bf16.msra.mxu2 %v4425_v39 }
 0x1c4   :  { %875 = vmatpush.bf16.msra.mxu1 %v4413_v25  ;;  %901 = vmatpush.bf16.msra.mxu3 %v4465_v16 }
 0x1c6   :  { %864 = vmatpush.bf16.msra.mxu0 %v4350_v38  ;;  %890 = vmatpush.bf16.msra.mxu2 %v4434_v49 }
 0x1c8   :  { %876 = vmatpush.bf16.msra.mxu1 %v4422_v35  ;;  %902 = vmatpush.bf16.msra.mxu3 %v4469_v21 }
 0x1cc   :  { %877 = vmatpush.bf16.msra.mxu1 %v4431_v48  ;;  %903 = vmatpush.bf16.msra.mxu3 %v4482_v34 }
 0x226   :  { %v740_v33 = vpop.f32.mrf.mxu0 }
 0x22c   :  { %v753_v4 = vpop.f32.mrf.mxu1  ;;  %v766_v8 = vpop.f32.mrf.mxu2 }
 0x22d   :  { %v754_v10 = vadd.f32 %v753_v4, %v740_v33 }
 0x22e   :  { %v742_v12 = vpop.f32.mrf.mxu0 }
 0x22f   :  { %v783_v13 = vadd.f32 %v754_v10, %v4577_v53 }
 0x231   :  { %4073 = vtanh.f32 %v783_v13 }
 0x232   :  { %v779_v17 = vpop.f32.mrf.mxu3 }
 0x233   :  { %v780_v20 = vadd.f32 %v779_v17, %v766_v8 }
 0x234   :  { %v755_v22 = vpop.f32.mrf.mxu1  ;;  %v768_v24 = vpop.f32.mrf.mxu2 }
 0x235   :  { %v784_v26 = vadd.f32 %v780_v20, %v4575_v47 }
 0x237   :  { %v4074_v28 = vpop.eup %4073  ;;  %4075 = vtanh.f32 %v784_v26 }
 0x238   :  { %v792_v30 = vpack.c.bf16 %v4074_v28, %v4074_v28 }
 0x23a   :  { %v781_v31 = vpop.f32.mrf.mxu3  ;;  %802 = vmatmul.bf16.vlgmr.msrb.gmra.mxu0 %v792_v30  ;;  %828 = vmatmul.bf16.vlgmr.msrb.gmra.mxu2 %v792_v30 }
 0x23b   :  { %920 = vmatpush.bf16.msrb.mxu0 %v4298_v6  ;;  %946 = vmatpush.bf16.msrb.mxu2 %v4360_v46 }
 0x23d   :  { %v4076_v2 = vpop.eup %4075 }
 0x23e   :  { %v793_v42 = vpack.c.bf16 %v4076_v2, %v4076_v2 }
 0x23f   :  { %921 = vmatpush.bf16.msrb.mxu0 %v4305_v9  ;;  %947 = vmatpush.bf16.msrb.mxu2 %v4370_v52 }
 0x240   :  { %815 = vmatmul.bf16.vlgmr.msrb.gmra.mxu1 %v793_v42  ;;  %841 = vmatmul.bf16.vlgmr.msrb.gmra.mxu3 %v793_v42  ;;  %v1212_v42 = vpop.permute.xlu0 %1211 }
 0x241   :  { %933 = vmatpush.bf16.msrb.mxu1 %v4358_v41  ;;  %959 = vmatpush.bf16.msrb.mxu3 %v4436_v51  ;;  %vm1229_vm7 = vcmp.eq.s32.totalorder %v4518_v40, %v1212_v42  ;;  %v3232_v42 = vld [vmem:[#allocation11 + $0x20] sm:$0xf] }
 0x243   :  { %922 = vmatpush.bf16.msrb.mxu0 %v4314_v14  ;;  %948 = vmatpush.bf16.msrb.mxu2 %v4383_v60 }
 0x245   :  { %934 = vmatpush.bf16.msrb.mxu1 %v4367_v50  ;;  %960 = vmatpush.bf16.msrb.mxu3 %v4444_v57 }
 0x247   :  { %923 = vmatpush.bf16.msrb.mxu0 %v4320_v18  ;;  %949 = vmatpush.bf16.msrb.mxu2 %v4392_v5 }
 0x249   :  { %935 = vmatpush.bf16.msrb.mxu1 %v4380_v58  ;;  %961 = vmatpush.bf16.msrb.mxu3 %v4453_v0 }
 0x24b   :  { %924 = vmatpush.bf16.msrb.mxu0 %v4329_v23  ;;  %950 = vmatpush.bf16.msrb.mxu2 %v4407_v19 }
 0x24d   :  { %936 = vmatpush.bf16.msrb.mxu1 %v4389_v1  ;;  %962 = vmatpush.bf16.msrb.mxu3 %v4457_v7 }
 0x24f   :  { %925 = vmatpush.bf16.msrb.mxu0 %v4335_v27  ;;  %951 = vmatpush.bf16.msrb.mxu2 %v4416_v29 }
 0x251   :  { %937 = vmatpush.bf16.msrb.mxu1 %v4404_v15  ;;  %963 = vmatpush.bf16.msrb.mxu3 %v4461_v11 }
 0x253   :  { %926 = vmatpush.bf16.msrb.mxu0 %v4344_v32  ;;  %952 = vmatpush.bf16.msrb.mxu2 %v4425_v39 }
 0x255   :  { %938 = vmatpush.bf16.msrb.mxu1 %v4413_v25  ;;  %964 = vmatpush.bf16.msrb.mxu3 %v4465_v16 }
 0x257   :  { %927 = vmatpush.bf16.msrb.mxu0 %v4350_v38  ;;  %953 = vmatpush.bf16.msrb.mxu2 %v4434_v49 }
 0x259   :  { %939 = vmatpush.bf16.msrb.mxu1 %v4422_v35  ;;  %965 = vmatpush.bf16.msrb.mxu3 %v4469_v21 }
 0x25d   :  { %940 = vmatpush.bf16.msrb.mxu1 %v4431_v48  ;;  %966 = vmatpush.bf16.msrb.mxu3 %v4482_v34 }
 0x2b7   :  { %v803_v47 = vpop.f32.mrf.mxu0 }
 0x2bd   :  { %v816_v53 = vpop.f32.mrf.mxu1  ;;  %v829_v43 = vpop.f32.mrf.mxu2 }
 0x2be   :  { %v817_v36 = vadd.f32 %v816_v53, %v803_v47  ;;  %v1209_v47 = vpop.permute.xlu2 %1208  ;;  %v3883_v53 = vld [vmem:[%s5029_s7 + $0x38] sm:$0xff] }
 0x2bf   :  { %v805_v44 = vpop.f32.mrf.mxu0  ;;  %vm1228_vm6 = vcmp.eq.s32.totalorder %v4518_v40, %v1209_v47  ;;  %v3902_v47 = vld [vmem:[#allocation11 + $0x24] sm:$0xf0] }
 0x2c0   :  { %v846_v33 = vadd.f32 %v817_v36, %v4589_v55  ;;  %vm3214_vm8 = vmpackc.low %vm1229_vm7, %vm1228_vm6  ;;  %v3882_v36 = vld [vmem:[%s5029_s7 + $0x30] sm:$0xff] }
 0x2c1   :  { %v3890_v44 = vld [vmem:[%s5029_s7 + $0x70] sm:$0xff] }
 0x2c2   :  { %4077 = vtanh.f32 %v846_v33  ;;  %v3881_v33 = vld [vmem:[%s5029_s7 + $0x28] sm:$0xff] }
 0x2c3   :  { %v842_v4 = vpop.f32.mrf.mxu3 }
 0x2c4   :  { %v843_v8 = vadd.f32 %v842_v4, %v829_v43  ;;  %v3891_v43 = vld [vmem:[%s5029_s7 + $0x78] sm:$0xff] }
 0x2c5   :  { %v818_v10 = vpop.f32.mrf.mxu1  ;;  %v831_v12 = vpop.f32.mrf.mxu2 }
 0x2c6   :  { %v847_v13 = vadd.f32 %v843_v8, %v4587_v54  ;;  %v1221_v8 = vpop.permute.xlu0 %1220  ;;  %v3880_v12 = vld [vmem:[%s5029_s7 + $0x20] sm:$0xff] }
 0x2c7   :  { %vm1232_vm13 = vcmp.eq.s32.totalorder %v4518_v40, %v1221_v8  ;;  %v3923_v8 = vld [vmem:[#allocation11 + $0x74] sm:$0xf0] }
 0x2c8   :  { %v4078_v17 = vpop.eup %4077  ;;  %4079 = vtanh.f32 %v847_v13  ;;  %v3889_v13 = vld [vmem:[%s5029_s7 + $0x68] sm:$0xff] }
 0x2c9   :  { %v855_v20 = vpack.c.bf16 %v4078_v17, %v4078_v17  ;;  %v3879_v17 = vld [vmem:[%s5029_s7 + $0x18] sm:$0xff] }
 0x2cb   :  { %v844_v22 = vpop.f32.mrf.mxu3  ;;  %865 = vmatmul.bf16.vlgmr.msra.gmra.mxu0 %v855_v20  ;;  %891 = vmatmul.bf16.vlgmr.msra.gmra.mxu2 %v855_v20  ;;  %v3888_v20 = vld [vmem:[%s5029_s7 + $0x60] sm:$0xff] }
 0x2cc   :  { %1009 = vmatpush.bf16.msra.mxu2 %v4360_v46  ;;  %983 = vmatpush.bf16.msra.mxu0 %v4298_v6  ;;  %v3887_v22 = vld [vmem:[%s5029_s7 + $0x58] sm:$0xff] }
 0x2ce   :  { %v4080_v24 = vpop.eup %4079 }
 0x2cf   :  { %v856_v26 = vpack.c.bf16 %v4080_v24, %v4080_v24  ;;  %v3877_v24 = vld [vmem:[%s5029_s7 + $0x8] sm:$0xff] }
 0x2d0   :  { %1010 = vmatpush.bf16.msra.mxu2 %v4370_v52  ;;  %984 = vmatpush.bf16.msra.mxu0 %v4305_v9 }
 0x2d1   :  { %878 = vmatmul.bf16.vlgmr.msra.gmra.mxu1 %v856_v26  ;;  %904 = vmatmul.bf16.vlgmr.msra.gmra.mxu3 %v856_v26  ;;  %v3886_v26 = vld [vmem:[%s5029_s7 + $0x50] sm:$0xff] }
 0x2d2   :  { %996 = vmatpush.bf16.msra.mxu1 %v4358_v41  ;;  %1022 = vmatpush.bf16.msra.mxu3 %v4436_v51 }
 0x2d4   :  { %1011 = vmatpush.bf16.msra.mxu2 %v4383_v60  ;;  %985 = vmatpush.bf16.msra.mxu0 %v4314_v14 }
 0x2d6   :  { %997 = vmatpush.bf16.msra.mxu1 %v4367_v50  ;;  %1023 = vmatpush.bf16.msra.mxu3 %v4444_v57 }
 0x2d8   :  { %1012 = vmatpush.bf16.msra.mxu2 %v4392_v5  ;;  %986 = vmatpush.bf16.msra.mxu0 %v4320_v18 }
 0x2da   :  { %998 = vmatpush.bf16.msra.mxu1 %v4380_v58  ;;  %1024 = vmatpush.bf16.msra.mxu3 %v4453_v0 }
 0x2dc   :  { %1013 = vmatpush.bf16.msra.mxu2 %v4407_v19  ;;  %987 = vmatpush.bf16.msra.mxu0 %v4329_v23  ;;  %v3898_v19 = vld [vmem:[%s5031_s9 + $0x30] sm:$0xff] }
 0x2de   :  { %999 = vmatpush.bf16.msra.mxu1 %v4389_v1  ;;  %1025 = vmatpush.bf16.msra.mxu3 %v4457_v7 }
 0x2e0   :  { %1014 = vmatpush.bf16.msra.mxu2 %v4416_v29  ;;  %988 = vmatpush.bf16.msra.mxu0 %v4335_v27  ;;  %v3896_v29 = vld [vmem:[%s5031_s9 + $0x20] sm:$0xff] }
 0x2e2   :  { %1000 = vmatpush.bf16.msra.mxu1 %v4404_v15  ;;  %1026 = vmatpush.bf16.msra.mxu3 %v4461_v11  ;;  %v3899_v15 = vld [vmem:[%s5031_s9 + $0x38] sm:$0xff] }
 0x2e4   :  { %1015 = vmatpush.bf16.msra.mxu2 %v4425_v39  ;;  %989 = vmatpush.bf16.msra.mxu0 %v4344_v32  ;;  %v3894_v39 = vld [vmem:[%s5031_s9 + $0x10] sm:$0xff] }
 0x2e6   :  { %1001 = vmatpush.bf16.msra.mxu1 %v4413_v25  ;;  %1027 = vmatpush.bf16.msra.mxu3 %v4465_v16  ;;  %v3897_v25 = vld [vmem:[%s5031_s9 + $0x28] sm:$0xff] }
 0x2e8   :  { %1016 = vmatpush.bf16.msra.mxu2 %v4434_v49  ;;  %990 = vmatpush.bf16.msra.mxu0 %v4350_v38  ;;  %v3892_v49 = vld [vmem:[%s5031_s9] sm:$0xff] }
 0x2ea   :  { %1002 = vmatpush.bf16.msra.mxu1 %v4422_v35  ;;  %1028 = vmatpush.bf16.msra.mxu3 %v4469_v21  ;;  %v3895_v35 = vld [vmem:[%s5031_s9 + $0x18] sm:$0xff] }
 0x2ee   :  { %1003 = vmatpush.bf16.msra.mxu1 %v4431_v48  ;;  %1029 = vmatpush.bf16.msra.mxu3 %v4482_v34  ;;  %v3893_v48 = vld [vmem:[%s5031_s9 + $0x8] sm:$0xff] }
 0x348   :  { %v866_v6 = vpop.f32.mrf.mxu0 }
 0x34e   :  { %v879_v9 = vpop.f32.mrf.mxu1  ;;  %v892_v14 = vpop.f32.mrf.mxu2 }
 0x34f   :  { %v880_v18 = vadd.f32 %v879_v9, %v866_v6  ;;  %v3876_v6 = vld [vmem:[%s5029_s7] sm:$0xff]  ;;  %v3885_v9 = vld [vmem:[%s5029_s7 + $0x48] sm:$0xff] }
 0x350   :  { %v868_v23 = vpop.f32.mrf.mxu0 }
 0x351   :  { %v909_v27 = vadd.f32 %v880_v18, %v4601_v59 }
 0x353   :  { %4081 = vtanh.f32 %v909_v27 }
 0x354   :  { %v905_v32 = vpop.f32.mrf.mxu3 }
 0x355   :  { %v906_v41 = vadd.f32 %v905_v32, %v892_v14  ;;  %v3884_v14 = vld [vmem:[%s5029_s7 + $0x40] sm:$0xff] }
 0x356   :  { %v881_v46 = vpop.f32.mrf.mxu1  ;;  %v894_v38 = vpop.f32.mrf.mxu2 }
 0x357   :  { %v910_v50 = vadd.f32 %v906_v41, %v4599_v56 }
 0x359   :  { %v4082_v52 = vpop.eup %4081  ;;  %4083 = vtanh.f32 %v910_v50 }
 0x35a   :  { %v918_v58 = vpack.c.bf16 %v4082_v52, %v4082_v52 }
 0x35c   :  { %v907_v60 = vpop.f32.mrf.mxu3  ;;  %928 = vmatmul.bf16.vlgmr.msrb.gmra.mxu0 %v918_v58  ;;  %954 = vmatmul.bf16.vlgmr.msrb.gmra.mxu2 %v918_v58 }
 0x35d   :  { %1317 = vmatpush.bf16.msrb.mxu2 %v3899_v15  ;;  %1173 = vmatpush.bf16.msrb.mxu0 %v3883_v53  ;;  %v3901_v53 = vld [vmem:[#allocation11 + $0x14] sm:$0xf0] }
 0x35f   :  { %v4084_v1 = vpop.eup %4083 }
 0x360   :  { %v919_v5 = vpack.c.bf16 %v4084_v1, %v4084_v1 }
 0x361   :  { %1318 = vmatpush.bf16.msrb.mxu2 %v3898_v19  ;;  %1174 = vmatpush.bf16.msrb.mxu0 %v3882_v36  ;;  %v3224_v36 = vld [vmem:[#allocation11] sm:$0xf] }
 0x362   :  { %941 = vmatmul.bf16.vlgmr.msrb.gmra.mxu1 %v919_v5  ;;  %967 = vmatmul.bf16.vlgmr.msrb.gmra.mxu3 %v919_v5 }
 0x363   :  { %1186 = vmatpush.bf16.msrb.mxu1 %v3891_v43 }
 0x365   :  { %1319 = vmatpush.bf16.msrb.mxu2 %v3897_v25  ;;  %1175 = vmatpush.bf16.msrb.mxu0 %v3881_v33 }
 0x367   :  { %1187 = vmatpush.bf16.msrb.mxu1 %v3890_v44  ;;  %v3900_v44 = vld [vmem:[#allocation11 + $0x4] sm:$0xf0] }
 0x368   :  { %v3225_v33 = vor.u32 %v3900_v44, %v3224_v36 }
 0x369   :  { %1320 = vmatpush.bf16.msrb.mxu2 %v3896_v29  ;;  %1176 = vmatpush.bf16.msrb.mxu0 %v3880_v12 }
 0x36b   :  { %1188 = vmatpush.bf16.msrb.mxu1 %v3889_v13  ;;  %v3314_v13 = vld [vmem:[#allocation11 + $0x78] sm:$0xf0] }
 0x36d   :  { %1321 = vmatpush.bf16.msrb.mxu2 %v3895_v35  ;;  %1177 = vmatpush.bf16.msrb.mxu0 %v3879_v17  ;;  %v3304_v17 = vld [vmem:[#allocation11 + $0x60] sm:$0xf] }
 0x36f   :  { %1189 = vmatpush.bf16.msrb.mxu1 %v3888_v20  ;;  %v3921_v20 = vld [vmem:[#allocation11 + $0x64] sm:$0xf0] }
 0x371   :  { %1322 = vmatpush.bf16.msrb.mxu2 %v3894_v39 }
 0x373   :  { %1190 = vmatpush.bf16.msrb.mxu1 %v3887_v22  ;;  %v3920_v22 = vld [vmem:[#allocation11 + $0x64] sm:$0xf] }
 0x375   :  { %1323 = vmatpush.bf16.msrb.mxu2 %v3893_v48  ;;  %v3252_v48 = vld [vmem:[#allocation11 + $0x70] sm:$0xf] }
 0x377   :  { %1191 = vmatpush.bf16.msrb.mxu1 %v3886_v26  ;;  %v3305_v26 = vor.u32 %v3921_v20, %v3304_v17 }
 0x379   :  { %1324 = vmatpush.bf16.msrb.mxu2 %v3892_v49  ;;  %v3907_v49 = vld [vmem:[#allocation11 + $0x74] sm:$0xf0] }
 0x37b   :  { %1192 = vmatpush.bf16.msrb.mxu1 %v3885_v9  ;;  %v3296_v9 = vld [vmem:[#allocation11 + $0x50] sm:$0xf] }
 0x37f   :  { %1193 = vmatpush.bf16.msrb.mxu1 %v3884_v14  ;;  %v3919_v14 = vld [vmem:[#allocation11 + $0x54] sm:$0xf0] }
 0x3d9   :  { %v929_v51 = vpop.f32.mrf.mxu0 }
 0x3df   :  { %v942_v57 = vpop.f32.mrf.mxu1  ;;  %v955_v0 = vpop.f32.mrf.mxu2 }
 0x3e0   :  { %v943_v7 = vadd.f32 %v942_v57, %v929_v51  ;;  %v3248_v51 = vld [vmem:[#allocation11 + $0x60] sm:$0xf]  ;;  %v3906_v57 = vld [vmem:[#allocation11 + $0x64] sm:$0xf0] }
 0x3e1   :  { %v931_v11 = vpop.f32.mrf.mxu0 }
 0x3e2   :  { %v972_v16 = vadd.f32 %v943_v7, %v4613_v62  ;;  %v1218_v62 = vpop.permute.xlu2 %1217  ;;  %v3244_v7 = vld [vmem:[#allocation11 + $0x50] sm:$0xf]  ;;  %v3905_v11 = vld [vmem:[#allocation11 + $0x54] sm:$0xf0] }
 0x3e3   :  { %vm1231_vm10 = vcmp.eq.s32.totalorder %v4518_v40, %v1218_v62  ;;  %v3228_v62 = vld [vmem:[#allocation11 + $0x10] sm:$0xf] }
 0x3e4   :  { %4085 = vtanh.f32 %v972_v16  ;;  %v3245_v16 = vor.u32 %v3905_v11, %v3244_v7  ;;  %v3229_v43 = vor.u32 %v3901_v53, %v3228_v62  ;;  %v3272_v7 = vld [vmem:[#allocation11 + $0x20] sm:$0xf]  ;;  %v3913_v11 = vld [vmem:[#allocation11 + $0x24] sm:$0xf0]  ;;  %v3258_v62 = vld [vmem:[#allocation11 + $0x8] sm:$0xf0] }
 0x3e5   :  { %v968_v21 = vpop.f32.mrf.mxu3 }
 0x3e6   :  { %v969_v34 = vadd.f32 %v968_v21, %v955_v0  ;;  %v3249_v0 = vor.u32 %v3906_v57, %v3248_v51 }
 0x3e7   :  { %v944_v54 = vpop.f32.mrf.mxu1  ;;  %v957_v55 = vpop.f32.mrf.mxu2 }
 0x3e8   :  { %v973_v56 = vadd.f32 %v969_v34, %v4611_v61  ;;  %v1215_v61 = vpop.permute.xlu1 %1214  ;;  %v3240_v34 = vld [vmem:[#allocation11 + $0x40] sm:$0xf]  ;;  %v3904_v54 = vld [vmem:[#allocation11 + $0x44] sm:$0xf0] }
 0x3e9   :  { %vm1230_vm9 = vcmp.eq.s32.totalorder %v4518_v40, %v1215_v61  ;;  %v3241_v55 = vor.u32 %v3904_v54, %v3240_v34  ;;  %v3233_v61 = vor.u32 %v3902_v47, %v3232_v42  ;;  %v3274_v34 = vld [vmem:[#allocation11 + $0x28] sm:$0xf0]  ;;  %v3909_v42 = vld [vmem:[#allocation11 + $0x4] sm:$0xf0]  ;;  %v3908_v47 = vld [vmem:[#allocation11 + $0x4] sm:$0xf] }
 0x3ea   :  { %v4086_v59 = vpop.eup %4085  ;;  %4087 = vtanh.f32 %v973_v56  ;;  %vm3216_vm11 = vmpackc.low %vm1231_vm10, %vm1230_vm9  ;;  %v1227_v10 = vpop.permute.xlu2 %1226  ;;  %v3261_v53 = vor.u32 %v3908_v47, %v3258_v62 }
 0x3eb   :  { %v981_v28 = vpack.c.bf16 %v4086_v59, %v4086_v59  ;;  %vm1234_vm15 = vcmp.eq.s32.totalorder %v4518_v40, %v1227_v10  ;;  %v3922_v10 = vld [vmem:[#allocation11 + $0x74] sm:$0xf] }
 0x3ec   :  { %vm3220_vm0 = vmpackc.low %vm1234_vm15, %vm1234_vm15 }
 0x3ed   :  { %v970_v30 = vpop.f32.mrf.mxu3  ;;  %991 = vmatmul.bf16.vlgmr.msra.gmra.mxu0 %v981_v28  ;;  %1017 = vmatmul.bf16.vlgmr.msra.gmra.mxu2 %v981_v28 }
 0x3ee   :  { %v3236_v30 = vld [vmem:[#allocation11 + $0x30] sm:$0xf] }
 0x3f0   :  { %v4088_v31 = vpop.eup %4087  ;;  %v1224_v4 = vpop.permute.xlu1 %1223 }
 0x3f1   :  { %v982_v2 = vpack.c.bf16 %v4088_v31, %v4088_v31  ;;  %vm1233_vm12 = vcmp.eq.s32.totalorder %v4518_v40, %v1224_v4  ;;  %v3903_v31 = vld [vmem:[#allocation11 + $0x34] sm:$0xf0]  ;;  %v3312_v4 = vld [vmem:[#allocation11 + $0x70] sm:$0xf] }
 0x3f2   :  { %vm3218_vm14 = vmpackc.low %vm1233_vm12, %vm1232_vm13  ;;  %v3313_v12 = vor.u32 %v3923_v8, %v3312_v4  ;;  %v4822_v8 = vld [vmem:[%s5033_s11] ss:$0 sm:$0xff] }
 0x3f3   :  { %1004 = vmatmul.bf16.vlgmr.msra.gmra.mxu1 %v982_v2  ;;  %1030 = vmatmul.bf16.vlgmr.msra.gmra.mxu3 %v982_v2  ;;  %v3237_v2 = vor.u32 %v3903_v31, %v3236_v30  ;;  %v3266_v30 = vld [vmem:[#allocation11 + $0x18] sm:$0xf0] }
 0x3fd   :  { %3215 = vmatmul.msk.bf16.vlgmr.msrb.gmra.mxu2 %vm3214_vm8, %v4206_v45 }
 0x40d   :  { %3217 = vmatmul.msk.bf16.gmra.mxu2 %vm3216_vm11, %v4206_v45 }
 0x41d   :  { %3219 = vmatmul.msk.bf16.gmra.mxu2 %vm3218_vm14, %v4206_v45 }
 0x42d   :  { %3221 = vmatmul.msk.bf16.gmra.mxu2 %vm3220_vm0, %v4206_v45  ;;  %v3878_v45 = vld [vmem:[%s5029_s7 + $0x10] sm:$0xff] }
 0x42e   :  { %1178 = vmatpush.bf16.msrb.mxu0 %v3878_v45  ;;  %v3317_v45 = vor.u32 %v3922_v10, %v3314_v13 }
 0x430   :  { %1551 = vmatpush.bf16.msra.mxu1 %v3317_v45 }
 0x432   :  { %1179 = vmatpush.bf16.msrb.mxu0 %v3877_v24  ;;  %v3306_v24 = vld [vmem:[#allocation11 + $0x68] sm:$0xf0] }
 0x436   :  { %1180 = vmatpush.bf16.msrb.mxu0 %v3876_v6  ;;  %v3309_v6 = vor.u32 %v3920_v22, %v3306_v24 }
 0x438   :  { %1552 = vmatpush.bf16.msra.mxu1 %v3309_v6 }
 0x43a   :  { %1538 = vmatpush.bf16.msra.mxu0 %v3313_v12 }
 0x43e   :  { %1539 = vmatpush.bf16.msra.mxu0 %v3305_v26 }
 0x46a   :  { %v992_v18 = vpop.f32.mrf.mxu0 }
 0x470   :  { %v1005_v23 = vpop.f32.mrf.mxu1  ;;  %v1018_v27 = vpop.f32.mrf.mxu2 }
 0x471   :  { %v1006_v32 = vadd.f32 %v1005_v23, %v992_v18  ;;  %v3918_v18 = vld [vmem:[#allocation11 + $0x54] sm:$0xf]  ;;  %v3298_v23 = vld [vmem:[#allocation11 + $0x58] sm:$0xf0] }
 0x472   :  { %v994_v41 = vpop.f32.mrf.mxu0 }
 0x473   :  { %v1035_v46 = vadd.f32 %v1006_v32, %v4621_v3  ;;  %v3301_v32 = vor.u32 %v3918_v18, %v3298_v23  ;;  %v3288_v41 = vld [vmem:[#allocation11 + $0x40] sm:$0xf] }
 0x475   :  { %4089 = vtanh.f32 %v1035_v46  ;;  %v3917_v46 = vld [vmem:[#allocation11 + $0x44] sm:$0xf0]  ;;  %1553 = vmatpush.bf16.msra.mxu1 %v3301_v32 }
 0x476   :  { %v1031_v38 = vpop.f32.mrf.mxu3 }
 0x477   :  { %v1032_v50 = vadd.f32 %v1031_v38, %v1018_v27  ;;  %v3297_v27 = vor.u32 %v3919_v14, %v3296_v9  ;;  %v3916_v38 = vld [vmem:[#allocation11 + $0x44] sm:$0xf] }
 0x478   :  { %v1007_v52 = vpop.f32.mrf.mxu1  ;;  %v1020_v58 = vpop.f32.mrf.mxu2 }
 0x479   :  { %v1036_v60 = vadd.f32 %v1032_v50, %v4619_v63  ;;  %v3253_v63 = vor.u32 %v3907_v49, %v3252_v48  ;;  %v3290_v50 = vld [vmem:[#allocation11 + $0x48] sm:$0xf0]  ;;  %1540 = vmatpush.bf16.msra.mxu0 %v3297_v27  ;;  %v3289_v52 = vor.u32 %v3917_v46, %v3288_v41  ;;  %v4829_v41 = vshrl.u32 %v109_v37, 7 }
 0x47a   :  { %v3293_v58 = vor.u32 %v3916_v38, %v3290_v50 }
 0x47b   :  { %v4090_v1 = vpop.eup %4089  ;;  %4091 = vtanh.f32 %v1036_v60  ;;  %1425 = vmatpush.bf16.msrb.mxu3 %v3253_v63  ;;  %v3280_v60 = vld [vmem:[#allocation11 + $0x30] sm:$0xf]  ;;  %vm1583_vm3 = vcmp.eq.s32.totalorder %v4829_v41, 1 }
 0x47c   :  { %v1039_v5 = vpack.c.bf16 %v4090_v1, %v4090_v1  ;;  %v3915_v1 = vld [vmem:[#allocation11 + $0x34] sm:$0xf0]  ;;  %1554 = vmatpush.bf16.msra.mxu1 %v3293_v58 }
 0x47d   :  { %1541 = vmatpush.bf16.msra.mxu0 %v3289_v52 }
 0x47e   :  { %v1033_v15 = vpop.f32.mrf.mxu3  ;;  %1181 = vmatmul.bf16.vlgmr.msrb.gmra.mxu0 %v1039_v5  ;;  %v3914_v5 = vld [vmem:[#allocation11 + $0x34] sm:$0xf] }
 0x47f   :  { %1426 = vmatpush.bf16.msrb.mxu3 %v3249_v0  ;;  %v3282_v15 = vld [vmem:[#allocation11 + $0x38] sm:$0xf0] }
 0x480   :  { %v4813_v19 = vpop.f32.mrf.mxu2 }
 0x481   :  { %v4092_v25 = vpop.eup %4091 }
 0x482   :  { %v1040_v29 = vpack.c.bf16 %v4092_v25, %v4092_v25 }
 0x483   :  { %1427 = vmatpush.bf16.msrb.mxu3 %v3245_v16  ;;  %v3912_v16 = vld [vmem:[#allocation11 + $0x24] sm:$0xf] }
 0x484   :  { %1194 = vmatmul.bf16.vlgmr.msrb.gmra.mxu1 %v1040_v29  ;;  %v4063_v29 = vld [vmem:[%s5030_s8] ss:$0 sm:$0xff]  ;;  %v3277_v54 = vor.u32 %v3912_v16, %v3274_v34 }
 0x487   :  { %1428 = vmatpush.bf16.msrb.mxu3 %v3241_v55  ;;  %v3264_v55 = vld [vmem:[#allocation11 + $0x10] sm:$0xf] }
 0x488   :  { %v1328_v35 = vpop.f32.mrf.mxu2 }
 0x489   :  { %1601 = vst [vmem:[#allocation4] sm:$0xff] %v1328_v35  ;;  %v3281_v35 = vor.u32 %v3915_v1, %v3280_v60 }
 0x48b   :  { %1429 = vmatpush.bf16.msrb.mxu3 %v3237_v2  ;;  %1542 = vmatpush.bf16.msra.mxu0 %v3281_v35  ;;  %v3256_v2 = vld [vmem:[#allocation11] sm:$0xf] }
 0x48f   :  { %1430 = vmatpush.bf16.msrb.mxu3 %v3233_v61  ;;  %v3257_v61 = vor.u32 %v3909_v42, %v3256_v2 }
 0x490   :  { %v1331_v3 = vpop.f32.mrf.mxu2 }
 0x491   :  { %1347 = vst [vmem:[#allocation3 + $0x18] sm:$0xff] %v1331_v3  ;;  %v3285_v3 = vor.u32 %v3914_v5, %v3282_v15 }
 0x493   :  { %1431 = vmatpush.bf16.msrb.mxu3 %v3229_v43  ;;  %1555 = vmatpush.bf16.msra.mxu1 %v3285_v3 }
 0x497   :  { %1432 = vmatpush.bf16.msrb.mxu3 %v3225_v33  ;;  %1556 = vmatpush.bf16.msra.mxu1 %v3277_v54 }
 0x498   :  { %v1333_v39 = vpop.f32.mrf.mxu2 }
 0x499   :  { %1348 = vst [vmem:[#allocation3 + $0x10] sm:$0xff] %v1333_v39 }
 0x4a0   :  { %v1336_v21 = vpop.f32.mrf.mxu2 }
 0x4a1   :  { %1349 = vst [vmem:[#allocation3 + $0x8] sm:$0xff] %v1336_v21  ;;  %v3273_v21 = vor.u32 %v3913_v11, %v3272_v7 }
 0x4a3   :  { %1543 = vmatpush.bf16.msra.mxu0 %v3273_v21 }
 0x4a8   :  { %v1338_v56 = vpop.f32.mrf.mxu2 }
 0x4a9   :  { %1350 = vst [vmem:[#allocation3 + $0x20] sm:$0xff] %v1338_v56  ;;  %v3911_v56 = vld [vmem:[#allocation11 + $0x14] sm:$0xf0] }
 0x4b0   :  { %v1341_v59 = vpop.f32.mrf.mxu2 }
 0x4b1   :  { %1351 = vst [vmem:[#allocation3 + $0x28] sm:$0xff] %v1341_v59  ;;  %v3910_v59 = vld [vmem:[#allocation11 + $0x14] sm:$0xf] }
 0x4b2   :  { %v3269_v31 = vor.u32 %v3910_v59, %v3266_v30 }
 0x4b4   :  { %1557 = vmatpush.bf16.msra.mxu1 %v3269_v31 }
 0x4b8   :  { %v1343_v28 = vpop.f32.mrf.mxu2  ;;  %1558 = vmatpush.bf16.msra.mxu1 %v3261_v53 }
 0x4b9   :  { %v3265_v28 = vor.u32 %v3911_v56, %v3264_v55 }
 0x4bb   :  { %1544 = vmatpush.bf16.msra.mxu0 %v3265_v28 }
 0x4bf   :  { %1545 = vmatpush.bf16.msra.mxu0 %v3257_v61 }
 0x4fb   :  { %v1182_v25 = vpop.f32.mrf.mxu0 }
 0x4fc   :  { %v1183_v39 = vadd.f32 %v4063_v29, %v1182_v25 }
 0x501   :  { %v1195_v48 = vpop.f32.mrf.mxu1 }
 0x502   :  { %v1196_v49 = vadd.f32 %v1195_v48, %v1183_v39 }
 0x503   :  { %v1184_v51 = vpop.f32.mrf.mxu0 }
 0x504   :  { %4093 = vtanh.f32 %v1196_v49 }
 0x509   :  { %v1197_v63 = vpop.f32.mrf.mxu1 }
 0x50a   :  { %v4094_v57 = vpop.eup %4093 }
 0x50b   :  { %v1360_v0 = vpack.c.bf16 %v4094_v57, %v4094_v57 }
 0x50d   :  { %1433 = vmatmul.bf16.vlgmr.msrb.gmra.mxu3 %v1360_v0 }
 0x590   :  { %v1434_v43 = vpop.f32.mrf.mxu3 }
 0x591   :  { %v1439_v36 = vadd.f32 %v1434_v43, %v4813_v19 }
 0x593   :  { %4095 = vtanh.f32 %v1439_v36 }
 0x598   :  { %v1436_v44 = vpop.f32.mrf.mxu3 }
 0x599   :  { %v4096_v33 = vpop.eup %4095 }
 0x59a   :  { %v1441_v4 = vpack.c.bf16 %v4096_v33, %v4096_v33 }
 0x59c   :  { %1546 = vmatmul.bf16.vlgmr.msra.gmra.mxu0 %v1441_v4  ;;  %1559 = vmatmul.bf16.vlgmr.msra.gmra.mxu1 %v1441_v4 }
 0x619   :  { %v4824_v10 = vpop.f32.mrf.mxu0  ;;  %v1560_v12 = vpop.f32.mrf.mxu1 }
 0x61a   :  { %v1564_v13 = vadd.f32 %v4822_v8, %v1560_v12 }
 0x61c   :  { %1565 = vmax.xlane.f32.xlu0 %v1564_v13 }
 0x621   :  { %v1549_v17 = vpop.f32.mrf.mxu0  ;;  %v1562_v20 = vpop.f32.mrf.mxu1 }
 0x68f   :  { %v1566_v19 = vpop.xlane.xlu0 %1565 }
 0x690   :  { %vm1567_vm1 = vcmp.eq.f32.partialorder %v1564_v13, %v1566_v19 }
 0x691   :  { %v1568_v45 = vsel %vm1567_vm1, %v4518_v40, 128 }
 0x692   :  { %v1570_v22 = vshra.s32 %v1568_v45, 16  ;;  %v1569_v26 = vand.u32 65535, %v1568_v45 }
 0x694   :  { %v1572_v24 = vcvt.s32.f32 %v1570_v22  ;;  %v1571_v9 = vcvt.s32.f32 %v1569_v26 }
 0x696   :  { %1573 = vmin.xlane.f32.xlu1 %v1572_v24 }
 0x709   :  { %v1574_v6 = vpop.xlane.xlu1 %1573 }
 0x70a   :  { %vm1575_vm2 = vcmp.eq.f32.partialorder %v1572_v24, %v1574_v6  ;;  %v1580_v18 = vcvt.f32.s32 %v1574_v6 }
 0x70b   :  { %v1576_v14 = vsel %vm1575_vm2, %v1571_v9, inf }
 0x70c   :  { %1577 = vmin.xlane.f32.xlu2 %v1576_v14  ;;  %v1581_v27 = vshll.u32 %v1580_v18, 16 }
 0x77f   :  { %v1578_v23 = vpop.xlane.xlu2 %1577 }
 0x780   :  { %v1579_v32 = vcvt.f32.s32 %v1578_v23 }
 0x782   :  { %v1582_v46 = vadd.s32 %v1581_v27, %v1579_v32 }
 0x784   :  { %v1584_v38 = vcvt.s32.f32 %v1582_v46  ;;  %1606 = sbr.rel (%p3319_p0) target bundleno = 2095 (0x82f), region = 69 }
 0x786   :  { %v1586_v50 = vperm.slane %v1584_v38, %v4518_v40 }
 0x788   :  { %v4833_v52 = vsel %vm1583_vm3, %v1586_v50, 0.0 }
 0x789   :  { %v3931_v58 = vld [vmem:[%s5031_s9 + $0x38] sm:$0xff]  ;;  %v3930_v37 = vld [vmem:[%s5031_s9 + $0x30] sm:$0xff]  ;;  %v3929_v60 = vld [vmem:[%s5031_s9 + $0x28] sm:$0xff]  ;;  %vm1607_vm4 = vcmp.eq.s32.totalorder %v4518_v40, %v1582_v46  ;;  %v4207_v35 = vmov 1.0|1.0  }
 0x78a   :  { %1675 = vmatpush.bf16.msra.mxu0 %v3931_v58  ;;  %v3928_v1 = vld [vmem:[%s5031_s9 + $0x20] sm:$0xff]  ;;  %v3927_v5 = vld [vmem:[%s5031_s9 + $0x18] sm:$0xff]  ;;  %v3926_v15 = vld [vmem:[%s5031_s9 + $0x10] sm:$0xff] }
 0x78b   :  { %v3925_v25 = vld [vmem:[%s5031_s9 + $0x8] sm:$0xff]  ;;  %v3924_v29 = vld [vmem:[%s5031_s9] sm:$0xff]  ;;  %vm3353_vm5 = vmpackc.low %vm1607_vm4, %vm1607_vm4 }
 0x78e   :  { %1676 = vmatpush.bf16.msra.mxu0 %v3930_v37 }
 0x792   :  { %1677 = vmatpush.bf16.msra.mxu0 %v3929_v60 }
 0x796   :  { %1678 = vmatpush.bf16.msra.mxu0 %v3928_v1 }
 0x79a   :  { %1679 = vmatpush.bf16.msra.mxu0 %v3927_v5 }
 0x79e   :  { %1680 = vmatpush.bf16.msra.mxu0 %v3926_v15 }
 0x7a2   :  { %1681 = vmatpush.bf16.msra.mxu0 %v3925_v25 }
 0x7a6   :  { %1682 = vmatpush.bf16.msra.mxu0 %v3924_v29 }
 0x7a9   :  { %3354 = vmatmul.msk.bf16.vlgmr.msra.gmra.mxu0 %vm3353_vm5, %v4207_v35 }
 0x826   :  { %v1684_v3 = vpop.f32.mrf.mxu0 }
 0x827   :  { %1688 = vst [vmem:[#allocation4] sm:$0xff] %v1684_v3 }
 0x82e   :  { %v1686_v39 = vpop.f32.mrf.mxu0 }
 0x82f PF:  { %v3946_v48 = vld [vmem:[#allocation11 + $0x74] sm:$0xf]  ;;  %v3415_v49 = vld [vmem:[#allocation11 + $0x78] sm:$0xf0]  ;;  %v3944_v51 = vld [vmem:[#allocation11 + $0x64] sm:$0xf] }
 0x830   :  { %v3418_v63 = vor.u32 %v3946_v48, %v3415_v49  ;;  %v3407_v57 = vld [vmem:[#allocation11 + $0x68] sm:$0xf0]  ;;  %v3942_v7 = vld [vmem:[#allocation11 + $0x54] sm:$0xf]  ;;  %v3399_v11 = vld [vmem:[#allocation11 + $0x58] sm:$0xf0] }
 0x831   :  { %v3410_v0 = vor.u32 %v3944_v51, %v3407_v57  ;;  %v1689_v16 = vld [vmem:[#allocation4] sm:$0xff]  ;;  %v3402_v34 = vor.u32 %v3942_v7, %v3399_v11  ;;  %v3940_v54 = vld [vmem:[#allocation11 + $0x44] sm:$0xf]  ;;  %v3391_v55 = vld [vmem:[#allocation11 + $0x48] sm:$0xf0]  ;;  %s3419_s5 = sld [smem:[#allocation5 + $0x2]] }
 0x832   :  { %1802 = vmatpush.bf16.msra.mxu1 %v3418_v63  ;;  %v1846_v21 = vld [vmem:[#allocation3 + $0x18] sm:$0xff]  ;;  %v3394_v56 = vor.u32 %v3940_v54, %v3391_v55  ;;  %v3938_v59 = vld [vmem:[#allocation11 + $0x34] sm:$0xf]  ;;  %v3936_v31 = vld [vmem:[#allocation11 + $0x24] sm:$0xf]  ;;  %v1690_v42 = vadd.f32 %v1689_v16, %v4824_v10  ;;  %vm1834_vm8 = vcmp.eq.s32.totalorder %v4829_v41, 2 }
 0x833   :  { %1847 = vst [vmem:[#allocation4] sm:$0xff] %v1846_v21  ;;  %v3383_v28 = vld [vmem:[#allocation11 + $0x38] sm:$0xf0]  ;;  %v3375_v2 = vld [vmem:[#allocation11 + $0x28] sm:$0xf0] }
 0x834   :  { %v3386_v30 = vor.u32 %v3938_v59, %v3383_v28  ;;  %v3378_v47 = vor.u32 %v3936_v31, %v3375_v2  ;;  %v3934_v61 = vld [vmem:[#allocation11 + $0x14] sm:$0xf]  ;;  %v3367_v62 = vld [vmem:[#allocation11 + $0x18] sm:$0xf0]  ;;  %4097 = vtanh.f32 %v1690_v42  ;;  %v3932_v43 = vld [vmem:[#allocation11 + $0x4] sm:$0xf] }
 0x835   :  { %v3370_v53 = vor.u32 %v3934_v61, %v3367_v62  ;;  %v3359_v36 = vld [vmem:[#allocation11 + $0x8] sm:$0xf0]  ;;  %v3413_v17 = vld [vmem:[#allocation11 + $0x70] sm:$0xf]  ;;  %v3947_v20 = vld [vmem:[#allocation11 + $0x74] sm:$0xf0] }
 0x836   :  { %1803 = vmatpush.bf16.msra.mxu1 %v3410_v0  ;;  %v3362_v33 = vor.u32 %v3932_v43, %v3359_v36  ;;  %v3405_v19 = vld [vmem:[#allocation11 + $0x60] sm:$0xf]  ;;  %v3414_v45 = vor.u32 %v3947_v20, %v3413_v17  ;;  %v3945_v22 = vld [vmem:[#allocation11 + $0x64] sm:$0xf0]  ;;  %v3397_v26 = vld [vmem:[#allocation11 + $0x50] sm:$0xf] }
 0x837   :  { %v3406_v24 = vor.u32 %v3945_v22, %v3405_v19  ;;  %v3943_v6 = vld [vmem:[#allocation11 + $0x54] sm:$0xf0]  ;;  %v3389_v14 = vld [vmem:[#allocation11 + $0x40] sm:$0xf]  ;;  %v3941_v18 = vld [vmem:[#allocation11 + $0x44] sm:$0xf0] }
 0x838   :  { %1789 = vmatpush.bf16.msra.mxu0 %v3414_v45  ;;  %v3398_v9 = vor.u32 %v3943_v6, %v3397_v26  ;;  %v3390_v23 = vor.u32 %v3941_v18, %v3389_v14  ;;  %v3381_v27 = vld [vmem:[#allocation11 + $0x30] sm:$0xf]  ;;  %v3939_v32 = vld [vmem:[#allocation11 + $0x34] sm:$0xf0]  ;;  %v3373_v38 = vld [vmem:[#allocation11 + $0x20] sm:$0xf] }
 0x839   :  { %v3382_v46 = vor.u32 %v3939_v32, %v3381_v27  ;;  %v3937_v50 = vld [vmem:[#allocation11 + $0x24] sm:$0xf0]  ;;  %v3365_v37 = vld [vmem:[#allocation11 + $0x10] sm:$0xf]  ;;  %v3935_v60 = vld [vmem:[#allocation11 + $0x14] sm:$0xf0] }
 0x83a   :  { %1804 = vmatpush.bf16.msra.mxu1 %v3402_v34  ;;  %v4098_v44 = vpop.eup %4097  ;;  %v3374_v58 = vor.u32 %v3937_v50, %v3373_v38  ;;  %v3366_v1 = vor.u32 %v3935_v60, %v3365_v37  ;;  %v3357_v5 = vld [vmem:[#allocation11] sm:$0xf]  ;;  %v3933_v15 = vld [vmem:[#allocation11 + $0x4] sm:$0xf0]  ;;  %p3420_p1 = scmp.ne.s32.totalorder %s3419_s5, 0 }
 0x83b   :  { %v1692_v4 = vpack.c.bf16 %v4098_v44, %v4098_v44  ;;  %v3358_v35 = vor.u32 %v3933_v15, %v3357_v5 }
 0x83c   :  { %1790 = vmatpush.bf16.msra.mxu0 %v3406_v24 }
 0x83e   :  { %1805 = vmatpush.bf16.msra.mxu1 %v3394_v56 }
 0x840   :  { %1791 = vmatpush.bf16.msra.mxu0 %v3398_v9 }
 0x842   :  { %1806 = vmatpush.bf16.msra.mxu1 %v3386_v30 }
 0x844   :  { %1792 = vmatpush.bf16.msra.mxu0 %v3390_v23 }
 0x846   :  { %1807 = vmatpush.bf16.msra.mxu1 %v3378_v47 }
 0x848   :  { %1793 = vmatpush.bf16.msra.mxu0 %v3382_v46 }
 0x84a   :  { %1808 = vmatpush.bf16.msra.mxu1 %v3370_v53 }
 0x84c   :  { %1794 = vmatpush.bf16.msra.mxu0 %v3374_v58 }
 0x84e   :  { %1809 = vmatpush.bf16.msra.mxu1 %v3362_v33 }
 0x850   :  { %1795 = vmatpush.bf16.msra.mxu0 %v3366_v1 }
 0x851   :  { %1810 = vmatmul.bf16.vlgmr.msra.gmra.mxu1 %v1692_v4 }
 0x854   :  { %1796 = vmatpush.bf16.msra.mxu0 %v3358_v35 }
 0x857   :  { %1797 = vmatmul.bf16.vlgmr.msra.gmra.mxu0 %v1692_v4 }
 0x8ce   :  { %v1811_v12 = vpop.f32.mrf.mxu1 }
 0x8cf   :  { %v1815_v13 = vadd.f32 %v4822_v8, %v1811_v12 }
 0x8d1   :  { %1816 = vmax.xlane.f32.xlu0 %v1815_v13 }
 0x8d4   :  { %v1798_v57 = vpop.f32.mrf.mxu0 }
 0x8d6   :  { %v1813_v10 = vpop.f32.mrf.mxu1 }
 0x8dc   :  { %v1800_v0 = vpop.f32.mrf.mxu0 }
 0x944   :  { %v1817_v25 = vpop.xlane.xlu0 %1816 }
 0x945   :  { %vm1818_vm6 = vcmp.eq.f32.partialorder %v1815_v13, %v1817_v25 }
 0x946   :  { %v1819_v29 = vsel %vm1818_vm6, %v4518_v40, 128 }
 0x947   :  { %v1821_v3 = vshra.s32 %v1819_v29, 16  ;;  %v1820_v48 = vand.u32 65535, %v1819_v29 }
 0x949   :  { %v1823_v39 = vcvt.s32.f32 %v1821_v3  ;;  %v1822_v51 = vcvt.s32.f32 %v1820_v48 }
 0x94b   :  { %1824 = vmin.xlane.f32.xlu0 %v1823_v39 }
 0x9be   :  { %v1825_v49 = vpop.xlane.xlu0 %1824 }
 0x9bf   :  { %vm1826_vm7 = vcmp.eq.f32.partialorder %v1823_v39, %v1825_v49  ;;  %v1831_v7 = vcvt.f32.s32 %v1825_v49 }
 0x9c0   :  { %v1827_v63 = vsel %vm1826_vm7, %v1822_v51, inf }
 0x9c1   :  { %1828 = vmin.xlane.f32.xlu1 %v1827_v63  ;;  %v1832_v16 = vshll.u32 %v1831_v7, 16 }
 0xa34   :  { %v1829_v11 = vpop.xlane.xlu1 %1828 }
 0xa35   :  { %v1830_v21 = vcvt.f32.s32 %v1829_v11 }
 0xa37   :  { %v1833_v34 = vadd.s32 %v1832_v16, %v1830_v21 }
 0xa39   :  { %v1835_v54 = vcvt.s32.f32 %v1833_v34  ;;  %1852 = sbr.rel (%p3420_p1) target bundleno = 2788 (0xae4), region = 73 }
 0xa3b   :  { %v1837_v55 = vperm.slane %v1835_v54, %v4518_v40 }
 0xa3d   :  { %v4866_v56 = vsel %vm1834_vm8, %v1837_v55, %v4833_v52 }
 0xa3e   :  { %v3955_v59 = vld [vmem:[%s5031_s9 + $0x38] sm:$0xff]  ;;  %v3954_v28 = vld [vmem:[%s5031_s9 + $0x30] sm:$0xff]  ;;  %v3953_v30 = vld [vmem:[%s5031_s9 + $0x28] sm:$0xff]  ;;  %vm1853_vm9 = vcmp.eq.s32.totalorder %v4518_v40, %v1833_v34  ;;  %v4208_v61 = vmov 1.0|1.0  }
 0xa3f   :  { %1921 = vmatpush.bf16.msra.mxu0 %v3955_v59  ;;  %v3952_v52 = vld [vmem:[%s5031_s9 + $0x20] sm:$0xff]  ;;  %v3951_v31 = vld [vmem:[%s5031_s9 + $0x18] sm:$0xff]  ;;  %v3950_v2 = vld [vmem:[%s5031_s9 + $0x10] sm:$0xff] }
 0xa40   :  { %v3949_v42 = vld [vmem:[%s5031_s9 + $0x8] sm:$0xff]  ;;  %v3948_v47 = vld [vmem:[%s5031_s9] sm:$0xff]  ;;  %vm3454_vm10 = vmpackc.low %vm1853_vm9, %vm1853_vm9 }
 0xa43   :  { %1922 = vmatpush.bf16.msra.mxu0 %v3954_v28 }
 0xa47   :  { %1923 = vmatpush.bf16.msra.mxu0 %v3953_v30 }
 0xa4b   :  { %1924 = vmatpush.bf16.msra.mxu0 %v3952_v52 }
 0xa4f   :  { %1925 = vmatpush.bf16.msra.mxu0 %v3951_v31 }
 0xa53   :  { %1926 = vmatpush.bf16.msra.mxu0 %v3950_v2 }
 0xa57   :  { %1927 = vmatpush.bf16.msra.mxu0 %v3949_v42 }
 0xa5b   :  { %1928 = vmatpush.bf16.msra.mxu0 %v3948_v47 }
 0xa5e   :  { %3455 = vmatmul.msk.bf16.vlgmr.msra.gmra.mxu0 %vm3454_vm10, %v4208_v61 }
 0xadb   :  { %v1930_v62 = vpop.f32.mrf.mxu0 }
 0xadc   :  { %1934 = vst [vmem:[#allocation4] sm:$0xff] %v1930_v62 }
 0xae3   :  { %v1932_v53 = vpop.f32.mrf.mxu0 }
 0xae4 PF:  { %v3970_v43 = vld [vmem:[#allocation11 + $0x74] sm:$0xf]  ;;  %v3516_v36 = vld [vmem:[#allocation11 + $0x78] sm:$0xf0]  ;;  %v3968_v44 = vld [vmem:[#allocation11 + $0x64] sm:$0xf] }
 0xae5   :  { %v3519_v33 = vor.u32 %v3970_v43, %v3516_v36  ;;  %v3508_v4 = vld [vmem:[#allocation11 + $0x68] sm:$0xf0]  ;;  %v3966_v13 = vld [vmem:[#allocation11 + $0x54] sm:$0xf]  ;;  %v3500_v10 = vld [vmem:[#allocation11 + $0x58] sm:$0xf0] }
 0xae6   :  { %v3511_v12 = vor.u32 %v3968_v44, %v3508_v4  ;;  %v1935_v17 = vld [vmem:[#allocation4] sm:$0xff]  ;;  %v2092_v20 = vld [vmem:[#allocation3 + $0x10] sm:$0xff]  ;;  %v3503_v19 = vor.u32 %v3966_v13, %v3500_v10  ;;  %v3964_v45 = vld [vmem:[#allocation11 + $0x44] sm:$0xf]  ;;  %s3520_s14 = sld [smem:[#allocation5 + $0x3]]  ;;  %vm2080_vm13 = vcmp.eq.s32.totalorder %v4829_v41, 3 }
 0xae7   :  { %2048 = vmatpush.bf16.msra.mxu1 %v3519_v33  ;;  %2093 = vst [vmem:[#allocation4] sm:$0xff] %v2092_v20  ;;  %v3492_v22 = vld [vmem:[#allocation11 + $0x48] sm:$0xf0]  ;;  %v3962_v26 = vld [vmem:[#allocation11 + $0x34] sm:$0xf]  ;;  %v1936_v23 = vadd.f32 %v1935_v17, %v1798_v57 }
 0xae8   :  { %v3495_v24 = vor.u32 %v3964_v45, %v3492_v22  ;;  %v3484_v6 = vld [vmem:[#allocation11 + $0x38] sm:$0xf0]  ;;  %v3960_v14 = vld [vmem:[#allocation11 + $0x24] sm:$0xf]  ;;  %v3476_v18 = vld [vmem:[#allocation11 + $0x28] sm:$0xf0] }
 0xae9   :  { %v3487_v9 = vor.u32 %v3962_v26, %v3484_v6  ;;  %v3479_v27 = vor.u32 %v3960_v14, %v3476_v18  ;;  %v3958_v32 = vld [vmem:[#allocation11 + $0x14] sm:$0xf]  ;;  %v3468_v46 = vld [vmem:[#allocation11 + $0x18] sm:$0xf0]  ;;  %4099 = vtanh.f32 %v1936_v23  ;;  %v3956_v50 = vld [vmem:[#allocation11 + $0x4] sm:$0xf] }
 0xaea   :  { %v3471_v38 = vor.u32 %v3958_v32, %v3468_v46  ;;  %v3460_v58 = vld [vmem:[#allocation11 + $0x8] sm:$0xf0]  ;;  %v3514_v29 = vld [vmem:[#allocation11 + $0x70] sm:$0xf]  ;;  %v3971_v35 = vld [vmem:[#allocation11 + $0x74] sm:$0xf0] }
 0xaeb   :  { %2049 = vmatpush.bf16.msra.mxu1 %v3511_v12  ;;  %v3463_v60 = vor.u32 %v3956_v50, %v3460_v58  ;;  %v3506_v3 = vld [vmem:[#allocation11 + $0x60] sm:$0xf]  ;;  %v3515_v39 = vor.u32 %v3971_v35, %v3514_v29  ;;  %v3969_v48 = vld [vmem:[#allocation11 + $0x64] sm:$0xf0]  ;;  %v3498_v51 = vld [vmem:[#allocation11 + $0x50] sm:$0xf] }
 0xaec   :  { %v3507_v49 = vor.u32 %v3969_v48, %v3506_v3  ;;  %v3967_v63 = vld [vmem:[#allocation11 + $0x54] sm:$0xf0]  ;;  %v3490_v0 = vld [vmem:[#allocation11 + $0x40] sm:$0xf]  ;;  %v3965_v7 = vld [vmem:[#allocation11 + $0x44] sm:$0xf0] }
 0xaed   :  { %2035 = vmatpush.bf16.msra.mxu0 %v3515_v39  ;;  %v3499_v57 = vor.u32 %v3967_v63, %v3498_v51  ;;  %v3491_v11 = vor.u32 %v3965_v7, %v3490_v0  ;;  %v3482_v16 = vld [vmem:[#allocation11 + $0x30] sm:$0xf]  ;;  %v3963_v21 = vld [vmem:[#allocation11 + $0x34] sm:$0xf0]  ;;  %v3474_v54 = vld [vmem:[#allocation11 + $0x20] sm:$0xf] }
 0xaee   :  { %v3483_v34 = vor.u32 %v3963_v21, %v3482_v16  ;;  %v3961_v55 = vld [vmem:[#allocation11 + $0x24] sm:$0xf0]  ;;  %v3466_v28 = vld [vmem:[#allocation11 + $0x10] sm:$0xf]  ;;  %v3959_v30 = vld [vmem:[#allocation11 + $0x14] sm:$0xf0] }
 0xaef   :  { %2050 = vmatpush.bf16.msra.mxu1 %v3503_v19  ;;  %v4100_v37 = vpop.eup %4099  ;;  %v3475_v59 = vor.u32 %v3961_v55, %v3474_v54  ;;  %v3467_v52 = vor.u32 %v3959_v30, %v3466_v28  ;;  %v3458_v31 = vld [vmem:[#allocation11] sm:$0xf]  ;;  %v3957_v2 = vld [vmem:[#allocation11 + $0x4] sm:$0xf0]  ;;  %p3521_p2 = scmp.ne.s32.totalorder %s3520_s14, 0 }
 0xaf0   :  { %v1938_v1 = vpack.c.bf16 %v4100_v37, %v4100_v37  ;;  %v3459_v61 = vor.u32 %v3957_v2, %v3458_v31 }
 0xaf1   :  { %2036 = vmatpush.bf16.msra.mxu0 %v3507_v49 }
 0xaf3   :  { %2051 = vmatpush.bf16.msra.mxu1 %v3495_v24 }
 0xaf5   :  { %2037 = vmatpush.bf16.msra.mxu0 %v3499_v57 }
 0xaf7   :  { %2052 = vmatpush.bf16.msra.mxu1 %v3487_v9 }
 0xaf9   :  { %2038 = vmatpush.bf16.msra.mxu0 %v3491_v11 }
 0xafb   :  { %2053 = vmatpush.bf16.msra.mxu1 %v3479_v27 }
 0xafd   :  { %2039 = vmatpush.bf16.msra.mxu0 %v3483_v34 }
 0xaff   :  { %2054 = vmatpush.bf16.msra.mxu1 %v3471_v38 }
 0xb01   :  { %2040 = vmatpush.bf16.msra.mxu0 %v3475_v59 }
 0xb03   :  { %2055 = vmatpush.bf16.msra.mxu1 %v3463_v60 }
 0xb05   :  { %2041 = vmatpush.bf16.msra.mxu0 %v3467_v52 }
 0xb06   :  { %2056 = vmatmul.bf16.vlgmr.msra.gmra.mxu1 %v1938_v1 }
 0xb09   :  { %2042 = vmatpush.bf16.msra.mxu0 %v3459_v61 }
 0xb0c   :  { %2043 = vmatmul.bf16.vlgmr.msra.gmra.mxu0 %v1938_v1 }
 0xb83   :  { %v2057_v5 = vpop.f32.mrf.mxu1 }
 0xb84   :  { %v2061_v15 = vadd.f32 %v4822_v8, %v2057_v5 }
 0xb86   :  { %2062 = vmax.xlane.f32.xlu0 %v2061_v15 }
 0xb89   :  { %v2044_v4 = vpop.f32.mrf.mxu0 }
 0xb8b   :  { %v2059_v25 = vpop.f32.mrf.mxu1 }
 0xb91   :  { %v2046_v12 = vpop.f32.mrf.mxu0 }
 0xbf9   :  { %v2063_v42 = vpop.xlane.xlu0 %2062 }
 0xbfa   :  { %vm2064_vm11 = vcmp.eq.f32.partialorder %v2061_v15, %v2063_v42 }
 0xbfb   :  { %v2065_v47 = vsel %vm2064_vm11, %v4518_v40, 128 }
 0xbfc   :  { %v2067_v62 = vshra.s32 %v2065_v47, 16  ;;  %v2066_v43 = vand.u32 65535, %v2065_v47 }
 0xbfe   :  { %v2069_v53 = vcvt.s32.f32 %v2067_v62  ;;  %v2068_v44 = vcvt.s32.f32 %v2066_v43 }
 0xc00   :  { %2070 = vmin.xlane.f32.xlu0 %v2069_v53 }
 0xc73   :  { %v2071_v36 = vpop.xlane.xlu0 %2070 }
 0xc74   :  { %vm2072_vm12 = vcmp.eq.f32.partialorder %v2069_v53, %v2071_v36  ;;  %v2077_v13 = vcvt.f32.s32 %v2071_v36 }
 0xc75   :  { %v2073_v33 = vsel %vm2072_vm12, %v2068_v44, inf }
 0xc76   :  { %2074 = vmin.xlane.f32.xlu1 %v2073_v33  ;;  %v2078_v17 = vshll.u32 %v2077_v13, 16 }
 0xce9   :  { %v2075_v10 = vpop.xlane.xlu1 %2074 }
 0xcea   :  { %v2076_v20 = vcvt.f32.s32 %v2075_v10 }
 0xcec   :  { %v2079_v19 = vadd.s32 %v2078_v17, %v2076_v20 }
 0xcee   :  { %v2081_v45 = vcvt.s32.f32 %v2079_v19  ;;  %2098 = sbr.rel (%p3521_p2) target bundleno = 3481 (0xd99), region = 77 }
 0xcf0   :  { %v2083_v22 = vperm.slane %v2081_v45, %v4518_v40 }
 0xcf2   :  { %v4898_v24 = vsel %vm2080_vm13, %v2083_v22, %v4866_v56 }
 0xcf3   :  { %v3979_v26 = vld [vmem:[%s5031_s9 + $0x38] sm:$0xff]  ;;  %v3978_v6 = vld [vmem:[%s5031_s9 + $0x30] sm:$0xff]  ;;  %v3977_v9 = vld [vmem:[%s5031_s9 + $0x28] sm:$0xff]  ;;  %vm2099_vm14 = vcmp.eq.s32.totalorder %v4518_v40, %v2079_v19  ;;  %v4209_v32 = vmov 1.0|1.0  }
 0xcf4   :  { %2167 = vmatpush.bf16.msra.mxu0 %v3979_v26  ;;  %v3976_v56 = vld [vmem:[%s5031_s9 + $0x20] sm:$0xff]  ;;  %v3975_v14 = vld [vmem:[%s5031_s9 + $0x18] sm:$0xff]  ;;  %v3974_v18 = vld [vmem:[%s5031_s9 + $0x10] sm:$0xff] }
 0xcf5   :  { %v3973_v23 = vld [vmem:[%s5031_s9 + $0x8] sm:$0xff]  ;;  %v3972_v27 = vld [vmem:[%s5031_s9] sm:$0xff]  ;;  %vm3555_vm15 = vmpackc.low %vm2099_vm14, %vm2099_vm14 }
 0xcf8   :  { %2168 = vmatpush.bf16.msra.mxu0 %v3978_v6 }
 0xcfc   :  { %2169 = vmatpush.bf16.msra.mxu0 %v3977_v9 }
 0xd00   :  { %2170 = vmatpush.bf16.msra.mxu0 %v3976_v56 }
 0xd04   :  { %2171 = vmatpush.bf16.msra.mxu0 %v3975_v14 }
 0xd08   :  { %2172 = vmatpush.bf16.msra.mxu0 %v3974_v18 }
 0xd0c   :  { %2173 = vmatpush.bf16.msra.mxu0 %v3973_v23 }
 0xd10   :  { %2174 = vmatpush.bf16.msra.mxu0 %v3972_v27 }
 0xd13   :  { %3556 = vmatmul.msk.bf16.vlgmr.msra.gmra.mxu0 %vm3555_vm15, %v4209_v32 }
 0xd90   :  { %v2176_v46 = vpop.f32.mrf.mxu0 }
 0xd91   :  { %2180 = vst [vmem:[#allocation4] sm:$0xff] %v2176_v46 }
 0xd98   :  { %v2178_v38 = vpop.f32.mrf.mxu0 }
 0xd99 PF:  { %v3994_v50 = vld [vmem:[#allocation11 + $0x74] sm:$0xf]  ;;  %v3617_v58 = vld [vmem:[#allocation11 + $0x78] sm:$0xf0]  ;;  %v3992_v37 = vld [vmem:[#allocation11 + $0x64] sm:$0xf] }
 0xd9a   :  { %v3620_v60 = vor.u32 %v3994_v50, %v3617_v58  ;;  %v3609_v1 = vld [vmem:[#allocation11 + $0x68] sm:$0xf0]  ;;  %v3990_v15 = vld [vmem:[#allocation11 + $0x54] sm:$0xf]  ;;  %v3601_v25 = vld [vmem:[#allocation11 + $0x58] sm:$0xf0] }
 0xd9b   :  { %v3612_v5 = vor.u32 %v3992_v37, %v3609_v1  ;;  %v2181_v29 = vld [vmem:[#allocation4] sm:$0xff]  ;;  %v2338_v35 = vld [vmem:[#allocation3 + $0x8] sm:$0xff]  ;;  %v3604_v3 = vor.u32 %v3990_v15, %v3601_v25  ;;  %v3988_v39 = vld [vmem:[#allocation11 + $0x44] sm:$0xf]  ;;  %s3621_s27 = sld [smem:[#allocation5 + $0x4]]  ;;  %vm2326_vm2 = vcmp.eq.s32.totalorder %v4829_v41, 4 }
 0xd9c   :  { %2294 = vmatpush.bf16.msra.mxu1 %v3620_v60  ;;  %2339 = vst [vmem:[#allocation4] sm:$0xff] %v2338_v35  ;;  %v3593_v48 = vld [vmem:[#allocation11 + $0x48] sm:$0xf0]  ;;  %v3986_v51 = vld [vmem:[#allocation11 + $0x34] sm:$0xf]  ;;  %v2182_v11 = vadd.f32 %v2181_v29, %v2044_v4 }
 0xd9d   :  { %v3596_v49 = vor.u32 %v3988_v39, %v3593_v48  ;;  %v3585_v63 = vld [vmem:[#allocation11 + $0x38] sm:$0xf0]  ;;  %v3984_v0 = vld [vmem:[#allocation11 + $0x24] sm:$0xf]  ;;  %v3577_v7 = vld [vmem:[#allocation11 + $0x28] sm:$0xf0] }
 0xd9e   :  { %v3588_v57 = vor.u32 %v3986_v51, %v3585_v63  ;;  %v3580_v16 = vor.u32 %v3984_v0, %v3577_v7  ;;  %v3982_v21 = vld [vmem:[#allocation11 + $0x14] sm:$0xf]  ;;  %v3569_v34 = vld [vmem:[#allocation11 + $0x18] sm:$0xf0]  ;;  %4101 = vtanh.f32 %v2182_v11  ;;  %v3980_v55 = vld [vmem:[#allocation11 + $0x4] sm:$0xf] }
 0xd9f   :  { %v3572_v54 = vor.u32 %v3982_v21, %v3569_v34  ;;  %v3561_v59 = vld [vmem:[#allocation11 + $0x8] sm:$0xf0]  ;;  %v3615_v47 = vld [vmem:[#allocation11 + $0x70] sm:$0xf]  ;;  %v3995_v61 = vld [vmem:[#allocation11 + $0x74] sm:$0xf0] }
 0xda0   :  { %2295 = vmatpush.bf16.msra.mxu1 %v3612_v5  ;;  %v3564_v30 = vor.u32 %v3980_v55, %v3561_v59  ;;  %v3607_v62 = vld [vmem:[#allocation11 + $0x60] sm:$0xf]  ;;  %v3616_v53 = vor.u32 %v3995_v61, %v3615_v47  ;;  %v3993_v43 = vld [vmem:[#allocation11 + $0x64] sm:$0xf0]  ;;  %v3599_v44 = vld [vmem:[#allocation11 + $0x50] sm:$0xf] }
 0xda1   :  { %v3608_v36 = vor.u32 %v3993_v43, %v3607_v62  ;;  %v3991_v33 = vld [vmem:[#allocation11 + $0x54] sm:$0xf0]  ;;  %v3591_v12 = vld [vmem:[#allocation11 + $0x40] sm:$0xf]  ;;  %v3989_v13 = vld [vmem:[#allocation11 + $0x44] sm:$0xf0] }
 0xda2   :  { %2281 = vmatpush.bf16.msra.mxu0 %v3616_v53  ;;  %v3600_v4 = vor.u32 %v3991_v33, %v3599_v44  ;;  %v3592_v10 = vor.u32 %v3989_v13, %v3591_v12  ;;  %v3583_v17 = vld [vmem:[#allocation11 + $0x30] sm:$0xf]  ;;  %v3987_v20 = vld [vmem:[#allocation11 + $0x34] sm:$0xf0]  ;;  %v3575_v45 = vld [vmem:[#allocation11 + $0x20] sm:$0xf] }
 0xda3   :  { %v3584_v19 = vor.u32 %v3987_v20, %v3583_v17  ;;  %v3985_v22 = vld [vmem:[#allocation11 + $0x24] sm:$0xf0]  ;;  %v3567_v6 = vld [vmem:[#allocation11 + $0x10] sm:$0xf]  ;;  %v3983_v9 = vld [vmem:[#allocation11 + $0x14] sm:$0xf0] }
 0xda4   :  { %2296 = vmatpush.bf16.msra.mxu1 %v3604_v3  ;;  %v4102_v28 = vpop.eup %4101  ;;  %v3576_v26 = vor.u32 %v3985_v22, %v3575_v45  ;;  %v3568_v56 = vor.u32 %v3983_v9, %v3567_v6  ;;  %v3559_v14 = vld [vmem:[#allocation11] sm:$0xf]  ;;  %v3981_v18 = vld [vmem:[#allocation11 + $0x4] sm:$0xf0]  ;;  %p3622_p3 = scmp.ne.s32.totalorder %s3621_s27, 0 }
 0xda5   :  { %v2184_v52 = vpack.c.bf16 %v4102_v28, %v4102_v28  ;;  %v3560_v32 = vor.u32 %v3981_v18, %v3559_v14 }
 0xda6   :  { %2282 = vmatpush.bf16.msra.mxu0 %v3608_v36 }
 0xda8   :  { %2297 = vmatpush.bf16.msra.mxu1 %v3596_v49 }
 0xdaa   :  { %2283 = vmatpush.bf16.msra.mxu0 %v3600_v4 }
 0xdac   :  { %2298 = vmatpush.bf16.msra.mxu1 %v3588_v57 }
 0xdae   :  { %2284 = vmatpush.bf16.msra.mxu0 %v3592_v10 }
 0xdb0   :  { %2299 = vmatpush.bf16.msra.mxu1 %v3580_v16 }
 0xdb2   :  { %2285 = vmatpush.bf16.msra.mxu0 %v3584_v19 }
 0xdb4   :  { %2300 = vmatpush.bf16.msra.mxu1 %v3572_v54 }
 0xdb6   :  { %2286 = vmatpush.bf16.msra.mxu0 %v3576_v26 }
 0xdb8   :  { %2301 = vmatpush.bf16.msra.mxu1 %v3564_v30 }
 0xdba   :  { %2287 = vmatpush.bf16.msra.mxu0 %v3568_v56 }
 0xdbb   :  { %2302 = vmatmul.bf16.vlgmr.msra.gmra.mxu1 %v2184_v52 }
 0xdbe   :  { %2288 = vmatpush.bf16.msra.mxu0 %v3560_v32 }
 0xdc1   :  { %2289 = vmatmul.bf16.vlgmr.msra.gmra.mxu0 %v2184_v52 }
 0xe38   :  { %v2303_v31 = vpop.f32.mrf.mxu1 }
 0xe39   :  { %v2307_v2 = vadd.f32 %v4822_v8, %v2303_v31 }
 0xe3b   :  { %2308 = vmax.xlane.f32.xlu0 %v2307_v2 }
 0xe3e   :  { %v2290_v1 = vpop.f32.mrf.mxu0 }
 0xe40   :  { %v2305_v42 = vpop.f32.mrf.mxu1 }
 0xe46   :  { %v2292_v5 = vpop.f32.mrf.mxu0 }
 0xeae   :  { %v2309_v23 = vpop.xlane.xlu0 %2308 }
 0xeaf   :  { %vm2310_vm0 = vcmp.eq.f32.partialorder %v2307_v2, %v2309_v23 }
 0xeb0   :  { %v2311_v27 = vsel %vm2310_vm0, %v4518_v40, 128 }
 0xeb1   :  { %v2313_v46 = vshra.s32 %v2311_v27, 16  ;;  %v2312_v50 = vand.u32 65535, %v2311_v27 }
 0xeb3   :  { %v2315_v38 = vcvt.s32.f32 %v2313_v46  ;;  %v2314_v37 = vcvt.s32.f32 %v2312_v50 }
 0xeb5   :  { %2316 = vmin.xlane.f32.xlu0 %v2315_v38 }
 0xf28   :  { %v2317_v58 = vpop.xlane.xlu0 %2316 }
 0xf29   :  { %vm2318_vm1 = vcmp.eq.f32.partialorder %v2315_v38, %v2317_v58  ;;  %v2323_v15 = vcvt.f32.s32 %v2317_v58 }
 0xf2a   :  { %v2319_v60 = vsel %vm2318_vm1, %v2314_v37, inf }
 0xf2b   :  { %2320 = vmin.xlane.f32.xlu1 %v2319_v60  ;;  %v2324_v29 = vshll.u32 %v2323_v15, 16 }
 0xf9e   :  { %v2321_v25 = vpop.xlane.xlu1 %2320 }
 0xf9f   :  { %v2322_v35 = vcvt.f32.s32 %v2321_v25 }
 0xfa1   :  { %v2325_v3 = vadd.s32 %v2324_v29, %v2322_v35 }
 0xfa3   :  { %v2327_v39 = vcvt.s32.f32 %v2325_v3  ;;  %2344 = sbr.rel (%p3622_p3) target bundleno = 4174 (0x104e), region = 81 }
 0xfa5   :  { %v2329_v48 = vperm.slane %v2327_v39, %v4518_v40 }
 0xfa7   :  { %v4930_v49 = vsel %vm2326_vm2, %v2329_v48, %v4898_v24 }
 0xfa8   :  { %v4003_v51 = vld [vmem:[%s5031_s9 + $0x38] sm:$0xff]  ;;  %v4002_v63 = vld [vmem:[%s5031_s9 + $0x30] sm:$0xff]  ;;  %v4001_v57 = vld [vmem:[%s5031_s9 + $0x28] sm:$0xff]  ;;  %vm2345_vm3 = vcmp.eq.s32.totalorder %v4518_v40, %v2325_v3  ;;  %v4210_v21 = vmov 1.0|1.0  }
 0xfa9   :  { %2413 = vmatpush.bf16.msra.mxu0 %v4003_v51  ;;  %v4000_v24 = vld [vmem:[%s5031_s9 + $0x20] sm:$0xff]  ;;  %v3999_v0 = vld [vmem:[%s5031_s9 + $0x18] sm:$0xff]  ;;  %v3998_v7 = vld [vmem:[%s5031_s9 + $0x10] sm:$0xff] }
 0xfaa   :  { %v3997_v11 = vld [vmem:[%s5031_s9 + $0x8] sm:$0xff]  ;;  %v3996_v16 = vld [vmem:[%s5031_s9] sm:$0xff]  ;;  %vm3656_vm4 = vmpackc.low %vm2345_vm3, %vm2345_vm3 }
 0xfad   :  { %2414 = vmatpush.bf16.msra.mxu0 %v4002_v63 }
 0xfb1   :  { %2415 = vmatpush.bf16.msra.mxu0 %v4001_v57 }
 0xfb5   :  { %2416 = vmatpush.bf16.msra.mxu0 %v4000_v24 }
 0xfb9   :  { %2417 = vmatpush.bf16.msra.mxu0 %v3999_v0 }
 0xfbd   :  { %2418 = vmatpush.bf16.msra.mxu0 %v3998_v7 }
 0xfc1   :  { %2419 = vmatpush.bf16.msra.mxu0 %v3997_v11 }
 0xfc5   :  { %2420 = vmatpush.bf16.msra.mxu0 %v3996_v16 }
 0xfc8   :  { %3657 = vmatmul.msk.bf16.vlgmr.msra.gmra.mxu0 %vm3656_vm4, %v4210_v21 }
0x1045   :  { %v2422_v34 = vpop.f32.mrf.mxu0 }
0x1046   :  { %2426 = vst [vmem:[#allocation4] sm:$0xff] %v2422_v34 }
0x104d   :  { %v2424_v54 = vpop.f32.mrf.mxu0 }
0x104e PF:  { %v4018_v55 = vld [vmem:[#allocation11 + $0x74] sm:$0xf]  ;;  %v3718_v59 = vld [vmem:[#allocation11 + $0x78] sm:$0xf0]  ;;  %v4016_v28 = vld [vmem:[#allocation11 + $0x64] sm:$0xf] }
0x104f   :  { %v3721_v30 = vor.u32 %v4018_v55, %v3718_v59  ;;  %v3710_v52 = vld [vmem:[#allocation11 + $0x68] sm:$0xf0]  ;;  %v4014_v2 = vld [vmem:[#allocation11 + $0x54] sm:$0xf]  ;;  %v3702_v42 = vld [vmem:[#allocation11 + $0x58] sm:$0xf0] }
0x1050   :  { %v3713_v31 = vor.u32 %v4016_v28, %v3710_v52  ;;  %v2427_v47 = vld [vmem:[#allocation4] sm:$0xff]  ;;  %v2584_v61 = vld [vmem:[#allocation3 + $0x20] sm:$0xff]  ;;  %v3705_v62 = vor.u32 %v4014_v2, %v3702_v42  ;;  %v3694_v43 = vld [vmem:[#allocation11 + $0x48] sm:$0xf0]  ;;  %s3722_s18 = sld [smem:[#allocation5 + $0x5]]  ;;  %vm2572_vm7 = vcmp.eq.s32.totalorder %v4829_v41, 5 }
0x1051   :  { %2540 = vmatpush.bf16.msra.mxu1 %v3721_v30  ;;  %2585 = vst [vmem:[#allocation4] sm:$0xff] %v2584_v61  ;;  %v4012_v53 = vld [vmem:[#allocation11 + $0x44] sm:$0xf]  ;;  %v4010_v44 = vld [vmem:[#allocation11 + $0x34] sm:$0xf]  ;;  %v2428_v10 = vadd.f32 %v2427_v47, %v2290_v1 }
0x1052   :  { %v3697_v36 = vor.u32 %v4012_v53, %v3694_v43  ;;  %v3686_v33 = vld [vmem:[#allocation11 + $0x38] sm:$0xf0]  ;;  %v4008_v12 = vld [vmem:[#allocation11 + $0x24] sm:$0xf]  ;;  %v3678_v13 = vld [vmem:[#allocation11 + $0x28] sm:$0xf0] }
0x1053   :  { %v3689_v4 = vor.u32 %v4010_v44, %v3686_v33  ;;  %v3681_v17 = vor.u32 %v4008_v12, %v3678_v13  ;;  %v4006_v20 = vld [vmem:[#allocation11 + $0x14] sm:$0xf]  ;;  %v3670_v19 = vld [vmem:[#allocation11 + $0x18] sm:$0xf0]  ;;  %4103 = vtanh.f32 %v2428_v10  ;;  %v4004_v22 = vld [vmem:[#allocation11 + $0x4] sm:$0xf] }
0x1054   :  { %v3673_v45 = vor.u32 %v4006_v20, %v3670_v19  ;;  %v3662_v26 = vld [vmem:[#allocation11 + $0x8] sm:$0xf0]  ;;  %v3716_v27 = vld [vmem:[#allocation11 + $0x70] sm:$0xf]  ;;  %v4019_v32 = vld [vmem:[#allocation11 + $0x74] sm:$0xf0] }
0x1055   :  { %2541 = vmatpush.bf16.msra.mxu1 %v3713_v31  ;;  %v3665_v9 = vor.u32 %v4004_v22, %v3662_v26  ;;  %v3708_v46 = vld [vmem:[#allocation11 + $0x60] sm:$0xf]  ;;  %v3717_v38 = vor.u32 %v4019_v32, %v3716_v27  ;;  %v4017_v50 = vld [vmem:[#allocation11 + $0x64] sm:$0xf0]  ;;  %v3700_v37 = vld [vmem:[#allocation11 + $0x50] sm:$0xf] }
0x1056   :  { %v3709_v58 = vor.u32 %v4017_v50, %v3708_v46  ;;  %v4015_v60 = vld [vmem:[#allocation11 + $0x54] sm:$0xf0]  ;;  %v3692_v5 = vld [vmem:[#allocation11 + $0x40] sm:$0xf]  ;;  %v4013_v15 = vld [vmem:[#allocation11 + $0x44] sm:$0xf0] }
0x1057   :  { %2527 = vmatpush.bf16.msra.mxu0 %v3717_v38  ;;  %v3701_v1 = vor.u32 %v4015_v60, %v3700_v37  ;;  %v3693_v25 = vor.u32 %v4013_v15, %v3692_v5  ;;  %v3684_v29 = vld [vmem:[#allocation11 + $0x30] sm:$0xf]  ;;  %v4011_v35 = vld [vmem:[#allocation11 + $0x34] sm:$0xf0]  ;;  %v3676_v39 = vld [vmem:[#allocation11 + $0x20] sm:$0xf] }
0x1058   :  { %v3685_v3 = vor.u32 %v4011_v35, %v3684_v29  ;;  %v4009_v48 = vld [vmem:[#allocation11 + $0x24] sm:$0xf0]  ;;  %v3668_v63 = vld [vmem:[#allocation11 + $0x10] sm:$0xf]  ;;  %v4007_v57 = vld [vmem:[#allocation11 + $0x14] sm:$0xf0] }
0x1059   :  { %2542 = vmatpush.bf16.msra.mxu1 %v3705_v62  ;;  %v4104_v6 = vpop.eup %4103  ;;  %v3677_v51 = vor.u32 %v4009_v48, %v3676_v39  ;;  %v3669_v24 = vor.u32 %v4007_v57, %v3668_v63  ;;  %v3660_v0 = vld [vmem:[#allocation11] sm:$0xf]  ;;  %v4005_v7 = vld [vmem:[#allocation11 + $0x4] sm:$0xf0]  ;;  %p3723_p4 = scmp.ne.s32.totalorder %s3722_s18, 0 }
0x105a   :  { %v2430_v56 = vpack.c.bf16 %v4104_v6, %v4104_v6  ;;  %v3661_v21 = vor.u32 %v4005_v7, %v3660_v0 }
0x105b   :  { %2528 = vmatpush.bf16.msra.mxu0 %v3709_v58 }
0x105d   :  { %2543 = vmatpush.bf16.msra.mxu1 %v3697_v36 }
0x105f   :  { %2529 = vmatpush.bf16.msra.mxu0 %v3701_v1 }
0x1061   :  { %2544 = vmatpush.bf16.msra.mxu1 %v3689_v4 }
0x1063   :  { %2530 = vmatpush.bf16.msra.mxu0 %v3693_v25 }
0x1065   :  { %2545 = vmatpush.bf16.msra.mxu1 %v3681_v17 }
0x1067   :  { %2531 = vmatpush.bf16.msra.mxu0 %v3685_v3 }
0x1069   :  { %2546 = vmatpush.bf16.msra.mxu1 %v3673_v45 }
0x106b   :  { %2532 = vmatpush.bf16.msra.mxu0 %v3677_v51 }
0x106d   :  { %2547 = vmatpush.bf16.msra.mxu1 %v3665_v9 }
0x106f   :  { %2533 = vmatpush.bf16.msra.mxu0 %v3669_v24 }
0x1070   :  { %2548 = vmatmul.bf16.vlgmr.msra.gmra.mxu1 %v2430_v56 }
0x1073   :  { %2534 = vmatpush.bf16.msra.mxu0 %v3661_v21 }
0x1076   :  { %2535 = vmatmul.bf16.vlgmr.msra.gmra.mxu0 %v2430_v56 }
0x10ed   :  { %v2549_v14 = vpop.f32.mrf.mxu1 }
0x10ee   :  { %v2553_v18 = vadd.f32 %v4822_v8, %v2549_v14 }
0x10f0   :  { %2554 = vmax.xlane.f32.xlu0 %v2553_v18 }
0x10f3   :  { %v2536_v52 = vpop.f32.mrf.mxu0 }
0x10f5   :  { %v2551_v23 = vpop.f32.mrf.mxu1 }
0x10fb   :  { %v2538_v31 = vpop.f32.mrf.mxu0 }
0x1163   :  { %v2555_v11 = vpop.xlane.xlu0 %2554 }
0x1164   :  { %vm2556_vm5 = vcmp.eq.f32.partialorder %v2553_v18, %v2555_v11 }
0x1165   :  { %v2557_v16 = vsel %vm2556_vm5, %v4518_v40, 128 }
0x1166   :  { %v2559_v34 = vshra.s32 %v2557_v16, 16  ;;  %v2558_v55 = vand.u32 65535, %v2557_v16 }
0x1168   :  { %v2561_v54 = vcvt.s32.f32 %v2559_v34  ;;  %v2560_v28 = vcvt.s32.f32 %v2558_v55 }
0x116a   :  { %2562 = vmin.xlane.f32.xlu0 %v2561_v54 }
0x11dd   :  { %v2563_v59 = vpop.xlane.xlu0 %2562 }
0x11de   :  { %vm2564_vm6 = vcmp.eq.f32.partialorder %v2561_v54, %v2563_v59  ;;  %v2569_v2 = vcvt.f32.s32 %v2563_v59 }
0x11df   :  { %v2565_v30 = vsel %vm2564_vm6, %v2560_v28, inf }
0x11e0   :  { %2566 = vmin.xlane.f32.xlu1 %v2565_v30  ;;  %v2570_v47 = vshll.u32 %v2569_v2, 16 }
0x1253   :  { %v2567_v42 = vpop.xlane.xlu1 %2566 }
0x1254   :  { %v2568_v61 = vcvt.f32.s32 %v2567_v42 }
0x1256   :  { %v2571_v62 = vadd.s32 %v2570_v47, %v2568_v61 }
0x1258   :  { %v2573_v53 = vcvt.s32.f32 %v2571_v62  ;;  %2590 = sbr.rel (%p3723_p4) target bundleno = 4867 (0x1303), region = 85 }
0x125a   :  { %v2575_v43 = vperm.slane %v2573_v53, %v4518_v40 }
0x125c   :  { %v4962_v36 = vsel %vm2572_vm7, %v2575_v43, %v4930_v49 }
0x125d   :  { %v4027_v44 = vld [vmem:[%s5031_s9 + $0x38] sm:$0xff]  ;;  %v4026_v33 = vld [vmem:[%s5031_s9 + $0x30] sm:$0xff]  ;;  %v4025_v4 = vld [vmem:[%s5031_s9 + $0x28] sm:$0xff]  ;;  %vm2591_vm8 = vcmp.eq.s32.totalorder %v4518_v40, %v2571_v62  ;;  %v4211_v20 = vmov 1.0|1.0  }
0x125e   :  { %2659 = vmatpush.bf16.msra.mxu0 %v4027_v44  ;;  %v4024_v49 = vld [vmem:[%s5031_s9 + $0x20] sm:$0xff]  ;;  %v4023_v12 = vld [vmem:[%s5031_s9 + $0x18] sm:$0xff]  ;;  %v4022_v13 = vld [vmem:[%s5031_s9 + $0x10] sm:$0xff] }
0x125f   :  { %v4021_v10 = vld [vmem:[%s5031_s9 + $0x8] sm:$0xff]  ;;  %v4020_v17 = vld [vmem:[%s5031_s9] sm:$0xff]  ;;  %vm3757_vm9 = vmpackc.low %vm2591_vm8, %vm2591_vm8 }
0x1262   :  { %2660 = vmatpush.bf16.msra.mxu0 %v4026_v33 }
0x1266   :  { %2661 = vmatpush.bf16.msra.mxu0 %v4025_v4 }
0x126a   :  { %2662 = vmatpush.bf16.msra.mxu0 %v4024_v49 }
0x126e   :  { %2663 = vmatpush.bf16.msra.mxu0 %v4023_v12 }
0x1272   :  { %2664 = vmatpush.bf16.msra.mxu0 %v4022_v13 }
0x1276   :  { %2665 = vmatpush.bf16.msra.mxu0 %v4021_v10 }
0x127a   :  { %2666 = vmatpush.bf16.msra.mxu0 %v4020_v17 }
0x127d   :  { %3758 = vmatmul.msk.bf16.vlgmr.msra.gmra.mxu0 %vm3757_vm9, %v4211_v20 }
0x12fa   :  { %v2668_v19 = vpop.f32.mrf.mxu0 }
0x12fb   :  { %2672 = vst [vmem:[#allocation4] sm:$0xff] %v2668_v19 }
0x1302   :  { %v2670_v45 = vpop.f32.mrf.mxu0 }
0x1303 PF:  { %v4035_v22 = vld [vmem:[#allocation11 + $0x74] sm:$0xf]  ;;  %v3787_v26 = vld [vmem:[#allocation11 + $0x78] sm:$0xf0]  ;;  %v4034_v6 = vld [vmem:[#allocation11 + $0x64] sm:$0xf] }
0x1304   :  { %v3790_v9 = vor.u32 %v4035_v22, %v3787_v26  ;;  %v3783_v56 = vld [vmem:[#allocation11 + $0x68] sm:$0xf0]  ;;  %v4033_v18 = vld [vmem:[#allocation11 + $0x54] sm:$0xf]  ;;  %v3779_v23 = vld [vmem:[#allocation11 + $0x58] sm:$0xf0] }
0x1305   :  { %v3786_v14 = vor.u32 %v4034_v6, %v3783_v56  ;;  %v2673_v27 = vld [vmem:[#allocation4] sm:$0xff]  ;;  %v2785_v32 = vld [vmem:[#allocation3 + $0x28] sm:$0xff]  ;;  %v3782_v46 = vor.u32 %v4033_v18, %v3779_v23  ;;  %v4032_v38 = vld [vmem:[#allocation11 + $0x44] sm:$0xf]  ;;  %s3791_s8 = sld [smem:[#allocation5 + $0x6]]  ;;  %vm2773_vm12 = vcmp.eq.s32.totalorder %v4829_v41, 6 }
0x1306   :  { %2741 = vmatpush.bf16.msra.mxu0 %v3790_v9  ;;  %2786 = vst [vmem:[#allocation4] sm:$0xff] %v2785_v32  ;;  %v3775_v50 = vld [vmem:[#allocation11 + $0x48] sm:$0xf0]  ;;  %v4031_v37 = vld [vmem:[#allocation11 + $0x34] sm:$0xf]  ;;  %v2674_v25 = vadd.f32 %v2673_v27, %v2536_v52 }
0x1307   :  { %v3778_v58 = vor.u32 %v4032_v38, %v3775_v50  ;;  %v3771_v60 = vld [vmem:[#allocation11 + $0x38] sm:$0xf0]  ;;  %v4030_v5 = vld [vmem:[#allocation11 + $0x24] sm:$0xf]  ;;  %v3767_v15 = vld [vmem:[#allocation11 + $0x28] sm:$0xf0] }
0x1308   :  { %v3774_v1 = vor.u32 %v4031_v37, %v3771_v60  ;;  %v3770_v29 = vor.u32 %v4030_v5, %v3767_v15  ;;  %v4029_v35 = vld [vmem:[#allocation11 + $0x14] sm:$0xf]  ;;  %v3763_v3 = vld [vmem:[#allocation11 + $0x18] sm:$0xf0]  ;;  %4105 = vtanh.f32 %v2674_v25  ;;  %v4028_v48 = vld [vmem:[#allocation11 + $0x4] sm:$0xf] }
0x1309   :  { %v3766_v39 = vor.u32 %v4029_v35, %v3763_v3  ;;  %v3759_v51 = vld [vmem:[#allocation11 + $0x8] sm:$0xf0] }
0x130a   :  { %2742 = vmatpush.bf16.msra.mxu0 %v3786_v14  ;;  %v3762_v57 = vor.u32 %v4028_v48, %v3759_v51 }
0x130b   :  { %p3792_p5 = scmp.ne.s32.totalorder %s3791_s8, 0 }
0x130e   :  { %2743 = vmatpush.bf16.msra.mxu0 %v3782_v46  ;;  %v4106_v63 = vpop.eup %4105 }
0x130f   :  { %v2676_v24 = vpack.c.bf16 %v4106_v63, %v4106_v63 }
0x1312   :  { %2744 = vmatpush.bf16.msra.mxu0 %v3778_v58 }
0x1316   :  { %2745 = vmatpush.bf16.msra.mxu0 %v3774_v1 }
0x131a   :  { %2746 = vmatpush.bf16.msra.mxu0 %v3770_v29 }
0x131e   :  { %2747 = vmatpush.bf16.msra.mxu0 %v3766_v39 }
0x1322   :  { %2748 = vmatpush.bf16.msra.mxu0 %v3762_v57 }
0x1325   :  { %2749 = vmatmul.bf16.vlgmr.msra.gmra.mxu0 %v2676_v24 }
0x13a2   :  { %v2750_v0 = vpop.f32.mrf.mxu0 }
0x13a3   :  { %v2754_v7 = vadd.f32 %v4822_v8, %v2750_v0 }
0x13a5   :  { %2755 = vmax.xlane.f32.xlu0 %v2754_v7 }
0x13aa   :  { %v2752_v11 = vpop.f32.mrf.mxu0 }
0x1418   :  { %v2756_v16 = vpop.xlane.xlu0 %2755 }
0x1419   :  { %vm2757_vm10 = vcmp.eq.f32.partialorder %v2754_v7, %v2756_v16 }
0x141a   :  { %v2758_v21 = vsel %vm2757_vm10, %v4518_v40, 128 }
0x141b   :  { %v2760_v34 = vshra.s32 %v2758_v21, 16  ;;  %v2759_v55 = vand.u32 65535, %v2758_v21 }
0x141d   :  { %v2762_v54 = vcvt.s32.f32 %v2760_v34  ;;  %v2761_v28 = vcvt.s32.f32 %v2759_v55 }
0x141f   :  { %2763 = vmin.xlane.f32.xlu0 %v2762_v54 }
0x1492   :  { %v2764_v59 = vpop.xlane.xlu0 %2763 }
0x1493   :  { %vm2765_vm11 = vcmp.eq.f32.partialorder %v2762_v54, %v2764_v59  ;;  %v2770_v52 = vcvt.f32.s32 %v2764_v59 }
0x1494   :  { %v2766_v30 = vsel %vm2765_vm11, %v2761_v28, inf }
0x1495   :  { %2767 = vmin.xlane.f32.xlu1 %v2766_v30  ;;  %v2771_v2 = vshll.u32 %v2770_v52, 16 }
0x1508   :  { %v2768_v31 = vpop.xlane.xlu1 %2767 }
0x1509   :  { %v2769_v8 = vcvt.f32.s32 %v2768_v31 }
0x150b   :  { %v2772_v42 = vadd.s32 %v2771_v2, %v2769_v8 }
0x150d   :  { %v2774_v47 = vcvt.s32.f32 %v2772_v42  ;;  %2791 = sbr.rel (%p3792_p5) target bundleno = 5560 (0x15b8), region = 89 }
0x150f   :  { %v2776_v61 = vperm.slane %v2774_v47, %v4518_v40 }
0x1511   :  { %v2783_v62 = vsel %vm2773_vm12, %v2776_v61, %v4962_v36 }
0x1512   :  { %v4043_v53 = vld [vmem:[%s5031_s9 + $0x38] sm:$0xff]  ;;  %v4042_v43 = vld [vmem:[%s5031_s9 + $0x30] sm:$0xff]  ;;  %v4041_v41 = vld [vmem:[%s5031_s9 + $0x28] sm:$0xff]  ;;  %vm2792_vm13 = vcmp.eq.s32.totalorder %v4518_v40, %v2772_v42  ;;  %v4212_v12 = vmov 1.0|1.0  }
0x1513   :  { %2860 = vmatpush.bf16.msra.mxu0 %v4043_v53  ;;  %v4040_v36 = vld [vmem:[%s5031_s9 + $0x20] sm:$0xff]  ;;  %v4039_v44 = vld [vmem:[%s5031_s9 + $0x18] sm:$0xff]  ;;  %v4038_v33 = vld [vmem:[%s5031_s9 + $0x10] sm:$0xff] }
0x1514   :  { %v4037_v4 = vld [vmem:[%s5031_s9 + $0x8] sm:$0xff]  ;;  %v4036_v49 = vld [vmem:[%s5031_s9] sm:$0xff]  ;;  %vm3826_vm14 = vmpackc.low %vm2792_vm13, %vm2792_vm13 }
0x1517   :  { %2861 = vmatpush.bf16.msra.mxu0 %v4042_v43 }
0x151b   :  { %2862 = vmatpush.bf16.msra.mxu0 %v4041_v41 }
0x151f   :  { %2863 = vmatpush.bf16.msra.mxu0 %v4040_v36 }
0x1523   :  { %2864 = vmatpush.bf16.msra.mxu0 %v4039_v44 }
0x1527   :  { %2865 = vmatpush.bf16.msra.mxu0 %v4038_v33 }
0x152b   :  { %2866 = vmatpush.bf16.msra.mxu0 %v4037_v4 }
0x152f   :  { %2867 = vmatpush.bf16.msra.mxu0 %v4036_v49 }
0x1532   :  { %3827 = vmatmul.msk.bf16.vlgmr.msra.gmra.mxu0 %vm3826_vm14, %v4212_v12 }
0x15af   :  { %v2869_v13 = vpop.f32.mrf.mxu0 }
0x15b0   :  { %2873 = vst [vmem:[#allocation4] sm:$0xff] %v2869_v13 }
0x15b7   :  { %v2871_v10 = vpop.f32.mrf.mxu0 }
0x15b8 PF:  { %vm2874_vm15 = vcmask 63488  }
0x15b9   :  { %2875 = vst.msk [vmem:[%s5034_s12] sm:$0x7f] %vm2874_vm15, %v2783_v62 }
0x15ba   :  { %2880 = vsyncpa [#allocation6], 1 }
0x15bb   :  { %2881 = vsyncpa [#allocation10], 1 }
0x15bc   :  { %2882 = vsyncpa [#allocation7], 1 }

</bundles_post_ra>
